<compile_context>
chip_gen: v7x
topology: tpu7x:2x2x1
jax: 0.10.0
libtpu: 0.0.40
codegen_flags: <defaults>
</compile_context>

<pallas_src>
import functools

import jax
import jax.numpy as jnp
from jax.experimental import pallas as pl
from jax.experimental.pallas import tpu as pltpu


# ----------------------------------------------------------------------------
# small helpers
# ----------------------------------------------------------------------------
def _cdiv(a, b):
    return -(-a // b)


def _round_up(x, m):
    return _cdiv(x, m) * m


def _choose_m_tile(m, cap=512):
    """Row tile: sublane aligned, <= cap, and >=2 tiles when possible so the
    'parallel' grid axis can shard across v7x's two TensorCores."""
    if m <= 8:
        return 8
    if m <= cap:
        return max(8, _round_up(_cdiv(m, 2), 8))
    return cap


def _choose_k_tile(k, cap=512):
    """Contraction tile: a 128-multiple divisor of K (fills the 256-wide MXU on
    v6e/v7x when possible) or the full K (block dim == full dim is legal)."""
    for t in (cap, 256, 128):
        if k % t == 0:
            return t
    return k


def _choose_n_tile(n, cap=2048):
    # Full-N tiles (ResNet cout <= 2048) so each x tile is fetched once over N.
    return n if n <= cap else 512


def _vmem_limit_bytes(need):
    cap = 48 << 20                       # safe within v7x's 64 MiB per-TC VMEM
    try:
        kind = jax.devices()[0].device_kind.lower()
        if "v5" in kind or "v6" in kind:
            cap = 96 << 20               # v5e / v6e have 128 MiB physical VMEM
    except Exception:
        pass
    return int(min(max(2 * need, 8 << 20), cap))


def fold_bn(gamma, beta, mean, var, eps=1e-5):
    scale = gamma / jnp.sqrt(var + eps)
    return scale.astype(jnp.float32), (beta - mean * scale).astype(jnp.float32)


# ----------------------------------------------------------------------------
# Fused matmul + BN(scale,bias in f32 epilogue) (+residual) (+ReLU)
# grid = (M tiles, N tiles, K tiles); f32 accumulator only when K is tiled.
# ----------------------------------------------------------------------------
def _matmul_bn_act_kernel(x_ref, w_ref, s_ref, b_ref, *rest,
                          relu, add_residual, single_k):
    if add_residual:
        r_ref, rest = rest[0], rest[1:]
    else:
        r_ref = None
    o_ref = rest[0]
    acc_ref = None if single_k else rest[1]

    xv = x_ref[...]
    if xv.dtype != jnp.bfloat16:
        xv = xv.astype(jnp.bfloat16)
    part = jnp.dot(xv, w_ref[...], preferred_element_type=jnp.float32)

    def _finalize(acc):
        out = acc * s_ref[...] + b_ref[...]
        if add_residual:
            out = out + r_ref[...].astype(jnp.float32)
        if relu:
            out = jnp.maximum(out, 0.0)
        o_ref[...] = out.astype(o_ref.dtype)

    if single_k:
        _finalize(part)
    else:
        @pl.when(pl.program_id(2) == 0)
        def _():
            acc_ref[...] = jnp.zeros_like(acc_ref)

        acc_ref[...] += part

        @pl.when(pl.program_id(2) == pl.num_programs(2) - 1)
        def _():
            _finalize(acc_ref[...])


def matmul_bn_act(x, w, scale, bias, residual=None, relu=True,
                  out_dtype=jnp.bfloat16):
    """(M,K)@(K,N) then y*scale + bias (+residual) (+ReLU), all in one kernel."""
    m, k = x.shape
    k2, n = w.shape
    assert k == k2, (k, k2)
    add_res = residual is not None

    w_bf = w.astype(jnp.bfloat16)
    s2d = scale.reshape(1, n).astype(jnp.float32)
    b2d = bias.reshape(1, n).astype(jnp.float32)

    tm = _choose_m_tile(m)
    tn = _choose_n_tile(n)
    tk = _choose_k_tile(k)
    kg = _cdiv(k, tk)                    # tk divides k (or tk == k) => exact
    single_k = kg == 1

    in_specs = [
        pl.BlockSpec((tm, tk), lambda i, j, kk: (i, kk)),   # x tile
        pl.BlockSpec((tk, tn), lambda i, j, kk: (kk, j)),   # weight tile
        pl.BlockSpec((1, tn), lambda i, j, kk: (0, j)),     # BN scale (f32)
        pl.BlockSpec((1, tn), lambda i, j, kk: (0, j)),     # BN bias  (f32)
    ]
    args = [x, w_bf, s2d, b2d]
    if add_res:
        in_specs.append(pl.BlockSpec((tm, tn), lambda i, j, kk: (i, j)))
        args.append(residual)

    xb = jnp.dtype(x.dtype).itemsize
    ob = jnp.dtype(out_dtype).itemsize
    rb = jnp.dtype(residual.dtype).itemsize if add_res else 0
    need = (2 * tm * tk * xb + 2 * tk * tn * 2 + 4 * tn * 4
            + 2 * tm * tn * ob + (2 * tm * tn * rb if add_res else 0)
            + (0 if single_k else tm * tn * 4))

    kernel = functools.partial(_matmul_bn_act_kernel, relu=relu,
                               add_residual=add_res, single_k=single_k)

    return pl.pallas_call(
        kernel,
        out_shape=jax.ShapeDtypeStruct((m, n), out_dtype),
        grid=(_cdiv(m, tm), _cdiv(n, tn), kg),
        in_specs=in_specs,
        out_specs=pl.BlockSpec((tm, tn), lambda i, j, kk: (i, j)),
        scratch_shapes=([] if single_k else [pltpu.VMEM((tm, tn), jnp.float32)]),
        compiler_params=pltpu.CompilerParams(
            dimension_semantics=("parallel", "parallel", "arbitrary"),
            vmem_limit_bytes=_vmem_limit_bytes(need)),
    )(*args)


# ----------------------------------------------------------------------------
# conv2: 3x3 / stride 1 / pad 1 + BN + ReLU without im2col materialization.
# The spatially padded input is flattened to "wide" rows (pitch w+2); output
# wide row p = oy*(w+2)+ox, and tap (ky,kx) reads flat row p + ky*(w+2)+kx.
# So each tap is a contiguous shifted window of one row tile (+ small halo).
# ----------------------------------------------------------------------------
def _conv3x3_s1_kernel(xa_ref, xb_ref, w_ref, s_ref, b_ref, o_ref,
                       win_ref, acc_ref, *, wp, tm, tb):
    # Assemble the halo'd row window once per tile.
    win_ref[0:tm, :] = xa_ref[...]
    win_ref[tm:tm + tb, :] = xb_ref[...]

    acc_ref[...] = jnp.zeros_like(acc_ref)
    for ky in range(3):
        for kx in range(3):
            d = ky * wp + kx
            acc_ref[...] += jnp.dot(win_ref[d:d + tm, :], w_ref[3 * ky + kx],
                                    preferred_element_type=jnp.float32)

    out = acc_ref[...] * s_ref[...] + b_ref[...]
    out = jnp.maximum(out, 0.0)
    o_ref[...] = out.astype(o_ref.dtype)


def conv3x3_s1_bn_relu(x_nhwc, w_oihw, scale, bias, out_dtype=jnp.bfloat16):
    n, h, w, c = x_nhwc.shape
    cout = w_oihw.shape[0]
    wp = w + 2
    mw = h * wp                          # "wide" output rows per image
    halo = 2 * wp + 2                    # max tap shift

    tm = _choose_m_tile(mw)
    tb = None                            # halo block: multiple of 8, divides tm
    for t in range(8, tm + 1, 8):
        if tm % t == 0 and t >= halo:
            tb = t
            break
    if tb is None:                       # tiny spatial size: caller falls back
        return None

    nt = _cdiv(mw, tm)
    rows_needed = nt * tm + tb
    extra_h = max(0, _cdiv(rows_needed - (h + 2) * wp, wp))
    xp = jnp.pad(x_nhwc.astype(jnp.bfloat16),
                 ((0, 0), (1, 1 + extra_h), (1, 1), (0, 0)))
    rows_total = (h + 2 + extra_h) * wp
    x_flat = xp.reshape(n, rows_total, c)

    w_taps = jnp.transpose(w_oihw, (2, 3, 1, 0)).reshape(9, c, cout)
    w_taps = w_taps.astype(jnp.bfloat16)
    s2d = scale.reshape(1, cout).astype(jnp.float32)
    b2d = bias.reshape(1, cout).astype(jnp.float32)

    step = tm // tb
    kernel = functools.partial(_conv3x3_s1_kernel, wp=wp, tm=tm, tb=tb)

    need = (2 * tm * c * 2 + 2 * tb * c * 2 + 2 * 9 * c * cout * 2
            + 4 * cout * 4 + 2 * tm * cout * jnp.dtype(out_dtype).itemsize
            + (tm + tb) * c * 2 + tm * cout * 4)

    out_wide = pl.pallas_call(
        kernel,
        out_shape=jax.ShapeDtypeStruct((n, mw, cout), out_dtype),
        grid=(n, nt),
        in_specs=[
            pl.BlockSpec((None, tm, c), lambda b, i: (b, i, 0)),            # tile
            pl.BlockSpec((None, tb, c), lambda b, i: (b, (i + 1) * step, 0)),  # halo
            pl.BlockSpec((9, c, cout), lambda b, i: (0, 0, 0)),             # taps
            pl.BlockSpec((1, cout), lambda b, i: (0, 0)),                   # scale
            pl.BlockSpec((1, cout), lambda b, i: (0, 0)),                   # bias
        ],
        out_specs=pl.BlockSpec((None, tm, cout), lambda b, i: (b, i, 0)),
        scratch_shapes=[pltpu.VMEM((tm + tb, c), jnp.bfloat16),
                        pltpu.VMEM((tm, cout), jnp.float32)],
        compiler_params=pltpu.CompilerParams(
            dimension_semantics=("parallel", "parallel"),
            vmem_limit_bytes=_vmem_limit_bytes(need)),
    )(x_flat, x_flat, w_taps, s2d, b2d)

    # Drop the 2 junk columns introduced by the wide (w+2) row pitch.
    return out_wide.reshape(n, h, wp, cout)[:, :, :w, :]


# ----------------------------------------------------------------------------
# im2col fallback (only used for stride != 1)
# ----------------------------------------------------------------------------
def im2col_3x3(x_nhwc, stride):
    n, h, w, c = x_nhwc.shape
    xp = jnp.pad(x_nhwc, ((0, 0), (1, 1), (1, 1), (0, 0)))
    ho = (h - 1) // stride + 1
    wo = (w - 1) // stride + 1
    cols = []
    for ky in range(3):
        for kx in range(3):
            cols.append(xp[:, ky:ky + (ho - 1) * stride + 1:stride,
                              kx:kx + (wo - 1) * stride + 1:stride, :])
    patches = jnp.stack(cols, axis=3)                 # (n, ho, wo, 9, c)
    return patches.reshape(n * ho * wo, 9 * c), ho, wo


# ----------------------------------------------------------------------------
# Bottleneck forward (NCHW in / NCHW out), expansion = 4
# ----------------------------------------------------------------------------
def bottleneck_forward(x_nchw, params, stride):
    x = jnp.transpose(x_nchw, (0, 2, 3, 1))           # NHWC, f32
    n, h, w, cin = x.shape
    planes = params["w1"].shape[0]
    cout = 4 * planes

    # conv1 (1x1) + bn1 + relu
    w1 = jnp.transpose(params["w1"], (2, 3, 1, 0)).reshape(cin, planes)
    s1, b1 = fold_bn(params["g1"], params["b1"], params["m1"], params["v1"])
    y1 = matmul_bn_act(x.reshape(n * h * w, cin), w1, s1, b1, relu=True)
    y1 = y1.reshape(n, h, w, planes)                  # bf16

    # conv2 (3x3, stride, pad 1) + bn2 + relu
    s2, b2 = fold_bn(params["g2"], params["b2"], params["m2"], params["v2"])
    y2 = None
    if stride == 1:
        y2_nhwc = conv3x3_s1_bn_relu(y1, params["w2"], s2, b2)
        if y2_nhwc is not None:
            ho, wo = h, w
            y2 = y2_nhwc.reshape(n * ho * wo, planes)
    if y2 is None:
        # TODO(synk): strided 3x3 still materializes im2col patches.
        patches, ho, wo = im2col_3x3(y1, stride)
        w2m = jnp.transpose(params["w2"], (2, 3, 1, 0)).reshape(9 * planes, planes)
        y2 = matmul_bn_act(patches, w2m, s2, b2, relu=True)

    # shortcut branch
    if stride != 1 or cin != cout:
        xs = x[:, ::stride, ::stride, :].reshape(n * ho * wo, cin)
        ws = jnp.transpose(params["ws"], (2, 3, 1, 0)).reshape(cin, cout)
        ss, bs = fold_bn(params["gs"], params["bs"], params["ms"], params["vs"])
        shortcut = matmul_bn_act(xs, ws, ss, bs, relu=False)      # bf16
    else:
        shortcut = x.reshape(n * ho * wo, cout)                   # identity, f32

    # conv3 (1x1) + bn3 + residual + relu; f32 straight from the kernel epilogue
    w3 = jnp.transpose(params["w3"], (2, 3, 1, 0)).reshape(planes, cout)
    s3, b3 = fold_bn(params["g3"], params["b3"], params["m3"], params["v3"])
    y3 = matmul_bn_act(y2, w3, s3, b3, residual=shortcut, relu=True,
                       out_dtype=jnp.float32)

    return jnp.transpose(y3.reshape(n, ho, wo, cout), (0, 3, 1, 2))


# ----------------------------------------------------------------------------
# Pure-JAX reference (lax.conv, f32) for correctness checking
# ----------------------------------------------------------------------------
def ref_forward(x_nchw, params, stride):
    x = jnp.transpose(x_nchw, (0, 2, 3, 1))

    def conv(x, w_oihw, s=1, pad=0):
        w = jnp.transpose(w_oihw, (2, 3, 1, 0))       # HWIO
        return jax.lax.conv_general_dilated(
            x, w, (s, s), [(pad, pad), (pad, pad)],
            dimension_numbers=("NHWC", "HWIO", "NHWC"))

    def bn(x, g, b, m, v, eps=1e-5):
        return (x - m) / jnp.sqrt(v + eps) * g + b

    y = jax.nn.relu(bn(conv(x, params["w1"]),
                       params["g1"], params["b1"], params["m1"], params["v1"]))
    y = jax.nn.relu(bn(conv(y, params["w2"], stride, 1),
                       params["g2"], params["b2"], params["m2"], params["v2"]))
    y = bn(conv(y, params["w3"]),
           params["g3"], params["b3"], params["m3"], params["v3"])
    cin, cout = x.shape[-1], y.shape[-1]
    if stride != 1 or cin != cout:
        sc = bn(conv(x, params["ws"], stride),
                params["gs"], params["bs"], params["ms"], params["vs"])
    else:
        sc = x
    return jnp.transpose(jax.nn.relu(y + sc), (0, 3, 1, 2))


# ----------------------------------------------------------------------------
# Deterministic parameter construction (same shapes as the nn.Module __init__)
# ----------------------------------------------------------------------------
def make_params(key, in_planes, planes, stride):
    cout = 4 * planes
    keys = jax.random.split(key, 16)

    def bn_params(k, c):
        k1, k2, k3, k4 = jax.random.split(k, 4)
        return (1.0 + 0.1 * jax.random.normal(k1, (c,)),           # gamma
                0.1 * jax.random.normal(k2, (c,)),                  # beta
                0.1 * jax.random.normal(k3, (c,)),                  # running_mean
                1.0 + 0.1 * jnp.abs(jax.random.normal(k4, (c,))))   # running_var

    p = {}
    p["w1"] = 0.1 * jax.random.normal(keys[0], (planes, in_planes, 1, 1))
    p["g1"], p["b1"], p["m1"], p["v1"] = bn_params(keys[1], planes)
    p["w2"] = 0.1 * jax.random.normal(keys[2], (planes, planes, 3, 3))
    p["g2"], p["b2"], p["m2"], p["v2"] = bn_params(keys[3], planes)
    p["w3"] = 0.1 * jax.random.normal(keys[4], (cout, planes, 1, 1))
    p["g3"], p["b3"], p["m3"], p["v3"] = bn_params(keys[5], cout)
    if stride != 1 or in_planes != cout:
        p["ws"] = 0.1 * jax.random.normal(keys[6], (cout, in_planes, 1, 1))
        p["gs"], p["bs"], p["ms"], p["vs"] = bn_params(keys[7], cout)
    return jax.tree.map(lambda a: a.astype(jnp.float32), p)


if __name__ == "__main__":
    key = jax.random.PRNGKey(0)
    cases = [
        # (in_planes, planes, stride, batch, hw)
        (4, 4, 1, 2, 16),     # conv shortcut, stride-1 tap conv2 kernel
        (16, 4, 1, 2, 16),    # identity shortcut (f32 residual path)
        (16, 4, 2, 2, 16),    # strided block: im2col fallback + conv shortcut
    ]
    fwd = jax.jit(bottleneck_forward, static_argnums=2)
    for idx, (in_planes, planes, stride, batch, hw) in enumerate(cases):
        kx, kp, key = jax.random.split(key, 3)
        x = jax.random.normal(kx, (batch, in_planes, hw, hw), dtype=jnp.float32)
        params = make_params(kp, in_planes, planes, stride)

        out = jax.block_until_ready(fwd(x, params, stride))
        ref = jax.block_until_ready(ref_forward(x, params, stride))
        assert out.shape == ref.shape, (idx, out.shape, ref.shape)
        # bf16 MXU inputs (f32 accumulation / f32 BN) vs f32 reference.
        err = float(jnp.max(jnp.abs(out - ref)))
        assert jnp.allclose(out, ref, atol=3e-2, rtol=3e-2), (idx, err)
    print("KERNEL_OK")
</pallas_src>

<mosaic_0001>
module attributes {stable_mosaic.version = 11 : i64} {
  func.func @_matmul_bn_act_kernel(%arg0: i32, %arg1: i32, %arg2: i32, %arg3: memref<256x4xf32, #tpu.memory_space<vmem>>, %arg4: memref<4x16xbf16, #tpu.memory_space<vmem>>, %arg5: memref<1x16xf32, #tpu.memory_space<vmem>>, %arg6: memref<1x16xf32, #tpu.memory_space<vmem>>, %arg7: memref<256x16xbf16, #tpu.memory_space<vmem>>) attributes {dimension_semantics = [#tpu.dimension_semantics<parallel>, #tpu.dimension_semantics<parallel>, #tpu.dimension_semantics<arbitrary>], iteration_bounds = array<i64: 2, 1, 1>, scalar_prefetch = 0 : i64, scratch_operands = 0 : i64, tpu.core_type = #tpu.core_type<tc>, window_params = [{transform_indices = @transform_0, window_bounds = array<i64: 256, 4>}, {transform_indices = @transform_1, window_bounds = array<i64: 4, 16>}, {transform_indices = @transform_2, window_bounds = array<i64: 1, 16>}, {transform_indices = @transform_3, window_bounds = array<i64: 1, 16>}, {transform_indices = @transform_4, window_bounds = array<i64: 256, 16>}]} {
    %c0 = arith.constant 0 : index
    %c0_0 = arith.constant 0 : index
    %0 = vector.load %arg3[%c0, %c0_0] : memref<256x4xf32, #tpu.memory_space<vmem>>, vector<256x4xf32>
    %1 = arith.truncf %0 : vector<256x4xf32> to vector<256x4xbf16>
    %c0_1 = arith.constant 0 : index
    %c0_2 = arith.constant 0 : index
    %2 = vector.load %arg4[%c0_1, %c0_2] : memref<4x16xbf16, #tpu.memory_space<vmem>>, vector<4x16xbf16>
    %cst = arith.constant dense<0.000000e+00> : vector<256x16xf32>
    %3 = tpu.matmul %1, %2, %cst {dimension_numbers = #tpu.dot_dimension_numbers<[1], [0], [0], [1], [0, 0, 1, 1], [], []>} : vector<256x4xbf16>, vector<4x16xbf16>, vector<256x16xf32> -> vector<256x16xf32>
    %c0_3 = arith.constant 0 : index
    %c0_4 = arith.constant 0 : index
    %4 = vector.load %arg5[%c0_3, %c0_4] : memref<1x16xf32, #tpu.memory_space<vmem>>, vector<1x16xf32>
    %5 = vector.broadcast %4 : vector<1x16xf32> to vector<256x16xf32>
    %6 = arith.mulf %3, %5 : vector<256x16xf32>
    %c0_5 = arith.constant 0 : index
    %c0_6 = arith.constant 0 : index
    %7 = vector.load %arg6[%c0_5, %c0_6] : memref<1x16xf32, #tpu.memory_space<vmem>>, vector<1x16xf32>
    %8 = vector.broadcast %7 : vector<1x16xf32> to vector<256x16xf32>
    %9 = arith.addf %6, %8 : vector<256x16xf32>
    %10 = arith.truncf %9 : vector<256x16xf32> to vector<256x16xbf16>
    %c0_7 = arith.constant 0 : index
    %c0_8 = arith.constant 0 : index
    %11 = vector.load %arg7[%c0_7, %c0_8] : memref<256x16xbf16, #tpu.memory_space<vmem>>, vector<256x16xbf16>
    tpu.vector_store %arg7[%c0_7, %c0_8], %10 {strides = array<i32>} : memref<256x16xbf16, #tpu.memory_space<vmem>>, vector<256x16xbf16>,
    return
  }
  func.func @transform_0(%arg0: i32, %arg1: i32, %arg2: i32) -> (i32, i32) {
    %c0_i32 = arith.constant 0 : i32
    return %arg0, %arg2 : i32, i32
  }
  func.func @transform_1(%arg0: i32, %arg1: i32, %arg2: i32) -> (i32, i32) {
    %c0_i32 = arith.constant 0 : i32
    return %arg2, %arg1 : i32, i32
  }
  func.func @transform_2(%arg0: i32, %arg1: i32, %arg2: i32) -> (i32, i32) {
    %c0_i32 = arith.constant 0 : i32
    %c0_i32_0 = arith.constant 0 : i32
    return %c0_i32, %arg1 : i32, i32
  }
  func.func @transform_3(%arg0: i32, %arg1: i32, %arg2: i32) -> (i32, i32) {
    %c0_i32 = arith.constant 0 : i32
    %c0_i32_0 = arith.constant 0 : i32
    return %c0_i32, %arg1 : i32, i32
  }
  func.func @transform_4(%arg0: i32, %arg1: i32, %arg2: i32) -> (i32, i32) {
    %c0_i32 = arith.constant 0 : i32
    return %arg0, %arg1 : i32, i32
  }
}

module attributes {stable_mosaic.version = 11 : i64} {
  func.func @_matmul_bn_act_kernel(%arg0: i32, %arg1: i32, %arg2: i32, %arg3: memref<256x4xf32, #tpu.memory_space<vmem>>, %arg4: memref<4x4xbf16, #tpu.memory_space<vmem>>, %arg5: memref<1x4xf32, #tpu.memory_space<vmem>>, %arg6: memref<1x4xf32, #tpu.memory_space<vmem>>, %arg7: memref<256x4xbf16, #tpu.memory_space<vmem>>) attributes {dimension_semantics = [#tpu.dimension_semantics<parallel>, #tpu.dimension_semantics<parallel>, #tpu.dimension_semantics<arbitrary>], iteration_bounds = array<i64: 2, 1, 1>, scalar_prefetch = 0 : i64, scratch_operands = 0 : i64, tpu.core_type = #tpu.core_type<tc>, window_params = [{transform_indices = @transform_0, window_bounds = array<i64: 256, 4>}, {transform_indices = @transform_1, window_bounds = array<i64: 4, 4>}, {transform_indices = @transform_2, window_bounds = array<i64: 1, 4>}, {transform_indices = @transform_3, window_bounds = array<i64: 1, 4>}, {transform_indices = @transform_4, window_bounds = array<i64: 256, 4>}]} {
    %c0 = arith.constant 0 : index
    %c0_0 = arith.constant 0 : index
    %0 = vector.load %arg3[%c0, %c0_0] : memref<256x4xf32, #tpu.memory_space<vmem>>, vector<256x4xf32>
    %1 = arith.truncf %0 : vector<256x4xf32> to vector<256x4xbf16>
    %c0_1 = arith.constant 0 : index
    %c0_2 = arith.constant 0 : index
    %2 = vector.load %arg4[%c0_1, %c0_2] : memref<4x4xbf16, #tpu.memory_space<vmem>>, vector<4x4xbf16>
    %cst = arith.constant dense<0.000000e+00> : vector<256x4xf32>
    %3 = tpu.matmul %1, %2, %cst {dimension_numbers = #tpu.dot_dimension_numbers<[1], [0], [0], [1], [0, 0, 1, 1], [], []>} : vector<256x4xbf16>, vector<4x4xbf16>, vector<256x4xf32> -> vector<256x4xf32>
    %c0_3 = arith.constant 0 : index
    %c0_4 = arith.constant 0 : index
    %4 = vector.load %arg5[%c0_3, %c0_4] : memref<1x4xf32, #tpu.memory_space<vmem>>, vector<1x4xf32>
    %5 = vector.broadcast %4 : vector<1x4xf32> to vector<256x4xf32>
    %6 = arith.mulf %3, %5 : vector<256x4xf32>
    %c0_5 = arith.constant 0 : index
    %c0_6 = arith.constant 0 : index
    %7 = vector.load %arg6[%c0_5, %c0_6] : memref<1x4xf32, #tpu.memory_space<vmem>>, vector<1x4xf32>
    %8 = vector.broadcast %7 : vector<1x4xf32> to vector<256x4xf32>
    %9 = arith.addf %6, %8 : vector<256x4xf32>
    %cst_7 = arith.constant 0.000000e+00 : f32
    %10 = vector.broadcast %cst_7 : f32 to vector<256x4xf32>
    %11 = arith.maximumf %9, %10 : vector<256x4xf32>
    %12 = arith.truncf %11 : vector<256x4xf32> to vector<256x4xbf16>
    %c0_8 = arith.constant 0 : index
    %c0_9 = arith.constant 0 : index
    %13 = vector.load %arg7[%c0_8, %c0_9] : memref<256x4xbf16, #tpu.memory_space<vmem>>, vector<256x4xbf16>
    tpu.vector_store %arg7[%c0_8, %c0_9], %12 {strides = array<i32>} : memref<256x4xbf16, #tpu.memory_space<vmem>>, vector<256x4xbf16>,
    return
  }
  func.func @transform_0(%arg0: i32, %arg1: i32, %arg2: i32) -> (i32, i32) {
    %c0_i32 = arith.constant 0 : i32
    return %arg0, %arg2 : i32, i32
  }
  func.func @transform_1(%arg0: i32, %arg1: i32, %arg2: i32) -> (i32, i32) {
    %c0_i32 = arith.constant 0 : i32
    return %arg2, %arg1 : i32, i32
  }
  func.func @transform_2(%arg0: i32, %arg1: i32, %arg2: i32) -> (i32, i32) {
    %c0_i32 = arith.constant 0 : i32
    %c0_i32_0 = arith.constant 0 : i32
    return %c0_i32, %arg1 : i32, i32
  }
  func.func @transform_3(%arg0: i32, %arg1: i32, %arg2: i32) -> (i32, i32) {
    %c0_i32 = arith.constant 0 : i32
    %c0_i32_0 = arith.constant 0 : i32
    return %c0_i32, %arg1 : i32, i32
  }
  func.func @transform_4(%arg0: i32, %arg1: i32, %arg2: i32) -> (i32, i32) {
    %c0_i32 = arith.constant 0 : i32
    return %arg0, %arg1 : i32, i32
  }
}

module attributes {stable_mosaic.version = 11 : i64} {
  func.func @_conv3x3_s1_kernel(%arg0: i32, %arg1: i32, %arg2: memref<1x144x4xbf16, #tpu.memory_space<vmem>>, %arg3: memref<1x48x4xbf16, #tpu.memory_space<vmem>>, %arg4: memref<9x4x4xbf16, #tpu.memory_space<vmem>>, %arg5: memref<1x4xf32, #tpu.memory_space<vmem>>, %arg6: memref<1x4xf32, #tpu.memory_space<vmem>>, %arg7: memref<1x144x4xbf16, #tpu.memory_space<vmem>>, %arg8: memref<192x4xbf16, #tpu.memory_space<vmem>>, %arg9: memref<144x4xf32, #tpu.memory_space<vmem>>) attributes {dimension_semantics = [#tpu.dimension_semantics<parallel>, #tpu.dimension_semantics<parallel>], iteration_bounds = array<i64: 2, 2>, scalar_prefetch = 0 : i64, scratch_operands = 2 : i64, tpu.core_type = #tpu.core_type<tc>, window_params = [{transform_indices = @transform_0, window_bounds = array<i64: 1, 144, 4>}, {transform_indices = @transform_1, window_bounds = array<i64: 1, 48, 4>}, {pipeline_mode = #tpu.pipeline_mode<synchronous>, transform_indices = @transform_2, window_bounds = array<i64: 9, 4, 4>}, {pipeline_mode = #tpu.pipeline_mode<synchronous>, transform_indices = @transform_3, window_bounds = array<i64: 1, 4>}, {pipeline_mode = #tpu.pipeline_mode<synchronous>, transform_indices = @transform_4, window_bounds = array<i64: 1, 4>}, {transform_indices = @transform_5, window_bounds = array<i64: 1, 144, 4>}]} {
    %c0 = arith.constant 0 : index
    %c0_0 = arith.constant 0 : index
    %c0_1 = arith.constant 0 : index
    %0 = vector.load %arg2[%c0, %c0_0, %c0_1] : memref<1x144x4xbf16, #tpu.memory_space<vmem>>, vector<1x144x4xbf16>
    %1 = vector.shape_cast %0 : vector<1x144x4xbf16> to vector<144x4xbf16>
    %c0_2 = arith.constant 0 : index
    %c0_3 = arith.constant 0 : index
    %2 = vector.load %arg8[%c0_2, %c0_3] : memref<192x4xbf16, #tpu.memory_space<vmem>>, vector<144x4xbf16>
    tpu.vector_store %arg8[%c0_2, %c0_3], %1 {strides = array<i32>} : memref<192x4xbf16, #tpu.memory_space<vmem>>, vector<144x4xbf16>,
    %c0_4 = arith.constant 0 : index
    %c0_5 = arith.constant 0 : index
    %c0_6 = arith.constant 0 : index
    %3 = vector.load %arg3[%c0_4, %c0_5, %c0_6] : memref<1x48x4xbf16, #tpu.memory_space<vmem>>, vector<1x48x4xbf16>
    %4 = vector.shape_cast %3 : vector<1x48x4xbf16> to vector<48x4xbf16>
    %c144 = arith.constant 144 : index
    %c0_7 = arith.constant 0 : index
    %5 = vector.load %arg8[%c144, %c0_7] : memref<192x4xbf16, #tpu.memory_space<vmem>>, vector<48x4xbf16>
    tpu.vector_store %arg8[%c144, %c0_7], %4 {strides = array<i32>} : memref<192x4xbf16, #tpu.memory_space<vmem>>, vector<48x4xbf16>,
    %cst = arith.constant 0.000000e+00 : f32
    %6 = vector.broadcast %cst : f32 to vector<144x4xf32>
    %c0_8 = arith.constant 0 : index
    %c0_9 = arith.constant 0 : index
    %7 = vector.load %arg9[%c0_8, %c0_9] : memref<144x4xf32, #tpu.memory_space<vmem>>, vector<144x4xf32>
    tpu.vector_store %arg9[%c0_8, %c0_9], %6 {strides = array<i32>} : memref<144x4xf32, #tpu.memory_space<vmem>>, vector<144x4xf32>,
    %c0_10 = arith.constant 0 : index
    %c0_11 = arith.constant 0 : index
    %8 = vector.load %arg9[%c0_10, %c0_11] : memref<144x4xf32, #tpu.memory_space<vmem>>, vector<144x4xf32>
    %c0_12 = arith.constant 0 : index
    %c0_13 = arith.constant 0 : index
    %9 = vector.load %arg8[%c0_12, %c0_13] : memref<192x4xbf16, #tpu.memory_space<vmem>>, vector<144x4xbf16>
    %c0_14 = arith.constant 0 : index
    %c0_15 = arith.constant 0 : index
    %c0_16 = arith.constant 0 : index
    %10 = vector.load %arg4[%c0_14, %c0_15, %c0_16] : memref<9x4x4xbf16, #tpu.memory_space<vmem>>, vector<1x4x4xbf16>
    %11 = vector.shape_cast %10 : vector<1x4x4xbf16> to vector<4x4xbf16>
    %cst_17 = arith.constant dense<0.000000e+00> : vector<144x4xf32>
    %12 = tpu.matmul %9, %11, %cst_17 {dimension_numbers = #tpu.dot_dimension_numbers<[1], [0], [0], [1], [0, 0, 1, 1], [], []>} : vector<144x4xbf16>, vector<4x4xbf16>, vector<144x4xf32> -> vector<144x4xf32>
    %13 = arith.addf %8, %12 : vector<144x4xf32>
    %c0_18 = arith.constant 0 : index
    %c0_19 = arith.constant 0 : index
    %14 = vector.load %arg9[%c0_18, %c0_19] : memref<144x4xf32, #tpu.memory_space<vmem>>, vector<144x4xf32>
    tpu.vector_store %arg9[%c0_18, %c0_19], %13 {strides = array<i32>} : memref<144x4xf32, #tpu.memory_space<vmem>>, vector<144x4xf32>,
    %c0_20 = arith.constant 0 : index
    %c0_21 = arith.constant 0 : index
    %15 = vector.load %arg9[%c0_20, %c0_21] : memref<144x4xf32, #tpu.memory_space<vmem>>, vector<144x4xf32>
    %c1 = arith.constant 1 : index
    %c0_22 = arith.constant 0 : index
    %16 = vector.load %arg8[%c1, %c0_22] : memref<192x4xbf16, #tpu.memory_space<vmem>>, vector<144x4xbf16>
    %c1_23 = arith.constant 1 : index
    %c0_24 = arith.constant 0 : index
    %c0_25 = arith.constant 0 : index
    %17 = vector.load %arg4[%c1_23, %c0_24, %c0_25] : memref<9x4x4xbf16, #tpu.memory_space<vmem>>, vector<1x4x4xbf16>
    %18 = vector.shape_cast %17 : vector<1x4x4xbf16> to vector<4x4xbf16>
    %cst_26 = arith.constant dense<0.000000e+00> : vector<144x4xf32>
    %19 = tpu.matmul %16, %18, %cst_26 {dimension_numbers = #tpu.dot_dimension_numbers<[1], [0], [0], [1], [0, 0, 1, 1], [], []>} : vector<144x4xbf16>, vector<4x4xbf16>, vector<144x4xf32> -> vector<144x4xf32>
    %20 = arith.addf %15, %19 : vector<144x4xf32>
    %c0_27 = arith.constant 0 : index
    %c0_28 = arith.constant 0 : index
    %21 = vector.load %arg9[%c0_27, %c0_28] : memref<144x4xf32, #tpu.memory_space<vmem>>, vector<144x4xf32>
    tpu.vector_store %arg9[%c0_27, %c0_28], %20 {strides = array<i32>} : memref<144x4xf32, #tpu.memory_space<vmem>>, vector<144x4xf32>,
    %c0_29 = arith.constant 0 : index
    %c0_30 = arith.constant 0 : index
    %22 = vector.load %arg9[%c0_29, %c0_30] : memref<144x4xf32, #tpu.memory_space<vmem>>, vector<144x4xf32>
    %c2 = arith.constant 2 : index
    %c0_31 = arith.constant 0 : index
    %23 = vector.load %arg8[%c2, %c0_31] : memref<192x4xbf16, #tpu.memory_space<vmem>>, vector<144x4xbf16>
    %c2_32 = arith.constant 2 : index
    %c0_33 = arith.constant 0 : index
    %c0_34 = arith.constant 0 : index
    %24 = vector.load %arg4[%c2_32, %c0_33, %c0_34] : memref<9x4x4xbf16, #tpu.memory_space<vmem>>, vector<1x4x4xbf16>
    %25 = vector.shape_cast %24 : vector<1x4x4xbf16> to vector<4x4xbf16>
    %cst_35 = arith.constant dense<0.000000e+00> : vector<144x4xf32>
    %26 = tpu.matmul %23, %25, %cst_35 {dimension_numbers = #tpu.dot_dimension_numbers<[1], [0], [0], [1], [0, 0, 1, 1], [], []>} : vector<144x4xbf16>, vector<4x4xbf16>, vector<144x4xf32> -> vector<144x4xf32>
    %27 = arith.addf %22, %26 : vector<144x4xf32>
    %c0_36 = arith.constant 0 : index
    %c0_37 = arith.constant 0 : index
    %28 = vector.load %arg9[%c0_36, %c0_37] : memref<144x4xf32, #tpu.memory_space<vmem>>, vector<144x4xf32>
    tpu.vector_store %arg9[%c0_36, %c0_37], %27 {strides = array<i32>} : memref<144x4xf32, #tpu.memory_space<vmem>>, vector<144x4xf32>,
    %c0_38 = arith.constant 0 : index
    %c0_39 = arith.constant 0 : index
    %29 = vector.load %arg9[%c0_38, %c0_39] : memref<144x4xf32, #tpu.memory_space<vmem>>, vector<144x4xf32>
    %c18 = arith.constant 18 : index
    %c0_40 = arith.constant 0 : index
    %30 = vector.load %arg8[%c18, %c0_40] : memref<192x4xbf16, #tpu.memory_space<vmem>>, vector<144x4xbf16>
    %c3 = arith.constant 3 : index
    %c0_41 = arith.constant 0 : index
    %c0_42 = arith.constant 0 : index
    %31 = vector.load %arg4[%c3, %c0_41, %c0_42] : memref<9x4x4xbf16, #tpu.memory_space<vmem>>, vector<1x4x4xbf16>
    %32 = vector.shape_cast %31 : vector<1x4x4xbf16> to vector<4x4xbf16>
    %cst_43 = arith.constant dense<0.000000e+00> : vector<144x4xf32>
    %33 = tpu.matmul %30, %32, %cst_43 {dimension_numbers = #tpu.dot_dimension_numbers<[1], [0], [0], [1], [0, 0, 1, 1], [], []>} : vector<144x4xbf16>, vector<4x4xbf16>, vector<144x4xf32> -> vector<144x4xf32>
    %34 = arith.addf %29, %33 : vector<144x4xf32>
    %c0_44 = arith.constant 0 : index
    %c0_45 = arith.constant 0 : index
    %35 = vector.load %arg9[%c0_44, %c0_45] : memref<144x4xf32, #tpu.memory_space<vmem>>, vector<144x4xf32>
    tpu.vector_store %arg9[%c0_44, %c0_45], %34 {strides = array<i32>} : memref<144x4xf32, #tpu.memory_space<vmem>>, vector<144x4xf32>,
    %c0_46 = arith.constant 0 : index
    %c0_47 = arith.constant 0 : index
    %36 = vector.load %arg9[%c0_46, %c0_47] : memref<144x4xf32, #tpu.memory_space<vmem>>, vector<144x4xf32>
    %c19 = arith.constant 19 : index
    %c0_48 = arith.constant 0 : index
    %37 = vector.load %arg8[%c19, %c0_48] : memref<192x4xbf16, #tpu.memory_space<vmem>>, vector<144x4xbf16>
    %c4 = arith.constant 4 : index
    %c0_49 = arith.constant 0 : index
    %c0_50 = arith.constant 0 : index
    %38 = vector.load %arg4[%c4, %c0_49, %c0_50] : memref<9x4x4xbf16, #tpu.memory_space<vmem>>, vector<1x4x4xbf16>
    %39 = vector.shape_cast %38 : vector<1x4x4xbf16> to vector<4x4xbf16>
    %cst_51 = arith.constant dense<0.000000e+00> : vector<144x4xf32>
    %40 = tpu.matmul %37, %39, %cst_51 {dimension_numbers = #tpu.dot_dimension_numbers<[1], [0], [0], [1], [0, 0, 1, 1], [], []>} : vector<144x4xbf16>, vector<4x4xbf16>, vector<144x4xf32> -> vector<144x4xf32>
    %41 = arith.addf %36, %40 : vector<144x4xf32>
    %c0_52 = arith.constant 0 : index
    %c0_53 = arith.constant 0 : index
    %42 = vector.load %arg9[%c0_52, %c0_53] : memref<144x4xf32, #tpu.memory_space<vmem>>, vector<144x4xf32>
    tpu.vector_store %arg9[%c0_52, %c0_53], %41 {strides = array<i32>} : memref<144x4xf32, #tpu.memory_space<vmem>>, vector<144x4xf32>,
    %c0_54 = arith.constant 0 : index
    %c0_55 = arith.constant 0 : index
    %43 = vector.load %arg9[%c0_54, %c0_55] : memref<144x4xf32, #tpu.memory_space<vmem>>, vector<144x4xf32>
    %c20 = arith.constant 20 : index
    %c0_56 = arith.constant 0 : index
    %44 = vector.load %arg8[%c20, %c0_56] : memref<192x4xbf16, #tpu.memory_space<vmem>>, vector<144x4xbf16>
    %c5 = arith.constant 5 : index
    %c0_57 = arith.constant 0 : index
    %c0_58 = arith.constant 0 : index
    %45 = vector.load %arg4[%c5, %c0_57, %c0_58] : memref<9x4x4xbf16, #tpu.memory_space<vmem>>, vector<1x4x4xbf16>
    %46 = vector.shape_cast %45 : vector<1x4x4xbf16> to vector<4x4xbf16>
    %cst_59 = arith.constant dense<0.000000e+00> : vector<144x4xf32>
    %47 = tpu.matmul %44, %46, %cst_59 {dimension_numbers = #tpu.dot_dimension_numbers<[1], [0], [0], [1], [0, 0, 1, 1], [], []>} : vector<144x4xbf16>, vector<4x4xbf16>, vector<144x4xf32> -> vector<144x4xf32>
    %48 = arith.addf %43, %47 : vector<144x4xf32>
    %c0_60 = arith.constant 0 : index
    %c0_61 = arith.constant 0 : index
    %49 = vector.load %arg9[%c0_60, %c0_61] : memref<144x4xf32, #tpu.memory_space<vmem>>, vector<144x4xf32>
    tpu.vector_store %arg9[%c0_60, %c0_61], %48 {strides = array<i32>} : memref<144x4xf32, #tpu.memory_space<vmem>>, vector<144x4xf32>,
    %c0_62 = arith.constant 0 : index
    %c0_63 = arith.constant 0 : index
    %50 = vector.load %arg9[%c0_62, %c0_63] : memref<144x4xf32, #tpu.memory_space<vmem>>, vector<144x4xf32>
    %c36 = arith.constant 36 : index
    %c0_64 = arith.constant 0 : index
    %51 = vector.load %arg8[%c36, %c0_64] : memref<192x4xbf16, #tpu.memory_space<vmem>>, vector<144x4xbf16>
    %c6 = arith.constant 6 : index
    %c0_65 = arith.constant 0 : index
    %c0_66 = arith.constant 0 : index
    %52 = vector.load %arg4[%c6, %c0_65, %c0_66] : memref<9x4x4xbf16, #tpu.memory_space<vmem>>, vector<1x4x4xbf16>
    %53 = vector.shape_cast %52 : vector<1x4x4xbf16> to vector<4x4xbf16>
    %cst_67 = arith.constant dense<0.000000e+00> : vector<144x4xf32>
    %54 = tpu.matmul %51, %53, %cst_67 {dimension_numbers = #tpu.dot_dimension_numbers<[1], [0], [0], [1], [0, 0, 1, 1], [], []>} : vector<144x4xbf16>, vector<4x4xbf16>, vector<144x4xf32> -> vector<144x4xf32>
    %55 = arith.addf %50, %54 : vector<144x4xf32>
    %c0_68 = arith.constant 0 : index
    %c0_69 = arith.constant 0 : index
    %56 = vector.load %arg9[%c0_68, %c0_69] : memref<144x4xf32, #tpu.memory_space<vmem>>, vector<144x4xf32>
    tpu.vector_store %arg9[%c0_68, %c0_69], %55 {strides = array<i32>} : memref<144x4xf32, #tpu.memory_space<vmem>>, vector<144x4xf32>,
    %c0_70 = arith.constant 0 : index
    %c0_71 = arith.constant 0 : index
    %57 = vector.load %arg9[%c0_70, %c0_71] : memref<144x4xf32, #tpu.memory_space<vmem>>, vector<144x4xf32>
    %c37 = arith.constant 37 : index
    %c0_72 = arith.constant 0 : index
    %58 = vector.load %arg8[%c37, %c0_72] : memref<192x4xbf16, #tpu.memory_space<vmem>>, vector<144x4xbf16>
    %c7 = arith.constant 7 : index
    %c0_73 = arith.constant 0 : index
    %c0_74 = arith.constant 0 : index
    %59 = vector.load %arg4[%c7, %c0_73, %c0_74] : memref<9x4x4xbf16, #tpu.memory_space<vmem>>, vector<1x4x4xbf16>
    %60 = vector.shape_cast %59 : vector<1x4x4xbf16> to vector<4x4xbf16>
    %cst_75 = arith.constant dense<0.000000e+00> : vector<144x4xf32>
    %61 = tpu.matmul %58, %60, %cst_75 {dimension_numbers = #tpu.dot_dimension_numbers<[1], [0], [0], [1], [0, 0, 1, 1], [], []>} : vector<144x4xbf16>, vector<4x4xbf16>, vector<144x4xf32> -> vector<144x4xf32>
    %62 = arith.addf %57, %61 : vector<144x4xf32>
    %c0_76 = arith.constant 0 : index
    %c0_77 = arith.constant 0 : index
    %63 = vector.load %arg9[%c0_76, %c0_77] : memref<144x4xf32, #tpu.memory_space<vmem>>, vector<144x4xf32>
    tpu.vector_store %arg9[%c0_76, %c0_77], %62 {strides = array<i32>} : memref<144x4xf32, #tpu.memory_space<vmem>>, vector<144x4xf32>,
    %c0_78 = arith.constant 0 : index
    %c0_79 = arith.constant 0 : index
    %64 = vector.load %arg9[%c0_78, %c0_79] : memref<144x4xf32, #tpu.memory_space<vmem>>, vector<144x4xf32>
    %c38 = arith.constant 38 : index
    %c0_80 = arith.constant 0 : index
    %65 = vector.load %arg8[%c38, %c0_80] : memref<192x4xbf16, #tpu.memory_space<vmem>>, vector<144x4xbf16>
    %c8 = arith.constant 8 : index
    %c0_81 = arith.constant 0 : index
    %c0_82 = arith.constant 0 : index
    %66 = vector.load %arg4[%c8, %c0_81, %c0_82] : memref<9x4x4xbf16, #tpu.memory_space<vmem>>, vector<1x4x4xbf16>
    %67 = vector.shape_cast %66 : vector<1x4x4xbf16> to vector<4x4xbf16>
    %cst_83 = arith.constant dense<0.000000e+00> : vector<144x4xf32>
    %68 = tpu.matmul %65, %67, %cst_83 {dimension_numbers = #tpu.dot_dimension_numbers<[1], [0], [0], [1], [0, 0, 1, 1], [], []>} : vector<144x4xbf16>, vector<4x4xbf16>, vector<144x4xf32> -> vector<144x4xf32>
    %69 = arith.addf %64, %68 : vector<144x4xf32>
    %c0_84 = arith.constant 0 : index
    %c0_85 = arith.constant 0 : index
    %70 = vector.load %arg9[%c0_84, %c0_85] : memref<144x4xf32, #tpu.memory_space<vmem>>, vector<144x4xf32>
    tpu.vector_store %arg9[%c0_84, %c0_85], %69 {strides = array<i32>} : memref<144x4xf32, #tpu.memory_space<vmem>>, vector<144x4xf32>,
    %c0_86 = arith.constant 0 : index
    %c0_87 = arith.constant 0 : index
    %71 = vector.load %arg9[%c0_86, %c0_87] : memref<144x4xf32, #tpu.memory_space<vmem>>, vector<144x4xf32>
    %c0_88 = arith.constant 0 : index
    %c0_89 = arith.constant 0 : index
    %72 = vector.load %arg5[%c0_88, %c0_89] : memref<1x4xf32, #tpu.memory_space<vmem>>, vector<1x4xf32>
    %73 = vector.broadcast %72 : vector<1x4xf32> to vector<144x4xf32>
    %74 = arith.mulf %71, %73 : vector<144x4xf32>
    %c0_90 = arith.constant 0 : index
    %c0_91 = arith.constant 0 : index
    %75 = vector.load %arg6[%c0_90, %c0_91] : memref<1x4xf32, #tpu.memory_space<vmem>>, vector<1x4xf32>
    %76 = vector.broadcast %75 : vector<1x4xf32> to vector<144x4xf32>
    %77 = arith.addf %74, %76 : vector<144x4xf32>
    %cst_92 = arith.constant 0.000000e+00 : f32
    %78 = vector.broadcast %cst_92 : f32 to vector<144x4xf32>
    %79 = arith.maximumf %77, %78 : vector<144x4xf32>
    %80 = arith.truncf %79 : vector<144x4xf32> to vector<144x4xbf16>
    %c0_93 = arith.constant 0 : index
    %c0_94 = arith.constant 0 : index
    %c0_95 = arith.constant 0 : index
    %81 = vector.load %arg7[%c0_93, %c0_94, %c0_95] : memref<1x144x4xbf16, #tpu.memory_space<vmem>>, vector<1x144x4xbf16>
    %82 = vector.shape_cast %81 : vector<1x144x4xbf16> to vector<144x4xbf16>
    %83 = vector.shape_cast %80 : vector<144x4xbf16> to vector<1x144x4xbf16>
    tpu.vector_store %arg7[%c0_93, %c0_94, %c0_95], %83 {strides = array<i32>} : memref<1x144x4xbf16, #tpu.memory_space<vmem>>, vector<1x144x4xbf16>,
    return
  }
  func.func @transform_0(%arg0: i32, %arg1: i32) -> (i32, i32, i32) {
    %c0_i32 = arith.constant 0 : i32
    %c0_i32_0 = arith.constant 0 : i32
    return %arg0, %arg1, %c0_i32 : i32, i32, i32
  }
  func.func @transform_1(%arg0: i32, %arg1: i32) -> (i32, i32, i32) {
    %c1_i32 = arith.constant 1 : i32
    %0 = arith.addi %arg1, %c1_i32 : i32
    %c3_i32 = arith.constant 3 : i32
    %1 = arith.muli %0, %c3_i32 : i32
    %c0_i32 = arith.constant 0 : i32
    %c0_i32_0 = arith.constant 0 : i32
    return %arg0, %1, %c0_i32 : i32, i32, i32
  }
  func.func @transform_2(%arg0: i32, %arg1: i32) -> (i32, i32, i32) {
    %c0_i32 = arith.constant 0 : i32
    %c0_i32_0 = arith.constant 0 : i32
    %c0_i32_1 = arith.constant 0 : i32
    %c0_i32_2 = arith.constant 0 : i32
    return %c0_i32, %c0_i32_0, %c0_i32_1 : i32, i32, i32
  }
  func.func @transform_3(%arg0: i32, %arg1: i32) -> (i32, i32) {
    %c0_i32 = arith.constant 0 : i32
    %c0_i32_0 = arith.constant 0 : i32
    %c0_i32_1 = arith.constant 0 : i32
    return %c0_i32, %c0_i32_0 : i32, i32
  }
  func.func @transform_4(%arg0: i32, %arg1: i32) -> (i32, i32) {
    %c0_i32 = arith.constant 0 : i32
    %c0_i32_0 = arith.constant 0 : i32
    %c0_i32_1 = arith.constant 0 : i32
    return %c0_i32, %c0_i32_0 : i32, i32
  }
  func.func @transform_5(%arg0: i32, %arg1: i32) -> (i32, i32, i32) {
    %c0_i32 = arith.constant 0 : i32
    %c0_i32_0 = arith.constant 0 : i32
    return %arg0, %arg1, %c0_i32 : i32, i32, i32
  }
}

module attributes {stable_mosaic.version = 11 : i64} {
  func.func @_matmul_bn_act_kernel(%arg0: i32, %arg1: i32, %arg2: i32, %arg3: memref<256x4xbf16, #tpu.memory_space<vmem>>, %arg4: memref<4x16xbf16, #tpu.memory_space<vmem>>, %arg5: memref<1x16xf32, #tpu.memory_space<vmem>>, %arg6: memref<1x16xf32, #tpu.memory_space<vmem>>, %arg7: memref<256x16xbf16, #tpu.memory_space<vmem>>, %arg8: memref<256x16xf32, #tpu.memory_space<vmem>>) attributes {dimension_semantics = [#tpu.dimension_semantics<parallel>, #tpu.dimension_semantics<parallel>, #tpu.dimension_semantics<arbitrary>], iteration_bounds = array<i64: 2, 1, 1>, scalar_prefetch = 0 : i64, scratch_operands = 0 : i64, tpu.core_type = #tpu.core_type<tc>, window_params = [{transform_indices = @transform_0, window_bounds = array<i64: 256, 4>}, {transform_indices = @transform_1, window_bounds = array<i64: 4, 16>}, {transform_indices = @transform_2, window_bounds = array<i64: 1, 16>}, {transform_indices = @transform_3, window_bounds = array<i64: 1, 16>}, {transform_indices = @transform_4, window_bounds = array<i64: 256, 16>}, {transform_indices = @transform_5, window_bounds = array<i64: 256, 16>}]} {
    %c0 = arith.constant 0 : index
    %c0_0 = arith.constant 0 : index
    %0 = vector.load %arg3[%c0, %c0_0] : memref<256x4xbf16, #tpu.memory_space<vmem>>, vector<256x4xbf16>
    %c0_1 = arith.constant 0 : index
    %c0_2 = arith.constant 0 : index
    %1 = vector.load %arg4[%c0_1, %c0_2] : memref<4x16xbf16, #tpu.memory_space<vmem>>, vector<4x16xbf16>
    %cst = arith.constant dense<0.000000e+00> : vector<256x16xf32>
    %2 = tpu.matmul %0, %1, %cst {dimension_numbers = #tpu.dot_dimension_numbers<[1], [0], [0], [1], [0, 0, 1, 1], [], []>} : vector<256x4xbf16>, vector<4x16xbf16>, vector<256x16xf32> -> vector<256x16xf32>
    %c0_3 = arith.constant 0 : index
    %c0_4 = arith.constant 0 : index
    %3 = vector.load %arg5[%c0_3, %c0_4] : memref<1x16xf32, #tpu.memory_space<vmem>>, vector<1x16xf32>
    %4 = vector.broadcast %3 : vector<1x16xf32> to vector<256x16xf32>
    %5 = arith.mulf %2, %4 : vector<256x16xf32>
    %c0_5 = arith.constant 0 : index
    %c0_6 = arith.constant 0 : index
    %6 = vector.load %arg6[%c0_5, %c0_6] : memref<1x16xf32, #tpu.memory_space<vmem>>, vector<1x16xf32>
    %7 = vector.broadcast %6 : vector<1x16xf32> to vector<256x16xf32>
    %8 = arith.addf %5, %7 : vector<256x16xf32>
    %c0_7 = arith.constant 0 : index
    %c0_8 = arith.constant 0 : index
    %9 = vector.load %arg7[%c0_7, %c0_8] : memref<256x16xbf16, #tpu.memory_space<vmem>>, vector<256x16xbf16>
    %10 = arith.extf %9 : vector<256x16xbf16> to vector<256x16xf32>
    %11 = arith.addf %8, %10 : vector<256x16xf32>
    %cst_9 = arith.constant 0.000000e+00 : f32
    %12 = vector.broadcast %cst_9 : f32 to vector<256x16xf32>
    %13 = arith.maximumf %11, %12 : vector<256x16xf32>
    %c0_10 = arith.constant 0 : index
    %c0_11 = arith.constant 0 : index
    %14 = vector.load %arg8[%c0_10, %c0_11] : memref<256x16xf32, #tpu.memory_space<vmem>>, vector<256x16xf32>
    tpu.vector_store %arg8[%c0_10, %c0_11], %13 {strides = array<i32>} : memref<256x16xf32, #tpu.memory_space<vmem>>, vector<256x16xf32>,
    return
  }
  func.func @transform_0(%arg0: i32, %arg1: i32, %arg2: i32) -> (i32, i32) {
    %c0_i32 = arith.constant 0 : i32
    return %arg0, %arg2 : i32, i32
  }
  func.func @transform_1(%arg0: i32, %arg1: i32, %arg2: i32) -> (i32, i32) {
    %c0_i32 = arith.constant 0 : i32
    return %arg2, %arg1 : i32, i32
  }
  func.func @transform_2(%arg0: i32, %arg1: i32, %arg2: i32) -> (i32, i32) {
    %c0_i32 = arith.constant 0 : i32
    %c0_i32_0 = arith.constant 0 : i32
    return %c0_i32, %arg1 : i32, i32
  }
  func.func @transform_3(%arg0: i32, %arg1: i32, %arg2: i32) -> (i32, i32) {
    %c0_i32 = arith.constant 0 : i32
    %c0_i32_0 = arith.constant 0 : i32
    return %c0_i32, %arg1 : i32, i32
  }
  func.func @transform_4(%arg0: i32, %arg1: i32, %arg2: i32) -> (i32, i32) {
    %c0_i32 = arith.constant 0 : i32
    return %arg0, %arg1 : i32, i32
  }
  func.func @transform_5(%arg0: i32, %arg1: i32, %arg2: i32) -> (i32, i32) {
    %c0_i32 = arith.constant 0 : i32
    return %arg0, %arg1 : i32, i32
  }
}

</mosaic_0001>

<bundles_post_ra>
// kernel: bottleneck_forward.6
= control target key start
LH: loop header
LB: loop body
LE: loop exit
PB: predicated region body
PF: predicated region fallthrough
CT: control target
= control target key end

     0   :  { %s1145_s15 = smov 0   ;;  %s1147_s16 = smov 0   ;;  %s1375_s0 = inlined_call_operand.vmem [shape: f32[512,4], index: 0, kind: input, shape index: {}]   ;;  %s1376_s1 = inlined_call_operand.vmem [shape: bf16[4,16], index: 1, kind: input, shape index: {}]   ;;  %s1377_s2 = inlined_call_operand.vmem [shape: f32[1,16], index: 2, kind: input, shape index: {}]   ;;  %s1378_s3 = inlined_call_operand.vmem [shape: f32[1,16], index: 3, kind: input, shape index: {}]   ;;  %s1379_s4 = inlined_call_operand.vmem [shape: bf16[512,16], index: 4, kind: output, shape index: {}]  }
   0x1   :  { %s1149_s17 = smov 0  }
   0x2 LB: > { %s33_s18 = sadd.s32 1, %s1114_s16  ;;  %p928_p0 = scmp.ge.s32.totalorder %s1118_s17, 1  ;;  %s1118_s17 = sphi %s1149_s17, %s14_s17   ;;  %s1114_s16 = sphi %s1147_s16, %s1381_s16   ;;  %s1110_s15 = sphi %s1145_s15, %s1380_s15  }
   0x3   : > { %p35_p1 = scmp.ge.s32.totalorder %s33_s18, 2  ;;  %p219_p2 = scmp.lt.s32.totalorder %s1118_s17, 3 }
   0x5   : > { %s1383_s18 = smov (%p35_p1, %s33_s18), 0  ;;  %p220_p3 = pnand %p928_p0, %p219_p2 }
   0x6   : > { %v344_v0 = vld [vmem:[%s1376_s1] sm:$0x3] (!%p220_p3)  ;;  %vm394_vm0 = vcmask (!%p220_p3), 1041408   ;;  %s929_s21 = sshll.u32 (!%p220_p3), %s1110_s15, 5  ;;  %vm345_vm1 = vcmask (!%p220_p3), 31744   ;;  %vm765_vm2 = vcmask (!%p220_p3), 125952  }
   0x7   : > { %223 = sbr.rel (%p220_p3) target bundleno = 268 (0x10c), region = 36  ;;  %1070 = vmatprep.subr.msk.bf16.mxu0 (!%p220_p3), %vm394_vm0, %v344_v0  ;;  %1071 = vmatprep.subr.msk.bf16.mxu1 (!%p220_p3), %vm394_vm0, %v344_v0  ;;  %v396_v1 = vsel (!%p220_p3), %vm394_vm0, %v344_v0, 0  ;;  %p265_p4 = scmp.lt.s32.totalorder (!%p220_p3), %s929_s21, 63  ;;  %v1225_v50 = vld [vmem:[%s1377_s2] ss:$0 sm:$0xff] (!%p220_p3) }
   0x8   : > { %1035 = vmatpush3.bf16.msra.mxu0 (!%p220_p3), %v396_v1  ;;  %1069 = vmatpush3.bf16.msra.mxu1 (!%p220_p3), %v396_v1  ;;  %v1230_v52 = vld [vmem:[%s1378_s3] ss:$0 sm:$0xff] (!%p220_p3) }
   0xe   : > { %s1385_s21 = smov (!%p265_p4, %s929_s21), 63 }
   0xf   : > { %s930_s22 = sshll.u32 %s1385_s21, 3  ;;  %s932_s30 = sshll.u32 %s1385_s21, 2 }
  0x10   : > { %s1172_s25 = scalar_lea.vmem %s1375_s0, %s930_s22  ;;  %s1242_s7 = scalar_lea.vmem %s1379_s4, %s932_s30 }
  0x11   : > { %v296_v2 = vld [vmem:[%s1172_s25] sm:$0xff]  ;;  %v297_v3 = vld [vmem:[%s1172_s25 + $0x8] sm:$0xff]  ;;  %v298_v7 = vld [vmem:[%s1172_s25 + $0x10] sm:$0xff] }
  0x12   : > { %v312_v4 = vld [vmem:[%s1172_s25 + $0x80] sm:$0xff]  ;;  %v328_v5 = vpack.c.bf16 %v297_v3, %v296_v2  ;;  %v313_v6 = vld [vmem:[%s1172_s25 + $0x88] sm:$0xff]  ;;  %v299_v8 = vld [vmem:[%s1172_s25 + $0x18] sm:$0xff] }
  0x13   : > { %v336_v9 = vpack.c.bf16 %v313_v6, %v312_v4  ;;  %v329_v10 = vpack.c.bf16 %v299_v8, %v298_v7  ;;  %v314_v11 = vld [vmem:[%s1172_s25 + $0x90] sm:$0xff]  ;;  %v315_v12 = vld [vmem:[%s1172_s25 + $0x98] sm:$0xff]  ;;  %v300_v13 = vld [vmem:[%s1172_s25 + $0x20] sm:$0xff] }
  0x14   : > { %1036 = vmatprep.mubr.msk.bf16.mxu0 %vm345_vm1, %v328_v5  ;;  %v337_v14 = vpack.c.bf16 %v315_v12, %v314_v11  ;;  %v301_v15 = vld [vmem:[%s1172_s25 + $0x28] sm:$0xff]  ;;  %v316_v16 = vld [vmem:[%s1172_s25 + $0xa0] sm:$0xff]  ;;  %v302_v20 = vld [vmem:[%s1172_s25 + $0x30] sm:$0xff] }
  0x15   : > { %v317_v17 = vld [vmem:[%s1172_s25 + $0xa8] sm:$0xff]  ;;  %1052 = vmatprep.mubr.msk.bf16.mxu1 %vm345_vm1, %v336_v9  ;;  %1037 = vmatmul.mubr.msk.bf16.vlgmr.msra.gmra.mrb[0].mxu0 %vm345_vm1, %v329_v10  ;;  %v330_v18 = vpack.c.bf16 %v301_v15, %v300_v13  ;;  %v303_v21 = vld [vmem:[%s1172_s25 + $0x38] sm:$0xff]  ;;  %v318_v22 = vld [vmem:[%s1172_s25 + $0xb0] sm:$0xff] }
  0x16   : > { %v338_v19 = vpack.c.bf16 %v317_v17, %v316_v16  ;;  %1053 = vmatmul.mubr.msk.bf16.vlgmr.msra.gmra.mrb[0].mxu1 %vm345_vm1, %v337_v14  ;;  %v319_v23 = vld [vmem:[%s1172_s25 + $0xb8] sm:$0xff]  ;;  %v304_v24 = vld [vmem:[%s1172_s25 + $0x40] sm:$0xff]  ;;  %v305_v25 = vld [vmem:[%s1172_s25 + $0x48] sm:$0xff]  ;;  %v331_v28 = vpack.c.bf16 %v303_v21, %v302_v20 }
  0x17   : > { %1040 = vmatprep.mubr.msk.bf16.mxu0 %vm345_vm1, %v330_v18  ;;  %v320_v26 = vld [vmem:[%s1172_s25 + $0xc0] sm:$0xff]  ;;  %v321_v27 = vld [vmem:[%s1172_s25 + $0xc8] sm:$0xff]  ;;  %v339_v29 = vpack.c.bf16 %v319_v23, %v318_v22  ;;  %v332_v30 = vpack.c.bf16 %v305_v25, %v304_v24  ;;  %v306_v32 = vld [vmem:[%s1172_s25 + $0x50] sm:$0xff] }
  0x18   : > { %1056 = vmatprep.mubr.msk.bf16.mxu1 %vm345_vm1, %v338_v19  ;;  %v340_v31 = vpack.c.bf16 %v321_v27, %v320_v26  ;;  %v307_v33 = vld [vmem:[%s1172_s25 + $0x58] sm:$0xff]  ;;  %v322_v34 = vld [vmem:[%s1172_s25 + $0xd0] sm:$0xff]  ;;  %v308_v36 = vld [vmem:[%s1172_s25 + $0x60] sm:$0xff] }
  0x19   : > { %v323_v35 = vld [vmem:[%s1172_s25 + $0xd8] sm:$0xff]  ;;  %v309_v37 = vld [vmem:[%s1172_s25 + $0x68] sm:$0xff]  ;;  %v324_v38 = vld [vmem:[%s1172_s25 + $0xe0] sm:$0xff]  ;;  %v333_v40 = vpack.c.bf16 %v307_v33, %v306_v32 }
  0x1a   : > { %v325_v39 = vld [vmem:[%s1172_s25 + $0xe8] sm:$0xff]  ;;  %v341_v41 = vpack.c.bf16 %v323_v35, %v322_v34  ;;  %v334_v42 = vpack.c.bf16 %v309_v37, %v308_v36  ;;  %v310_v44 = vld [vmem:[%s1172_s25 + $0x70] sm:$0xff]  ;;  %v311_v45 = vld [vmem:[%s1172_s25 + $0x78] sm:$0xff] }
  0x1b   : > { %v342_v43 = vpack.c.bf16 %v325_v39, %v324_v38  ;;  %v326_v46 = vld [vmem:[%s1172_s25 + $0xf0] sm:$0xff]  ;;  %v327_v47 = vld [vmem:[%s1172_s25 + $0xf8] sm:$0xff]  ;;  %v335_v48 = vpack.c.bf16 %v311_v45, %v310_v44 }
  0x1c   : > { %v343_v49 = vpack.c.bf16 %v327_v47, %v326_v46 }
  0x1d   : > { %1041 = vmatmul.mubr.msk.bf16.gmra.mrb[4].mxu0 %vm345_vm1, %v331_v28 }
  0x1e   : > { %1057 = vmatmul.mubr.msk.bf16.gmra.mrb[4].mxu1 %vm345_vm1, %v339_v29  ;;  %1044 = vmatprep.mubr.msk.bf16.mxu0 %vm345_vm1, %v332_v30 }
  0x1f   : > { %1060 = vmatprep.mubr.msk.bf16.mxu1 %vm345_vm1, %v340_v31 }
  0x25   : > { %1045 = vmatmul.mubr.msk.bf16.gmra.mrb[8].mxu0 %vm345_vm1, %v333_v40 }
  0x26   : > { %1061 = vmatmul.mubr.msk.bf16.gmra.mrb[8].mxu1 %vm345_vm1, %v341_v41  ;;  %1048 = vmatprep.mubr.msk.bf16.mxu0 %vm345_vm1, %v334_v42 }
  0x27   : > { %1064 = vmatprep.mubr.msk.bf16.mxu1 %vm345_vm1, %v342_v43 }
  0x2d   : > { %1049 = vmatmul.mubr.msk.bf16.gmra.mrb[12].mxu0 %vm345_vm1, %v335_v48 }
  0x2e   : > { %1065 = vmatmul.mubr.msk.bf16.gmra.mrb[12].mxu1 %vm345_vm1, %v343_v49 }
  0xe8   : > { %v1038_v51 = vpop.f32.mrb[0].mxu0 }
  0xe9   : > { %v568_v53 = vmul.f32 %v1038_v51, %v1225_v50  ;;  %v1054_v54 = vpop.f32.mrb[0].mxu1  ;;  %v432_v55 = vpop.f32.mrb[1].mxu0 }
  0xea   : > { %v584_v56 = vmul.f32 %v1054_v54, %v1225_v50  ;;  %v566_v57 = vmul.f32 %v1225_v50, %v432_v55  ;;  %v496_v58 = vpop.f32.mrb[1].mxu1  ;;  %v1039_v59 = vpop.f32.mrb[2].mxu0 }
  0xeb   : > { %v607_v60 = vadd.f32 %v1230_v52, %v568_v53  ;;  %v582_v61 = vmul.f32 %v1225_v50, %v496_v58  ;;  %v569_v62 = vmul.f32 %v1039_v59, %v1225_v50  ;;  %v1055_v63 = vpop.f32.mrb[2].mxu1  ;;  %v435_v0 = vpop.f32.mrb[3].mxu0 }
  0xec   : > { %v623_v1 = vadd.f32 %v1230_v52, %v584_v56  ;;  %v605_v2 = vadd.f32 %v1230_v52, %v566_v57  ;;  %v585_v3 = vmul.f32 %v1055_v63, %v1225_v50  ;;  %v567_v4 = vmul.f32 %v1225_v50, %v435_v0  ;;  %v499_v5 = vpop.f32.mrb[3].mxu1 }
  0xed   : > { %v987_v6 = vpack.c.bf16 %v607_v60, %v607_v60  ;;  %v621_v7 = vadd.f32 %v1230_v52, %v582_v61  ;;  %v608_v8 = vadd.f32 %v1230_v52, %v569_v62  ;;  %v583_v9 = vmul.f32 %v1225_v50, %v499_v5 }
  0xee   : > { %v1003_v10 = vpack.c.bf16 %v623_v1, %v623_v1  ;;  %v985_v11 = vpack.c.bf16 %v605_v2, %v605_v2  ;;  %v624_v12 = vadd.f32 %v1230_v52, %v585_v3  ;;  %v606_v13 = vadd.f32 %v1230_v52, %v567_v4 }
  0xef   : > { %768 = vst.msk [vmem:[%s1242_s7 + $0x8] sm:$0xf] %vm765_vm2, %v987_v6  ;;  %v1001_v14 = vpack.c.bf16 %v621_v7, %v621_v7  ;;  %v988_v15 = vpack.c.bf16 %v608_v8, %v608_v8  ;;  %v622_v16 = vadd.f32 %v1230_v52, %v583_v9 }
  0xf0   : > { %784 = vst.msk [vmem:[%s1242_s7 + $0x48] sm:$0xf] %vm765_vm2, %v1003_v10  ;;  %766 = vst.msk [vmem:[%s1242_s7] sm:$0xf] %vm765_vm2, %v985_v11  ;;  %v1004_v17 = vpack.c.bf16 %v624_v12, %v624_v12  ;;  %v986_v18 = vpack.c.bf16 %v606_v13, %v606_v13  ;;  %v1042_v19 = vpop.f32.mrb[4].mxu0 }
  0xf1   : > { %782 = vst.msk [vmem:[%s1242_s7 + $0x40] sm:$0xf] %vm765_vm2, %v1001_v14  ;;  %769 = vst.msk [vmem:[%s1242_s7 + $0xc] sm:$0xf] %vm765_vm2, %v988_v15  ;;  %v1002_v20 = vpack.c.bf16 %v622_v16, %v622_v16  ;;  %v572_v21 = vmul.f32 %v1042_v19, %v1225_v50  ;;  %v1058_v22 = vpop.f32.mrb[4].mxu1  ;;  %v448_v23 = vpop.f32.mrb[5].mxu0 }
  0xf2   : > { %785 = vst.msk [vmem:[%s1242_s7 + $0x4c] sm:$0xf] %vm765_vm2, %v1004_v17  ;;  %767 = vst.msk [vmem:[%s1242_s7 + $0x4] sm:$0xf] %vm765_vm2, %v986_v18  ;;  %v588_v24 = vmul.f32 %v1058_v22, %v1225_v50  ;;  %v570_v25 = vmul.f32 %v1225_v50, %v448_v23  ;;  %v512_v26 = vpop.f32.mrb[5].mxu1  ;;  %v1043_v27 = vpop.f32.mrb[6].mxu0 }
  0xf3   : > { %783 = vst.msk [vmem:[%s1242_s7 + $0x44] sm:$0xf] %vm765_vm2, %v1002_v20  ;;  %v611_v28 = vadd.f32 %v1230_v52, %v572_v21  ;;  %v586_v29 = vmul.f32 %v1225_v50, %v512_v26  ;;  %v573_v30 = vmul.f32 %v1043_v27, %v1225_v50  ;;  %v1059_v31 = vpop.f32.mrb[6].mxu1  ;;  %v451_v32 = vpop.f32.mrb[7].mxu0 }
  0xf4   : > { %v627_v33 = vadd.f32 %v1230_v52, %v588_v24  ;;  %v609_v34 = vadd.f32 %v1230_v52, %v570_v25  ;;  %v589_v35 = vmul.f32 %v1059_v31, %v1225_v50  ;;  %v571_v36 = vmul.f32 %v1225_v50, %v451_v32  ;;  %v515_v37 = vpop.f32.mrb[7].mxu1 }
  0xf5   : > { %v991_v38 = vpack.c.bf16 %v611_v28, %v611_v28  ;;  %v625_v39 = vadd.f32 %v1230_v52, %v586_v29  ;;  %v612_v40 = vadd.f32 %v1230_v52, %v573_v30  ;;  %v587_v41 = vmul.f32 %v1225_v50, %v515_v37 }
  0xf6   : > { %v1007_v42 = vpack.c.bf16 %v627_v33, %v627_v33  ;;  %v989_v43 = vpack.c.bf16 %v609_v34, %v609_v34  ;;  %v628_v44 = vadd.f32 %v1230_v52, %v589_v35  ;;  %v610_v45 = vadd.f32 %v1230_v52, %v571_v36 }
  0xf7   : > { %772 = vst.msk [vmem:[%s1242_s7 + $0x18] sm:$0xf] %vm765_vm2, %v991_v38  ;;  %v1005_v46 = vpack.c.bf16 %v625_v39, %v625_v39  ;;  %v992_v47 = vpack.c.bf16 %v612_v40, %v612_v40  ;;  %v626_v48 = vadd.f32 %v1230_v52, %v587_v41 }
  0xf8   : > { %788 = vst.msk [vmem:[%s1242_s7 + $0x58] sm:$0xf] %vm765_vm2, %v1007_v42  ;;  %770 = vst.msk [vmem:[%s1242_s7 + $0x10] sm:$0xf] %vm765_vm2, %v989_v43  ;;  %v1008_v49 = vpack.c.bf16 %v628_v44, %v628_v44  ;;  %v990_v51 = vpack.c.bf16 %v610_v45, %v610_v45  ;;  %v1046_v53 = vpop.f32.mrb[8].mxu0 }
  0xf9   : > { %786 = vst.msk [vmem:[%s1242_s7 + $0x50] sm:$0xf] %vm765_vm2, %v1005_v46  ;;  %773 = vst.msk [vmem:[%s1242_s7 + $0x1c] sm:$0xf] %vm765_vm2, %v992_v47  ;;  %v1006_v54 = vpack.c.bf16 %v626_v48, %v626_v48  ;;  %v576_v55 = vmul.f32 %v1046_v53, %v1225_v50  ;;  %v1062_v56 = vpop.f32.mrb[8].mxu1  ;;  %v464_v57 = vpop.f32.mrb[9].mxu0 }
  0xfa   : > { %789 = vst.msk [vmem:[%s1242_s7 + $0x5c] sm:$0xf] %vm765_vm2, %v1008_v49  ;;  %771 = vst.msk [vmem:[%s1242_s7 + $0x14] sm:$0xf] %vm765_vm2, %v990_v51  ;;  %v592_v58 = vmul.f32 %v1062_v56, %v1225_v50  ;;  %v574_v59 = vmul.f32 %v1225_v50, %v464_v57  ;;  %v528_v60 = vpop.f32.mrb[9].mxu1  ;;  %v1047_v61 = vpop.f32.mrb[10].mxu0 }
  0xfb   : > { %787 = vst.msk [vmem:[%s1242_s7 + $0x54] sm:$0xf] %vm765_vm2, %v1006_v54  ;;  %v615_v62 = vadd.f32 %v1230_v52, %v576_v55  ;;  %v590_v63 = vmul.f32 %v1225_v50, %v528_v60  ;;  %v577_v0 = vmul.f32 %v1047_v61, %v1225_v50  ;;  %v1063_v1 = vpop.f32.mrb[10].mxu1  ;;  %v467_v2 = vpop.f32.mrb[11].mxu0 }
  0xfc   : > { %v631_v3 = vadd.f32 %v1230_v52, %v592_v58  ;;  %v613_v4 = vadd.f32 %v1230_v52, %v574_v59  ;;  %v593_v5 = vmul.f32 %v1063_v1, %v1225_v50  ;;  %v575_v6 = vmul.f32 %v1225_v50, %v467_v2  ;;  %v531_v7 = vpop.f32.mrb[11].mxu1 }
  0xfd   : > { %v995_v8 = vpack.c.bf16 %v615_v62, %v615_v62  ;;  %v629_v9 = vadd.f32 %v1230_v52, %v590_v63  ;;  %v616_v10 = vadd.f32 %v1230_v52, %v577_v0  ;;  %v591_v11 = vmul.f32 %v1225_v50, %v531_v7 }
  0xfe   : > { %v1011_v12 = vpack.c.bf16 %v631_v3, %v631_v3  ;;  %v993_v13 = vpack.c.bf16 %v613_v4, %v613_v4  ;;  %v632_v14 = vadd.f32 %v1230_v52, %v593_v5  ;;  %v614_v15 = vadd.f32 %v1230_v52, %v575_v6 }
  0xff   : > { %776 = vst.msk [vmem:[%s1242_s7 + $0x28] sm:$0xf] %vm765_vm2, %v995_v8  ;;  %v1009_v16 = vpack.c.bf16 %v629_v9, %v629_v9  ;;  %v996_v17 = vpack.c.bf16 %v616_v10, %v616_v10  ;;  %v630_v18 = vadd.f32 %v1230_v52, %v591_v11 }
 0x100   : > { %792 = vst.msk [vmem:[%s1242_s7 + $0x68] sm:$0xf] %vm765_vm2, %v1011_v12  ;;  %774 = vst.msk [vmem:[%s1242_s7 + $0x20] sm:$0xf] %vm765_vm2, %v993_v13  ;;  %v1012_v19 = vpack.c.bf16 %v632_v14, %v632_v14  ;;  %v994_v20 = vpack.c.bf16 %v614_v15, %v614_v15  ;;  %v1050_v21 = vpop.f32.mrb[12].mxu0 }
 0x101   : > { %790 = vst.msk [vmem:[%s1242_s7 + $0x60] sm:$0xf] %vm765_vm2, %v1009_v16  ;;  %777 = vst.msk [vmem:[%s1242_s7 + $0x2c] sm:$0xf] %vm765_vm2, %v996_v17  ;;  %v1010_v22 = vpack.c.bf16 %v630_v18, %v630_v18  ;;  %v580_v23 = vmul.f32 %v1050_v21, %v1225_v50  ;;  %v1066_v24 = vpop.f32.mrb[12].mxu1  ;;  %v480_v25 = vpop.f32.mrb[13].mxu0 }
 0x102   : > { %793 = vst.msk [vmem:[%s1242_s7 + $0x6c] sm:$0xf] %vm765_vm2, %v1012_v19  ;;  %775 = vst.msk [vmem:[%s1242_s7 + $0x24] sm:$0xf] %vm765_vm2, %v994_v20  ;;  %v596_v26 = vmul.f32 %v1066_v24, %v1225_v50  ;;  %v578_v27 = vmul.f32 %v1225_v50, %v480_v25  ;;  %v544_v28 = vpop.f32.mrb[13].mxu1  ;;  %v1051_v29 = vpop.f32.mrb[14].mxu0 }
 0x103   : > { %791 = vst.msk [vmem:[%s1242_s7 + $0x64] sm:$0xf] %vm765_vm2, %v1010_v22  ;;  %v619_v30 = vadd.f32 %v1230_v52, %v580_v23  ;;  %v594_v31 = vmul.f32 %v1225_v50, %v544_v28  ;;  %v581_v32 = vmul.f32 %v1051_v29, %v1225_v50  ;;  %v1067_v33 = vpop.f32.mrb[14].mxu1  ;;  %v483_v34 = vpop.f32.mrb[15].mxu0 }
 0x104   : > { %v635_v35 = vadd.f32 %v1230_v52, %v596_v26  ;;  %v617_v36 = vadd.f32 %v1230_v52, %v578_v27  ;;  %v597_v37 = vmul.f32 %v1067_v33, %v1225_v50  ;;  %v579_v38 = vmul.f32 %v1225_v50, %v483_v34  ;;  %v547_v39 = vpop.f32.mrb[15].mxu1 }
 0x105   : > { %v999_v40 = vpack.c.bf16 %v619_v30, %v619_v30  ;;  %v633_v41 = vadd.f32 %v1230_v52, %v594_v31  ;;  %v620_v42 = vadd.f32 %v1230_v52, %v581_v32  ;;  %v595_v43 = vmul.f32 %v1225_v50, %v547_v39 }
 0x106   : > { %v1015_v44 = vpack.c.bf16 %v635_v35, %v635_v35  ;;  %v997_v45 = vpack.c.bf16 %v617_v36, %v617_v36  ;;  %v636_v46 = vadd.f32 %v1230_v52, %v597_v37  ;;  %v618_v47 = vadd.f32 %v1230_v52, %v579_v38 }
 0x107   : > { %780 = vst.msk [vmem:[%s1242_s7 + $0x38] sm:$0xf] %vm765_vm2, %v999_v40  ;;  %v1013_v48 = vpack.c.bf16 %v633_v41, %v633_v41  ;;  %v1000_v49 = vpack.c.bf16 %v620_v42, %v620_v42  ;;  %v634_v51 = vadd.f32 %v1230_v52, %v595_v43 }
 0x108   : > { %796 = vst.msk [vmem:[%s1242_s7 + $0x78] sm:$0xf] %vm765_vm2, %v1015_v44  ;;  %778 = vst.msk [vmem:[%s1242_s7 + $0x30] sm:$0xf] %vm765_vm2, %v997_v45  ;;  %v1016_v50 = vpack.c.bf16 %v636_v46, %v636_v46  ;;  %v998_v53 = vpack.c.bf16 %v618_v47, %v618_v47 }
 0x109   : > { %794 = vst.msk [vmem:[%s1242_s7 + $0x70] sm:$0xf] %vm765_vm2, %v1013_v48  ;;  %781 = vst.msk [vmem:[%s1242_s7 + $0x3c] sm:$0xf] %vm765_vm2, %v1000_v49  ;;  %v1014_v54 = vpack.c.bf16 %v634_v51, %v634_v51 }
 0x10a   : > { %797 = vst.msk [vmem:[%s1242_s7 + $0x7c] sm:$0xf] %vm765_vm2, %v1016_v50  ;;  %779 = vst.msk [vmem:[%s1242_s7 + $0x34] sm:$0xf] %vm765_vm2, %v998_v53 }
 0x10b   : > { %795 = vst.msk [vmem:[%s1242_s7 + $0x74] sm:$0xf] %vm765_vm2, %v1014_v54 }
 0x10c PF: > { %s14_s17 = sadd.s32 1, %s1118_s17   ;;  %s1380_s15 = smov %s1114_s16 }
 0x10d   : > { %p11_p5 = scmp.ge.s32.totalorder %s14_s17, 4   ;;  %s1381_s16 = smov %s1383_s18 }
 0x10f   :  { %13 = sbr.rel (!%p11_p5) target bundleno = 2 (0x2), region = 75 }

// kernel: bottleneck_forward.4
= control target key start
LH: loop header
LB: loop body
LE: loop exit
PB: predicated region body
PF: predicated region fallthrough
CT: control target
= control target key end

     0   :  { %s1177_s15 = smov 0   ;;  %s1179_s16 = smov 0   ;;  %s1407_s0 = inlined_call_operand.vmem [shape: f32[512,4], index: 0, kind: input, shape index: {}]   ;;  %s1408_s1 = inlined_call_operand.vmem [shape: bf16[4,4], index: 1, kind: input, shape index: {}]   ;;  %s1409_s2 = inlined_call_operand.vmem [shape: f32[1,4], index: 2, kind: input, shape index: {}]   ;;  %s1410_s3 = inlined_call_operand.vmem [shape: f32[1,4], index: 3, kind: input, shape index: {}]   ;;  %s1411_s4 = inlined_call_operand.vmem [shape: bf16[512,4], index: 4, kind: output, shape index: {}]  }
   0x1   :  { %s1181_s17 = smov 0  }
   0x2 LB: > { %s33_s18 = sadd.s32 1, %s1146_s16  ;;  %p960_p0 = scmp.ge.s32.totalorder %s1150_s17, 1  ;;  %s1150_s17 = sphi %s1181_s17, %s14_s17   ;;  %s1146_s16 = sphi %s1179_s16, %s1413_s16   ;;  %s1142_s15 = sphi %s1177_s15, %s1412_s15  }
   0x3   : > { %p35_p1 = scmp.ge.s32.totalorder %s33_s18, 2  ;;  %p219_p2 = scmp.lt.s32.totalorder %s1150_s17, 3 }
   0x5   : > { %s1415_s18 = smov (%p35_p1, %s33_s18), 0  ;;  %p220_p3 = pnand %p960_p0, %p219_p2 }
   0x6   : > { %v344_v0 = vld [vmem:[%s1408_s1] sm:$0x3] (!%p220_p3)  ;;  %vm394_vm0 = vcmask (!%p220_p3), 1041408   ;;  %s961_s21 = sshll.u32 (!%p220_p3), %s1142_s15, 5  ;;  %vm345_vm1 = vcmask (!%p220_p3), 31744   ;;  %vm797_vm2 = vcmask (!%p220_p3), 27648  }
   0x7   : > { %223 = sbr.rel (%p220_p3) target bundleno = 272 (0x110), region = 36  ;;  %1102 = vmatprep.subr.msk.bf16.mxu0 (!%p220_p3), %vm394_vm0, %v344_v0  ;;  %1103 = vmatprep.subr.msk.bf16.mxu1 (!%p220_p3), %vm394_vm0, %v344_v0  ;;  %v396_v1 = vsel (!%p220_p3), %vm394_vm0, %v344_v0, 0  ;;  %p265_p4 = scmp.lt.s32.totalorder (!%p220_p3), %s961_s21, 63  ;;  %v1257_v50 = vld [vmem:[%s1409_s2] ss:$0 sm:$0xff] (!%p220_p3) }
   0x8   : > { %1067 = vmatpush3.bf16.msra.mxu0 (!%p220_p3), %v396_v1  ;;  %1101 = vmatpush3.bf16.msra.mxu1 (!%p220_p3), %v396_v1  ;;  %v1262_v52 = vld [vmem:[%s1410_s3] ss:$0 sm:$0xff] (!%p220_p3) }
   0xe   : > { %s1417_s21 = smov (!%p265_p4, %s961_s21), 63 }
   0xf   : > { %s962_s22 = sshll.u32 %s1417_s21, 3  ;;  %s964_s30 = sshll.u32 %s1417_s21, 2 }
  0x10   : > { %s1204_s25 = scalar_lea.vmem %s1407_s0, %s962_s22  ;;  %s1281_s7 = scalar_lea.vmem %s1411_s4, %s964_s30 }
  0x11   : > { %v296_v2 = vld [vmem:[%s1204_s25] sm:$0xff]  ;;  %v297_v3 = vld [vmem:[%s1204_s25 + $0x8] sm:$0xff]  ;;  %v298_v7 = vld [vmem:[%s1204_s25 + $0x10] sm:$0xff] }
  0x12   : > { %v312_v4 = vld [vmem:[%s1204_s25 + $0x80] sm:$0xff]  ;;  %v328_v5 = vpack.c.bf16 %v297_v3, %v296_v2  ;;  %v313_v6 = vld [vmem:[%s1204_s25 + $0x88] sm:$0xff]  ;;  %v299_v8 = vld [vmem:[%s1204_s25 + $0x18] sm:$0xff] }
  0x13   : > { %v336_v9 = vpack.c.bf16 %v313_v6, %v312_v4  ;;  %v329_v10 = vpack.c.bf16 %v299_v8, %v298_v7  ;;  %v314_v11 = vld [vmem:[%s1204_s25 + $0x90] sm:$0xff]  ;;  %v315_v12 = vld [vmem:[%s1204_s25 + $0x98] sm:$0xff]  ;;  %v300_v13 = vld [vmem:[%s1204_s25 + $0x20] sm:$0xff] }
  0x14   : > { %1068 = vmatprep.mubr.msk.bf16.mxu0 %vm345_vm1, %v328_v5  ;;  %v337_v14 = vpack.c.bf16 %v315_v12, %v314_v11  ;;  %v301_v15 = vld [vmem:[%s1204_s25 + $0x28] sm:$0xff]  ;;  %v316_v16 = vld [vmem:[%s1204_s25 + $0xa0] sm:$0xff]  ;;  %v302_v20 = vld [vmem:[%s1204_s25 + $0x30] sm:$0xff] }
  0x15   : > { %v317_v17 = vld [vmem:[%s1204_s25 + $0xa8] sm:$0xff]  ;;  %1084 = vmatprep.mubr.msk.bf16.mxu1 %vm345_vm1, %v336_v9  ;;  %1069 = vmatmul.mubr.msk.bf16.vlgmr.msra.gmra.mrb[0].mxu0 %vm345_vm1, %v329_v10  ;;  %v330_v18 = vpack.c.bf16 %v301_v15, %v300_v13  ;;  %v303_v21 = vld [vmem:[%s1204_s25 + $0x38] sm:$0xff]  ;;  %v318_v22 = vld [vmem:[%s1204_s25 + $0xb0] sm:$0xff] }
  0x16   : > { %v338_v19 = vpack.c.bf16 %v317_v17, %v316_v16  ;;  %1085 = vmatmul.mubr.msk.bf16.vlgmr.msra.gmra.mrb[0].mxu1 %vm345_vm1, %v337_v14  ;;  %v319_v23 = vld [vmem:[%s1204_s25 + $0xb8] sm:$0xff]  ;;  %v304_v24 = vld [vmem:[%s1204_s25 + $0x40] sm:$0xff]  ;;  %v305_v25 = vld [vmem:[%s1204_s25 + $0x48] sm:$0xff]  ;;  %v331_v28 = vpack.c.bf16 %v303_v21, %v302_v20 }
  0x17   : > { %1072 = vmatprep.mubr.msk.bf16.mxu0 %vm345_vm1, %v330_v18  ;;  %v320_v26 = vld [vmem:[%s1204_s25 + $0xc0] sm:$0xff]  ;;  %v321_v27 = vld [vmem:[%s1204_s25 + $0xc8] sm:$0xff]  ;;  %v339_v29 = vpack.c.bf16 %v319_v23, %v318_v22  ;;  %v332_v30 = vpack.c.bf16 %v305_v25, %v304_v24  ;;  %v306_v32 = vld [vmem:[%s1204_s25 + $0x50] sm:$0xff] }
  0x18   : > { %1088 = vmatprep.mubr.msk.bf16.mxu1 %vm345_vm1, %v338_v19  ;;  %v340_v31 = vpack.c.bf16 %v321_v27, %v320_v26  ;;  %v307_v33 = vld [vmem:[%s1204_s25 + $0x58] sm:$0xff]  ;;  %v322_v34 = vld [vmem:[%s1204_s25 + $0xd0] sm:$0xff]  ;;  %v308_v36 = vld [vmem:[%s1204_s25 + $0x60] sm:$0xff] }
  0x19   : > { %v323_v35 = vld [vmem:[%s1204_s25 + $0xd8] sm:$0xff]  ;;  %v309_v37 = vld [vmem:[%s1204_s25 + $0x68] sm:$0xff]  ;;  %v324_v38 = vld [vmem:[%s1204_s25 + $0xe0] sm:$0xff]  ;;  %v333_v40 = vpack.c.bf16 %v307_v33, %v306_v32 }
  0x1a   : > { %v325_v39 = vld [vmem:[%s1204_s25 + $0xe8] sm:$0xff]  ;;  %v341_v41 = vpack.c.bf16 %v323_v35, %v322_v34  ;;  %v334_v42 = vpack.c.bf16 %v309_v37, %v308_v36  ;;  %v310_v44 = vld [vmem:[%s1204_s25 + $0x70] sm:$0xff]  ;;  %v311_v45 = vld [vmem:[%s1204_s25 + $0x78] sm:$0xff] }
  0x1b   : > { %v342_v43 = vpack.c.bf16 %v325_v39, %v324_v38  ;;  %v326_v46 = vld [vmem:[%s1204_s25 + $0xf0] sm:$0xff]  ;;  %v327_v47 = vld [vmem:[%s1204_s25 + $0xf8] sm:$0xff]  ;;  %v335_v48 = vpack.c.bf16 %v311_v45, %v310_v44 }
  0x1c   : > { %v343_v49 = vpack.c.bf16 %v327_v47, %v326_v46 }
  0x1d   : > { %1073 = vmatmul.mubr.msk.bf16.gmra.mrb[4].mxu0 %vm345_vm1, %v331_v28 }
  0x1e   : > { %1089 = vmatmul.mubr.msk.bf16.gmra.mrb[4].mxu1 %vm345_vm1, %v339_v29  ;;  %1076 = vmatprep.mubr.msk.bf16.mxu0 %vm345_vm1, %v332_v30 }
  0x1f   : > { %1092 = vmatprep.mubr.msk.bf16.mxu1 %vm345_vm1, %v340_v31 }
  0x25   : > { %1077 = vmatmul.mubr.msk.bf16.gmra.mrb[8].mxu0 %vm345_vm1, %v333_v40 }
  0x26   : > { %1093 = vmatmul.mubr.msk.bf16.gmra.mrb[8].mxu1 %vm345_vm1, %v341_v41  ;;  %1080 = vmatprep.mubr.msk.bf16.mxu0 %vm345_vm1, %v334_v42 }
  0x27   : > { %1096 = vmatprep.mubr.msk.bf16.mxu1 %vm345_vm1, %v342_v43 }
  0x2d   : > { %1081 = vmatmul.mubr.msk.bf16.gmra.mrb[12].mxu0 %vm345_vm1, %v335_v48 }
  0x2e   : > { %1097 = vmatmul.mubr.msk.bf16.gmra.mrb[12].mxu1 %vm345_vm1, %v343_v49 }
  0xe8   : > { %v1070_v51 = vpop.f32.mrb[0].mxu0 }
  0xe9   : > { %v568_v53 = vmul.f32 %v1070_v51, %v1257_v50  ;;  %v1086_v54 = vpop.f32.mrb[0].mxu1  ;;  %v432_v55 = vpop.f32.mrb[1].mxu0 }
  0xea   : > { %v584_v56 = vmul.f32 %v1086_v54, %v1257_v50  ;;  %v566_v57 = vmul.f32 %v1257_v50, %v432_v55  ;;  %v496_v58 = vpop.f32.mrb[1].mxu1  ;;  %v1071_v59 = vpop.f32.mrb[2].mxu0 }
  0xeb   : > { %v607_v60 = vadd.f32 %v1262_v52, %v568_v53  ;;  %v582_v61 = vmul.f32 %v1257_v50, %v496_v58  ;;  %v569_v62 = vmul.f32 %v1071_v59, %v1257_v50  ;;  %v1087_v63 = vpop.f32.mrb[2].mxu1  ;;  %v435_v0 = vpop.f32.mrb[3].mxu0 }
  0xec   : > { %v623_v1 = vadd.f32 %v1262_v52, %v584_v56  ;;  %v605_v2 = vadd.f32 %v1262_v52, %v566_v57  ;;  %v585_v3 = vmul.f32 %v1087_v63, %v1257_v50  ;;  %v567_v4 = vmul.f32 %v1257_v50, %v435_v0  ;;  %v499_v5 = vpop.f32.mrb[3].mxu1 }
  0xed   : > { %v639_v6 = vmax.f32 %v607_v60, 0.0  ;;  %v621_v7 = vadd.f32 %v1262_v52, %v582_v61  ;;  %v608_v8 = vadd.f32 %v1262_v52, %v569_v62  ;;  %v583_v9 = vmul.f32 %v1257_v50, %v499_v5 }
  0xee   : > { %v655_v10 = vmax.f32 %v623_v1, 0.0  ;;  %v637_v11 = vmax.f32 %v605_v2, 0.0  ;;  %v624_v12 = vadd.f32 %v1262_v52, %v585_v3  ;;  %v606_v13 = vadd.f32 %v1262_v52, %v567_v4 }
  0xef   : > { %v1019_v14 = vpack.c.bf16 %v639_v6, %v639_v6  ;;  %v653_v15 = vmax.f32 %v621_v7, 0.0  ;;  %v640_v16 = vmax.f32 %v608_v8, 0.0  ;;  %v622_v17 = vadd.f32 %v1262_v52, %v583_v9 }
  0xf0   : > { %v1035_v18 = vpack.c.bf16 %v655_v10, %v655_v10  ;;  %v1017_v19 = vpack.c.bf16 %v637_v11, %v637_v11  ;;  %v656_v20 = vmax.f32 %v624_v12, 0.0  ;;  %v638_v21 = vmax.f32 %v606_v13, 0.0  ;;  %v1074_v22 = vpop.f32.mrb[4].mxu0 }
  0xf1   : > { %800 = vst.msk [vmem:[%s1281_s7 + $0x8] sm:$0xf] %vm797_vm2, %v1019_v14  ;;  %v1033_v23 = vpack.c.bf16 %v653_v15, %v653_v15  ;;  %v1020_v24 = vpack.c.bf16 %v640_v16, %v640_v16  ;;  %v654_v25 = vmax.f32 %v622_v17, 0.0  ;;  %v572_v26 = vmul.f32 %v1074_v22, %v1257_v50  ;;  %v1090_v27 = vpop.f32.mrb[4].mxu1  ;;  %v448_v28 = vpop.f32.mrb[5].mxu0 }
  0xf2   : > { %816 = vst.msk [vmem:[%s1281_s7 + $0x48] sm:$0xf] %vm797_vm2, %v1035_v18  ;;  %798 = vst.msk [vmem:[%s1281_s7] sm:$0xf] %vm797_vm2, %v1017_v19  ;;  %v1036_v29 = vpack.c.bf16 %v656_v20, %v656_v20  ;;  %v1018_v30 = vpack.c.bf16 %v638_v21, %v638_v21  ;;  %v588_v31 = vmul.f32 %v1090_v27, %v1257_v50  ;;  %v512_v33 = vpop.f32.mrb[5].mxu1  ;;  %v1075_v34 = vpop.f32.mrb[6].mxu0 }
  0xf3   : > { %v570_v32 = vmul.f32 %v1257_v50, %v448_v28  ;;  %814 = vst.msk [vmem:[%s1281_s7 + $0x40] sm:$0xf] %vm797_vm2, %v1033_v23  ;;  %801 = vst.msk [vmem:[%s1281_s7 + $0xc] sm:$0xf] %vm797_vm2, %v1020_v24  ;;  %v1034_v35 = vpack.c.bf16 %v654_v25, %v654_v25  ;;  %v611_v36 = vadd.f32 %v1262_v52, %v572_v26  ;;  %v1091_v39 = vpop.f32.mrb[6].mxu1  ;;  %v451_v40 = vpop.f32.mrb[7].mxu0 }
  0xf4   : > { %v586_v37 = vmul.f32 %v1257_v50, %v512_v33  ;;  %v573_v38 = vmul.f32 %v1075_v34, %v1257_v50  ;;  %817 = vst.msk [vmem:[%s1281_s7 + $0x4c] sm:$0xf] %vm797_vm2, %v1036_v29  ;;  %799 = vst.msk [vmem:[%s1281_s7 + $0x4] sm:$0xf] %vm797_vm2, %v1018_v30  ;;  %v627_v41 = vadd.f32 %v1262_v52, %v588_v31  ;;  %v515_v45 = vpop.f32.mrb[7].mxu1 }
  0xf5   : > { %v609_v42 = vadd.f32 %v1262_v52, %v570_v32  ;;  %v589_v43 = vmul.f32 %v1091_v39, %v1257_v50  ;;  %v571_v44 = vmul.f32 %v1257_v50, %v451_v40  ;;  %815 = vst.msk [vmem:[%s1281_s7 + $0x44] sm:$0xf] %vm797_vm2, %v1034_v35  ;;  %v643_v46 = vmax.f32 %v611_v36, 0.0 }
  0xf6   : > { %v625_v47 = vadd.f32 %v1262_v52, %v586_v37  ;;  %v612_v48 = vadd.f32 %v1262_v52, %v573_v38  ;;  %v587_v49 = vmul.f32 %v1257_v50, %v515_v45  ;;  %v659_v51 = vmax.f32 %v627_v41, 0.0 }
  0xf7   : > { %v641_v53 = vmax.f32 %v609_v42, 0.0  ;;  %v628_v54 = vadd.f32 %v1262_v52, %v589_v43  ;;  %v610_v55 = vadd.f32 %v1262_v52, %v571_v44  ;;  %v1023_v56 = vpack.c.bf16 %v643_v46, %v643_v46 }
  0xf8   : > { %v657_v57 = vmax.f32 %v625_v47, 0.0  ;;  %v644_v58 = vmax.f32 %v612_v48, 0.0  ;;  %v626_v59 = vadd.f32 %v1262_v52, %v587_v49  ;;  %v1039_v60 = vpack.c.bf16 %v659_v51, %v659_v51  ;;  %v1078_v0 = vpop.f32.mrb[8].mxu0 }
  0xf9   : > { %v1021_v61 = vpack.c.bf16 %v641_v53, %v641_v53  ;;  %v660_v62 = vmax.f32 %v628_v54, 0.0  ;;  %v642_v63 = vmax.f32 %v610_v55, 0.0  ;;  %804 = vst.msk [vmem:[%s1281_s7 + $0x18] sm:$0xf] %vm797_vm2, %v1023_v56  ;;  %v576_v4 = vmul.f32 %v1078_v0, %v1257_v50  ;;  %v1094_v5 = vpop.f32.mrb[8].mxu1  ;;  %v464_v6 = vpop.f32.mrb[9].mxu0 }
  0xfa   : > { %v1037_v1 = vpack.c.bf16 %v657_v57, %v657_v57  ;;  %v1024_v2 = vpack.c.bf16 %v644_v58, %v644_v58  ;;  %v658_v3 = vmax.f32 %v626_v59, 0.0  ;;  %820 = vst.msk [vmem:[%s1281_s7 + $0x58] sm:$0xf] %vm797_vm2, %v1039_v60  ;;  %v592_v9 = vmul.f32 %v1094_v5, %v1257_v50  ;;  %v528_v11 = vpop.f32.mrb[9].mxu1  ;;  %v1079_v12 = vpop.f32.mrb[10].mxu0 }
  0xfb   : > { %802 = vst.msk [vmem:[%s1281_s7 + $0x10] sm:$0xf] %vm797_vm2, %v1021_v61  ;;  %v1040_v7 = vpack.c.bf16 %v660_v62, %v660_v62  ;;  %v1022_v8 = vpack.c.bf16 %v642_v63, %v642_v63  ;;  %v574_v10 = vmul.f32 %v1257_v50, %v464_v6  ;;  %v615_v14 = vadd.f32 %v1262_v52, %v576_v4  ;;  %v1095_v17 = vpop.f32.mrb[10].mxu1  ;;  %v467_v18 = vpop.f32.mrb[11].mxu0 }
  0xfc   : > { %818 = vst.msk [vmem:[%s1281_s7 + $0x50] sm:$0xf] %vm797_vm2, %v1037_v1  ;;  %805 = vst.msk [vmem:[%s1281_s7 + $0x1c] sm:$0xf] %vm797_vm2, %v1024_v2  ;;  %v1038_v13 = vpack.c.bf16 %v658_v3, %v658_v3  ;;  %v590_v15 = vmul.f32 %v1257_v50, %v528_v11  ;;  %v577_v16 = vmul.f32 %v1079_v12, %v1257_v50  ;;  %v531_v23 = vpop.f32.mrb[11].mxu1 }
  0xfd   : > { %821 = vst.msk [vmem:[%s1281_s7 + $0x5c] sm:$0xf] %vm797_vm2, %v1040_v7  ;;  %803 = vst.msk [vmem:[%s1281_s7 + $0x14] sm:$0xf] %vm797_vm2, %v1022_v8  ;;  %v631_v19 = vadd.f32 %v1262_v52, %v592_v9  ;;  %v613_v20 = vadd.f32 %v1262_v52, %v574_v10  ;;  %v593_v21 = vmul.f32 %v1095_v17, %v1257_v50  ;;  %v647_v24 = vmax.f32 %v615_v14, 0.0 }
  0xfe   : > { %v575_v22 = vmul.f32 %v1257_v50, %v467_v18  ;;  %819 = vst.msk [vmem:[%s1281_s7 + $0x54] sm:$0xf] %vm797_vm2, %v1038_v13  ;;  %v629_v25 = vadd.f32 %v1262_v52, %v590_v15  ;;  %v616_v26 = vadd.f32 %v1262_v52, %v577_v16  ;;  %v591_v27 = vmul.f32 %v1257_v50, %v531_v23 }
  0xff   : > { %v663_v28 = vmax.f32 %v631_v19, 0.0  ;;  %v645_v29 = vmax.f32 %v613_v20, 0.0  ;;  %v632_v30 = vadd.f32 %v1262_v52, %v593_v21  ;;  %v1027_v32 = vpack.c.bf16 %v647_v24, %v647_v24 }
 0x100   : > { %v614_v31 = vadd.f32 %v1262_v52, %v575_v22  ;;  %v661_v33 = vmax.f32 %v629_v25, 0.0  ;;  %v648_v34 = vmax.f32 %v616_v26, 0.0  ;;  %v630_v35 = vadd.f32 %v1262_v52, %v591_v27  ;;  %v1082_v40 = vpop.f32.mrb[12].mxu0 }
 0x101   : > { %v1043_v36 = vpack.c.bf16 %v663_v28, %v663_v28  ;;  %v1025_v37 = vpack.c.bf16 %v645_v29, %v645_v29  ;;  %v664_v38 = vmax.f32 %v632_v30, 0.0  ;;  %808 = vst.msk [vmem:[%s1281_s7 + $0x28] sm:$0xf] %vm797_vm2, %v1027_v32  ;;  %v580_v44 = vmul.f32 %v1082_v40, %v1257_v50  ;;  %v1098_v45 = vpop.f32.mrb[12].mxu1  ;;  %v480_v46 = vpop.f32.mrb[13].mxu0 }
 0x102   : > { %v646_v39 = vmax.f32 %v614_v31, 0.0  ;;  %v1041_v41 = vpack.c.bf16 %v661_v33, %v661_v33  ;;  %v1028_v42 = vpack.c.bf16 %v648_v34, %v648_v34  ;;  %v662_v43 = vmax.f32 %v630_v35, 0.0  ;;  %v544_v53 = vpop.f32.mrb[13].mxu1  ;;  %v1083_v54 = vpop.f32.mrb[14].mxu0 }
 0x103   : > { %824 = vst.msk [vmem:[%s1281_s7 + $0x68] sm:$0xf] %vm797_vm2, %v1043_v36  ;;  %806 = vst.msk [vmem:[%s1281_s7 + $0x20] sm:$0xf] %vm797_vm2, %v1025_v37  ;;  %v1044_v47 = vpack.c.bf16 %v664_v38, %v664_v38  ;;  %v596_v49 = vmul.f32 %v1098_v45, %v1257_v50  ;;  %v578_v51 = vmul.f32 %v1257_v50, %v480_v46  ;;  %v1099_v59 = vpop.f32.mrb[14].mxu1  ;;  %v483_v60 = vpop.f32.mrb[15].mxu0 }
 0x104   : > { %v1026_v48 = vpack.c.bf16 %v646_v39, %v646_v39  ;;  %822 = vst.msk [vmem:[%s1281_s7 + $0x60] sm:$0xf] %vm797_vm2, %v1041_v41  ;;  %809 = vst.msk [vmem:[%s1281_s7 + $0x2c] sm:$0xf] %vm797_vm2, %v1028_v42  ;;  %v1042_v55 = vpack.c.bf16 %v662_v43, %v662_v43  ;;  %v619_v56 = vadd.f32 %v1262_v52, %v580_v44  ;;  %v547_v1 = vpop.f32.mrb[15].mxu1 }
 0x105   : > { %v594_v57 = vmul.f32 %v1257_v50, %v544_v53  ;;  %v581_v58 = vmul.f32 %v1083_v54, %v1257_v50  ;;  %825 = vst.msk [vmem:[%s1281_s7 + $0x6c] sm:$0xf] %vm797_vm2, %v1044_v47  ;;  %v635_v61 = vadd.f32 %v1262_v52, %v596_v49  ;;  %v617_v62 = vadd.f32 %v1262_v52, %v578_v51 }
 0x106   : > { %807 = vst.msk [vmem:[%s1281_s7 + $0x24] sm:$0xf] %vm797_vm2, %v1026_v48  ;;  %v597_v63 = vmul.f32 %v1099_v59, %v1257_v50  ;;  %v579_v0 = vmul.f32 %v1257_v50, %v483_v60  ;;  %823 = vst.msk [vmem:[%s1281_s7 + $0x64] sm:$0xf] %vm797_vm2, %v1042_v55  ;;  %v651_v2 = vmax.f32 %v619_v56, 0.0  ;;  %v595_v5 = vmul.f32 %v1257_v50, %v547_v1 }
 0x107   : > { %v633_v3 = vadd.f32 %v1262_v52, %v594_v57  ;;  %v620_v4 = vadd.f32 %v1262_v52, %v581_v58  ;;  %v667_v6 = vmax.f32 %v635_v61, 0.0  ;;  %v649_v7 = vmax.f32 %v617_v62, 0.0 }
 0x108   : > { %v636_v8 = vadd.f32 %v1262_v52, %v597_v63  ;;  %v618_v9 = vadd.f32 %v1262_v52, %v579_v0  ;;  %v1031_v10 = vpack.c.bf16 %v651_v2, %v651_v2  ;;  %v634_v13 = vadd.f32 %v1262_v52, %v595_v5 }
 0x109   : > { %v665_v11 = vmax.f32 %v633_v3, 0.0  ;;  %v652_v12 = vmax.f32 %v620_v4, 0.0  ;;  %v1047_v14 = vpack.c.bf16 %v667_v6, %v667_v6  ;;  %v1029_v15 = vpack.c.bf16 %v649_v7, %v649_v7 }
 0x10a   : > { %v668_v50 = vmax.f32 %v636_v8, 0.0  ;;  %v650_v16 = vmax.f32 %v618_v9, 0.0  ;;  %812 = vst.msk [vmem:[%s1281_s7 + $0x38] sm:$0xf] %vm797_vm2, %v1031_v10  ;;  %v666_v19 = vmax.f32 %v634_v13, 0.0 }
 0x10b   : > { %v1045_v17 = vpack.c.bf16 %v665_v11, %v665_v11  ;;  %v1032_v18 = vpack.c.bf16 %v652_v12, %v652_v12  ;;  %828 = vst.msk [vmem:[%s1281_s7 + $0x78] sm:$0xf] %vm797_vm2, %v1047_v14  ;;  %810 = vst.msk [vmem:[%s1281_s7 + $0x30] sm:$0xf] %vm797_vm2, %v1029_v15 }
 0x10c   : > { %v1048_v20 = vpack.c.bf16 %v668_v50, %v668_v50  ;;  %v1030_v21 = vpack.c.bf16 %v650_v16, %v650_v16  ;;  %v1046_v52 = vpack.c.bf16 %v666_v19, %v666_v19 }
 0x10d   : > { %826 = vst.msk [vmem:[%s1281_s7 + $0x70] sm:$0xf] %vm797_vm2, %v1045_v17  ;;  %813 = vst.msk [vmem:[%s1281_s7 + $0x3c] sm:$0xf] %vm797_vm2, %v1032_v18 }
 0x10e   : > { %829 = vst.msk [vmem:[%s1281_s7 + $0x7c] sm:$0xf] %vm797_vm2, %v1048_v20  ;;  %811 = vst.msk [vmem:[%s1281_s7 + $0x34] sm:$0xf] %vm797_vm2, %v1030_v21 }
 0x10f   : > { %827 = vst.msk [vmem:[%s1281_s7 + $0x74] sm:$0xf] %vm797_vm2, %v1046_v52 }
 0x110 PF: > { %s14_s17 = sadd.s32 1, %s1150_s17   ;;  %s1412_s15 = smov %s1146_s16 }
 0x111   : > { %p11_p5 = scmp.ge.s32.totalorder %s14_s17, 4   ;;  %s1413_s16 = smov %s1415_s18 }
 0x113   :  { %13 = sbr.rel (!%p11_p5) target bundleno = 2 (0x2), region = 75 }

// kernel: bottleneck_forward.7
= control target key start
LH: loop header
LB: loop body
LE: loop exit
PB: predicated region body
PF: predicated region fallthrough
CT: control target
= control target key end

     0   :  { %s1338_s18 = smov 0   ;;  %s1340_s19 = smov 0   ;;  %s1705_s0 = inlined_call_operand.vmem [shape: bf16[512,4], index: 0, kind: input, shape index: {}]   ;;  %s1706_s1 = inlined_call_operand.vmem [shape: bf16[4,16], index: 1, kind: input, shape index: {}]   ;;  %s1707_s2 = inlined_call_operand.vmem [shape: f32[1,16], index: 2, kind: input, shape index: {}]   ;;  %s1708_s3 = inlined_call_operand.vmem [shape: f32[1,16], index: 3, kind: input, shape index: {}]   ;;  %s1709_s4 = inlined_call_operand.vmem [shape: bf16[512,16], index: 4, kind: input, shape index: {}]   ;;  %s1710_s5 = inlined_call_operand.vmem [shape: f32[512,16], index: 5, kind: output, shape index: {}]  }
   0x1   :  { %s1342_s20 = smov 0  }
   0x2 LB: > { %s34_s21 = sadd.s32 1, %s1302_s19  ;;  %p1067_p0 = scmp.ge.s32.totalorder %s1306_s20, 1  ;;  %s1306_s20 = sphi %s1342_s20, %s15_s20   ;;  %s1302_s19 = sphi %s1340_s19, %s1714_s19   ;;  %s1298_s18 = sphi %s1338_s18, %s1713_s18  }
   0x3   : > { %p36_p1 = scmp.ge.s32.totalorder %s34_s21, 2  ;;  %p260_p2 = scmp.lt.s32.totalorder %s1306_s20, 3 }
   0x5   : > { %s1716_s21 = smov (%p36_p1, %s34_s21), 0  ;;  %p261_p3 = pnand %p1067_p0, %p260_p2 }
   0x6   : > { %v388_v0 = vld [vmem:[%s1706_s1] sm:$0x3] (!%p261_p3)  ;;  %vm518_vm0 = vcmask (!%p261_p3), 1041408   ;;  %s1068_s24 = sshll.u32 (!%p261_p3), %s1298_s18, 5  ;;  %vm469_vm1 = vcmask (!%p261_p3), 31744   ;;  %vm889_vm2 = vcmask (!%p261_p3), 130048  }
   0x7   : > { %264 = sbr.rel (%p261_p3) target bundleno = 270 (0x10e), region = 40  ;;  %1242 = vmatprep.subr.msk.bf16.mxu0 (!%p261_p3), %vm518_vm0, %v388_v0  ;;  %1243 = vmatprep.subr.msk.bf16.mxu1 (!%p261_p3), %vm518_vm0, %v388_v0  ;;  %v520_v1 = vsel (!%p261_p3), %vm518_vm0, %v388_v0, 0  ;;  %p316_p4 = scmp.lt.s32.totalorder (!%p261_p3), %s1068_s24, 63  ;;  %v1467_v46 = vld [vmem:[%s1707_s2] ss:$0 sm:$0xff] (!%p261_p3) }
   0x8   : > { %1207 = vmatpush3.bf16.msra.mxu0 (!%p261_p3), %v520_v1  ;;  %1241 = vmatpush3.bf16.msra.mxu1 (!%p261_p3), %v520_v1  ;;  %v1486_v58 = vld [vmem:[%s1708_s3] ss:$0 sm:$0xff] (!%p261_p3) }
   0xe   : > { %s1718_s24 = smov (!%p316_p4, %s1068_s24), 63 }
   0xf   : > { %s1069_s25 = sshll.u32 %s1718_s24, 2  ;;  %s1073_s11 = sshll.u32 %s1718_s24, 3 }
  0x10   : > { %s1367_s28 = scalar_lea.vmem %s1705_s0, %s1069_s25  ;;  %s1406_s6 = scalar_lea.vmem %s1709_s4, %s1069_s25 }
  0x11   : > { %v1268_v2 = vld [vmem:[%s1367_s28] sm:$0xff]   ;;  %v1270_v4 = vld [vmem:[%s1367_s28 + $0x8] sm:$0xff]   ;;  %v1272_v6 = vld [vmem:[%s1367_s28 + $0x10] sm:$0xff]   ;;  %s1517_s14 = scalar_lea.vmem %s1710_s5, %s1073_s11 }
  0x12   : > { %v1269_v3 = vld [vmem:[%s1367_s28 + $0x40] sm:$0xff]   ;;  %1208 = vmatprep.mubr.msk.bf16.mxu0 %vm469_vm1, %v1268_v2  ;;  %v1271_v5 = vld [vmem:[%s1367_s28 + $0x48] sm:$0xff]   ;;  %v1273_v7 = vld [vmem:[%s1367_s28 + $0x50] sm:$0xff]  }
  0x13   : > { %1224 = vmatprep.mubr.msk.bf16.mxu1 %vm469_vm1, %v1269_v3  ;;  %1209 = vmatmul.mubr.msk.bf16.vlgmr.msra.gmra.mrb[0].mxu0 %vm469_vm1, %v1270_v4  ;;  %v1274_v8 = vld [vmem:[%s1367_s28 + $0x18] sm:$0xff]   ;;  %v1276_v10 = vld [vmem:[%s1367_s28 + $0x20] sm:$0xff]   ;;  %v1278_v12 = vld [vmem:[%s1367_s28 + $0x28] sm:$0xff]  }
  0x14   : > { %1225 = vmatmul.mubr.msk.bf16.vlgmr.msra.gmra.mrb[0].mxu1 %vm469_vm1, %v1271_v5  ;;  %1212 = vmatprep.mubr.msk.bf16.mxu0 %vm469_vm1, %v1272_v6  ;;  %v1275_v9 = vld [vmem:[%s1367_s28 + $0x58] sm:$0xff]   ;;  %v1277_v11 = vld [vmem:[%s1367_s28 + $0x60] sm:$0xff]   ;;  %v1279_v13 = vld [vmem:[%s1367_s28 + $0x68] sm:$0xff]  }
  0x15   : > { %1228 = vmatprep.mubr.msk.bf16.mxu1 %vm469_vm1, %v1273_v7  ;;  %v1280_v14 = vld [vmem:[%s1367_s28 + $0x30] sm:$0xff]   ;;  %v1282_v16 = vld [vmem:[%s1367_s28 + $0x38] sm:$0xff]   ;;  %v1409_v18 = vld [vmem:[%s1406_s6 + $0x8] sm:$0xff]  }
  0x16   : > { %v1281_v15 = vld [vmem:[%s1367_s28 + $0x70] sm:$0xff]   ;;  %v1283_v17 = vld [vmem:[%s1367_s28 + $0x78] sm:$0xff]   ;;  %v1412_v19 = vld [vmem:[%s1406_s6 + $0x48] sm:$0xff]   ;;  %v1116_v24 = vunpack.c.l.bf16 %v1409_v18  ;;  %v1117_v30 = vunpack.c.h.bf16 %v1409_v18 }
  0x17   : > { %v1415_v20 = vld [vmem:[%s1406_s6] sm:$0xff]   ;;  %v1421_v22 = vld [vmem:[%s1406_s6 + $0x18] sm:$0xff]   ;;  %v1148_v25 = vunpack.c.l.bf16 %v1412_v19  ;;  %v1429_v26 = vld [vmem:[%s1406_s6 + $0x10] sm:$0xff]   ;;  %v1149_v31 = vunpack.c.h.bf16 %v1412_v19 }
  0x18   : > { %v1418_v21 = vld [vmem:[%s1406_s6 + $0x40] sm:$0xff]   ;;  %v1424_v23 = vld [vmem:[%s1406_s6 + $0x58] sm:$0xff]   ;;  %v1432_v27 = vld [vmem:[%s1406_s6 + $0x50] sm:$0xff]   ;;  %v1112_v28 = vunpack.c.l.bf16 %v1415_v20  ;;  %v1113_v34 = vunpack.c.h.bf16 %v1415_v20  ;;  %v1124_v36 = vunpack.c.l.bf16 %v1421_v22  ;;  %v1120_v40 = vunpack.c.l.bf16 %v1429_v26 }
  0x19   : > { %v1144_v29 = vunpack.c.l.bf16 %v1418_v21  ;;  %v1439_v32 = vld [vmem:[%s1406_s6 + $0x28] sm:$0xff]   ;;  %v1145_v35 = vunpack.c.h.bf16 %v1418_v21  ;;  %v1156_v37 = vunpack.c.l.bf16 %v1424_v23  ;;  %v1449_v38 = vld [vmem:[%s1406_s6 + $0x20] sm:$0xff]   ;;  %v1152_v41 = vunpack.c.l.bf16 %v1432_v27  ;;  %v1459_v44 = vld [vmem:[%s1406_s6 + $0x38] sm:$0xff]  }
  0x1a   : > { %v1442_v33 = vld [vmem:[%s1406_s6 + $0x68] sm:$0xff]   ;;  %v1452_v39 = vld [vmem:[%s1406_s6 + $0x60] sm:$0xff]   ;;  %v1125_v42 = vunpack.c.h.bf16 %v1421_v22  ;;  %v1157_v43 = vunpack.c.h.bf16 %v1424_v23  ;;  %v1462_v45 = vld [vmem:[%s1406_s6 + $0x78] sm:$0xff]   ;;  %v1121_v47 = vunpack.c.h.bf16 %v1429_v26  ;;  %v1153_v48 = vunpack.c.h.bf16 %v1432_v27 }
  0x1b   : > { %1213 = vmatmul.mubr.msk.bf16.gmra.mrb[4].mxu0 %vm469_vm1, %v1274_v8  ;;  %v1132_v49 = vunpack.c.l.bf16 %v1439_v32  ;;  %v1164_v50 = vunpack.c.l.bf16 %v1442_v33  ;;  %v1474_v51 = vld [vmem:[%s1406_s6 + $0x30] sm:$0xff]   ;;  %v1128_v53 = vunpack.c.l.bf16 %v1449_v38  ;;  %v1160_v54 = vunpack.c.l.bf16 %v1452_v39 }
  0x1c   : > { %1229 = vmatmul.mubr.msk.bf16.gmra.mrb[4].mxu1 %vm469_vm1, %v1275_v9  ;;  %1216 = vmatprep.mubr.msk.bf16.mxu0 %vm469_vm1, %v1276_v10  ;;  %v1477_v52 = vld [vmem:[%s1406_s6 + $0x70] sm:$0xff]   ;;  %v1133_v55 = vunpack.c.h.bf16 %v1439_v32  ;;  %v1165_v56 = vunpack.c.h.bf16 %v1442_v33  ;;  %v1129_v59 = vunpack.c.h.bf16 %v1449_v38  ;;  %v1161_v60 = vunpack.c.h.bf16 %v1452_v39 }
  0x1d   : > { %1232 = vmatprep.mubr.msk.bf16.mxu1 %vm469_vm1, %v1277_v11  ;;  %v1140_v61 = vunpack.c.l.bf16 %v1459_v44  ;;  %v1172_v62 = vunpack.c.l.bf16 %v1462_v45  ;;  %v1136_v2 = vunpack.c.l.bf16 %v1474_v51  ;;  %v1168_v3 = vunpack.c.l.bf16 %v1477_v52 }
  0x1e   : > { %v1141_v4 = vunpack.c.h.bf16 %v1459_v44 }
  0x23   : > { %1217 = vmatmul.mubr.msk.bf16.gmra.mrb[8].mxu0 %vm469_vm1, %v1278_v12 }
  0x24   : > { %1233 = vmatmul.mubr.msk.bf16.gmra.mrb[8].mxu1 %vm469_vm1, %v1279_v13  ;;  %1220 = vmatprep.mubr.msk.bf16.mxu0 %vm469_vm1, %v1280_v14 }
  0x25   : > { %1236 = vmatprep.mubr.msk.bf16.mxu1 %vm469_vm1, %v1281_v15 }
  0x2b   : > { %1221 = vmatmul.mubr.msk.bf16.gmra.mrb[12].mxu0 %vm469_vm1, %v1282_v16  ;;  %v1169_v16 = vunpack.c.h.bf16 %v1477_v52 }
  0x2c   : > { %1237 = vmatmul.mubr.msk.bf16.gmra.mrb[12].mxu1 %vm469_vm1, %v1283_v17 }
  0xe6   : > { %v1210_v57 = vpop.f32.mrb[0].mxu0 }
  0xe7   : > { %v692_v63 = vmul.f32 %v1210_v57, %v1467_v46  ;;  %v1226_v0 = vpop.f32.mrb[0].mxu1  ;;  %v556_v1 = vpop.f32.mrb[1].mxu0 }
  0xe8   : > { %v708_v5 = vmul.f32 %v1226_v0, %v1467_v46  ;;  %v690_v6 = vmul.f32 %v1467_v46, %v556_v1  ;;  %v620_v7 = vpop.f32.mrb[1].mxu1  ;;  %v1211_v8 = vpop.f32.mrb[2].mxu0 }
  0xe9   : > { %v731_v11 = vadd.f32 %v1486_v58, %v692_v63  ;;  %v706_v12 = vmul.f32 %v1467_v46, %v620_v7  ;;  %v693_v13 = vmul.f32 %v1211_v8, %v1467_v46  ;;  %v1227_v14 = vpop.f32.mrb[2].mxu1  ;;  %v559_v15 = vpop.f32.mrb[3].mxu0 }
  0xea   : > { %v747_v17 = vadd.f32 %v1486_v58, %v708_v5  ;;  %v729_v57 = vadd.f32 %v1486_v58, %v690_v6  ;;  %v709_v0 = vmul.f32 %v1227_v14, %v1467_v46  ;;  %v691_v1 = vmul.f32 %v1467_v46, %v559_v15  ;;  %v623_v10 = vpop.f32.mrb[3].mxu1 }
  0xeb   : > { %v827_v63 = vadd.f32 %v1116_v24, %v731_v11  ;;  %v745_v7 = vadd.f32 %v1486_v58, %v706_v12  ;;  %v732_v8 = vadd.f32 %v1486_v58, %v693_v13  ;;  %v707_v9 = vmul.f32 %v1467_v46, %v623_v10 }
  0xec   : > { %v843_v5 = vadd.f32 %v1148_v25, %v747_v17  ;;  %v825_v6 = vadd.f32 %v1112_v28, %v729_v57  ;;  %v748_v24 = vadd.f32 %v1486_v58, %v709_v0  ;;  %v730_v11 = vadd.f32 %v1486_v58, %v691_v1 }
  0xed   : > { %v859_v12 = vmax.f32 %v827_v63, 0.0  ;;  %v841_v10 = vadd.f32 %v1144_v29, %v745_v7  ;;  %v828_v13 = vadd.f32 %v1117_v30, %v732_v8  ;;  %v746_v14 = vadd.f32 %v1486_v58, %v707_v9 }
  0xee   : > { %v875_v15 = vmax.f32 %v843_v5, 0.0  ;;  %v857_v25 = vmax.f32 %v825_v6, 0.0  ;;  %v844_v28 = vadd.f32 %v1149_v31, %v748_v24  ;;  %v826_v17 = vadd.f32 %v1113_v34, %v730_v11  ;;  %v1214_v57 = vpop.f32.mrb[4].mxu0 }
  0xef   : > { %892 = vst.msk [vmem:[%s1517_s14 + $0x10] sm:$0xff] %vm889_vm2, %v859_v12  ;;  %v873_v29 = vmax.f32 %v841_v10, 0.0  ;;  %v860_v0 = vmax.f32 %v828_v13, 0.0  ;;  %v842_v18 = vadd.f32 %v1145_v35, %v746_v14  ;;  %v696_v30 = vmul.f32 %v1214_v57, %v1467_v46  ;;  %v1230_v9 = vpop.f32.mrb[4].mxu1  ;;  %v572_v1 = vpop.f32.mrb[5].mxu0 }
  0xf0   : > { %908 = vst.msk [vmem:[%s1517_s14 + $0x90] sm:$0xff] %vm889_vm2, %v875_v15  ;;  %890 = vst.msk [vmem:[%s1517_s14] sm:$0xff] %vm889_vm2, %v857_v25  ;;  %v876_v19 = vmax.f32 %v844_v28, 0.0  ;;  %v858_v20 = vmax.f32 %v826_v17, 0.0  ;;  %v712_v31 = vmul.f32 %v1230_v9, %v1467_v46  ;;  %v694_v34 = vmul.f32 %v1467_v46, %v572_v1  ;;  %v636_v63 = vpop.f32.mrb[5].mxu1  ;;  %v1215_v7 = vpop.f32.mrb[6].mxu0 }
  0xf1   : > { %906 = vst.msk [vmem:[%s1517_s14 + $0x80] sm:$0xff] %vm889_vm2, %v873_v29  ;;  %893 = vst.msk [vmem:[%s1517_s14 + $0x18] sm:$0xff] %vm889_vm2, %v860_v0  ;;  %v874_v21 = vmax.f32 %v842_v18, 0.0  ;;  %v735_v35 = vadd.f32 %v1486_v58, %v696_v30  ;;  %v710_v8 = vmul.f32 %v1467_v46, %v636_v63  ;;  %v697_v5 = vmul.f32 %v1215_v7, %v1467_v46  ;;  %v1231_v6 = vpop.f32.mrb[6].mxu1  ;;  %v575_v24 = vpop.f32.mrb[7].mxu0 }
  0xf2   : > { %909 = vst.msk [vmem:[%s1517_s14 + $0x98] sm:$0xff] %vm889_vm2, %v876_v19  ;;  %891 = vst.msk [vmem:[%s1517_s14 + $0x8] sm:$0xff] %vm889_vm2, %v858_v20  ;;  %v751_v11 = vadd.f32 %v1486_v58, %v712_v31  ;;  %v733_v12 = vadd.f32 %v1486_v58, %v694_v34  ;;  %v713_v10 = vmul.f32 %v1231_v6, %v1467_v46  ;;  %v639_v14 = vpop.f32.mrb[7].mxu1 }
  0xf3   : > { %v695_v13 = vmul.f32 %v1467_v46, %v575_v24  ;;  %907 = vst.msk [vmem:[%s1517_s14 + $0x88] sm:$0xff] %vm889_vm2, %v874_v21  ;;  %v831_v15 = vadd.f32 %v1124_v36, %v735_v35  ;;  %v749_v25 = vadd.f32 %v1486_v58, %v710_v8  ;;  %v736_v28 = vadd.f32 %v1486_v58, %v697_v5 }
  0xf4   : > { %v711_v17 = vmul.f32 %v1467_v46, %v639_v14  ;;  %v847_v57 = vadd.f32 %v1156_v37, %v751_v11  ;;  %v829_v29 = vadd.f32 %v1120_v40, %v733_v12  ;;  %v752_v0 = vadd.f32 %v1486_v58, %v713_v10 }
  0xf5   : > { %v734_v18 = vadd.f32 %v1486_v58, %v695_v13  ;;  %v863_v30 = vmax.f32 %v831_v15, 0.0  ;;  %v845_v36 = vadd.f32 %v1152_v41, %v749_v25  ;;  %v832_v9 = vadd.f32 %v1125_v42, %v736_v28 }
  0xf6   : > { %v750_v1 = vadd.f32 %v1486_v58, %v711_v17  ;;  %v879_v19 = vmax.f32 %v847_v57, 0.0  ;;  %v861_v37 = vmax.f32 %v829_v29, 0.0  ;;  %v848_v40 = vadd.f32 %v1157_v43, %v752_v0  ;;  %v1218_v31 = vpop.f32.mrb[8].mxu0 }
  0xf7   : > { %v830_v20 = vadd.f32 %v1121_v47, %v734_v18  ;;  %896 = vst.msk [vmem:[%s1517_s14 + $0x30] sm:$0xff] %vm889_vm2, %v863_v30  ;;  %v877_v41 = vmax.f32 %v845_v36, 0.0  ;;  %v864_v34 = vmax.f32 %v832_v9, 0.0  ;;  %v700_v42 = vmul.f32 %v1218_v31, %v1467_v46  ;;  %v1234_v63 = vpop.f32.mrb[8].mxu1  ;;  %v588_v7 = vpop.f32.mrb[9].mxu0 }
  0xf8   : > { %v846_v22 = vadd.f32 %v1153_v48, %v750_v1  ;;  %912 = vst.msk [vmem:[%s1517_s14 + $0xb0] sm:$0xff] %vm889_vm2, %v879_v19  ;;  %894 = vst.msk [vmem:[%s1517_s14 + $0x20] sm:$0xff] %vm889_vm2, %v861_v37  ;;  %v880_v23 = vmax.f32 %v848_v40, 0.0  ;;  %v716_v43 = vmul.f32 %v1234_v63, %v1467_v46  ;;  %v698_v47 = vmul.f32 %v1467_v46, %v588_v7  ;;  %v652_v21 = vpop.f32.mrb[9].mxu1  ;;  %v1219_v35 = vpop.f32.mrb[10].mxu0 }
  0xf9   : > { %v862_v26 = vmax.f32 %v830_v20, 0.0  ;;  %910 = vst.msk [vmem:[%s1517_s14 + $0xa0] sm:$0xff] %vm889_vm2, %v877_v41  ;;  %897 = vst.msk [vmem:[%s1517_s14 + $0x38] sm:$0xff] %vm889_vm2, %v864_v34  ;;  %v739_v48 = vadd.f32 %v1486_v58, %v700_v42  ;;  %v714_v8 = vmul.f32 %v1467_v46, %v652_v21  ;;  %v701_v5 = vmul.f32 %v1219_v35, %v1467_v46  ;;  %v1235_v6 = vpop.f32.mrb[10].mxu1  ;;  %v591_v24 = vpop.f32.mrb[11].mxu0 }
  0xfa   : > { %v878_v27 = vmax.f32 %v846_v22, 0.0  ;;  %913 = vst.msk [vmem:[%s1517_s14 + $0xb8] sm:$0xff] %vm889_vm2, %v880_v23  ;;  %v755_v11 = vadd.f32 %v1486_v58, %v716_v43  ;;  %v737_v12 = vadd.f32 %v1486_v58, %v698_v47  ;;  %v717_v10 = vmul.f32 %v1235_v6, %v1467_v46  ;;  %v655_v14 = vpop.f32.mrb[11].mxu1 }
  0xfb   : > { %895 = vst.msk [vmem:[%s1517_s14 + $0x28] sm:$0xff] %vm889_vm2, %v862_v26  ;;  %v699_v13 = vmul.f32 %v1467_v46, %v591_v24  ;;  %v835_v15 = vadd.f32 %v1132_v49, %v739_v48  ;;  %v753_v25 = vadd.f32 %v1486_v58, %v714_v8  ;;  %v740_v28 = vadd.f32 %v1486_v58, %v701_v5 }
  0xfc   : > { %911 = vst.msk [vmem:[%s1517_s14 + $0xa8] sm:$0xff] %vm889_vm2, %v878_v27  ;;  %v715_v17 = vmul.f32 %v1467_v46, %v655_v14  ;;  %v851_v57 = vadd.f32 %v1164_v50, %v755_v11  ;;  %v833_v29 = vadd.f32 %v1128_v53, %v737_v12  ;;  %v756_v0 = vadd.f32 %v1486_v58, %v717_v10 }
  0xfd   : > { %v738_v18 = vadd.f32 %v1486_v58, %v699_v13  ;;  %v867_v30 = vmax.f32 %v835_v15, 0.0  ;;  %v849_v49 = vadd.f32 %v1160_v54, %v753_v25  ;;  %v836_v36 = vadd.f32 %v1133_v55, %v740_v28 }
  0xfe   : > { %v754_v9 = vadd.f32 %v1486_v58, %v715_v17  ;;  %v883_v1 = vmax.f32 %v851_v57, 0.0  ;;  %v865_v50 = vmax.f32 %v833_v29, 0.0  ;;  %v852_v53 = vadd.f32 %v1165_v56, %v756_v0  ;;  %v1222_v37 = vpop.f32.mrb[12].mxu0 }
  0xff   : > { %v834_v19 = vadd.f32 %v1129_v59, %v738_v18  ;;  %900 = vst.msk [vmem:[%s1517_s14 + $0x50] sm:$0xff] %vm889_vm2, %v867_v30  ;;  %v881_v54 = vmax.f32 %v849_v49, 0.0  ;;  %v868_v40 = vmax.f32 %v836_v36, 0.0  ;;  %v704_v55 = vmul.f32 %v1222_v37, %v1467_v46  ;;  %v1238_v20 = vpop.f32.mrb[12].mxu1  ;;  %v604_v31 = vpop.f32.mrb[13].mxu0 }
 0x100   : > { %v850_v32 = vadd.f32 %v1161_v60, %v754_v9  ;;  %916 = vst.msk [vmem:[%s1517_s14 + $0xd0] sm:$0xff] %vm889_vm2, %v883_v1  ;;  %898 = vst.msk [vmem:[%s1517_s14 + $0x40] sm:$0xff] %vm889_vm2, %v865_v50  ;;  %v884_v33 = vmax.f32 %v852_v53, 0.0  ;;  %v720_v56 = vmul.f32 %v1238_v20, %v1467_v46  ;;  %v702_v59 = vmul.f32 %v1467_v46, %v604_v31  ;;  %v668_v41 = vpop.f32.mrb[13].mxu1  ;;  %v1223_v34 = vpop.f32.mrb[14].mxu0 }
 0x101   : > { %v866_v38 = vmax.f32 %v834_v19, 0.0  ;;  %914 = vst.msk [vmem:[%s1517_s14 + $0xc0] sm:$0xff] %vm889_vm2, %v881_v54  ;;  %901 = vst.msk [vmem:[%s1517_s14 + $0x58] sm:$0xff] %vm889_vm2, %v868_v40  ;;  %v743_v60 = vadd.f32 %v1486_v58, %v704_v55  ;;  %v718_v22 = vmul.f32 %v1467_v46, %v668_v41  ;;  %v705_v42 = vmul.f32 %v1223_v34, %v1467_v46  ;;  %v1239_v63 = vpop.f32.mrb[14].mxu1  ;;  %v607_v7 = vpop.f32.mrb[15].mxu0 }
 0x102   : > { %v882_v39 = vmax.f32 %v850_v32, 0.0  ;;  %917 = vst.msk [vmem:[%s1517_s14 + $0xd8] sm:$0xff] %vm889_vm2, %v884_v33  ;;  %v759_v23 = vadd.f32 %v1486_v58, %v720_v56  ;;  %v741_v26 = vadd.f32 %v1486_v58, %v702_v59  ;;  %v721_v43 = vmul.f32 %v1239_v63, %v1467_v46  ;;  %v671_v21 = vpop.f32.mrb[15].mxu1 }
 0x103   : > { %899 = vst.msk [vmem:[%s1517_s14 + $0x48] sm:$0xff] %vm889_vm2, %v866_v38  ;;  %v703_v47 = vmul.f32 %v1467_v46, %v607_v7  ;;  %v839_v35 = vadd.f32 %v1140_v61, %v743_v60  ;;  %v757_v27 = vadd.f32 %v1486_v58, %v718_v22  ;;  %v744_v48 = vadd.f32 %v1486_v58, %v705_v42 }
 0x104   : > { %915 = vst.msk [vmem:[%s1517_s14 + $0xc8] sm:$0xff] %vm889_vm2, %v882_v39  ;;  %v719_v8 = vmul.f32 %v1467_v46, %v671_v21  ;;  %v855_v5 = vadd.f32 %v1172_v62, %v759_v23  ;;  %v837_v6 = vadd.f32 %v1136_v2, %v741_v26  ;;  %v760_v24 = vadd.f32 %v1486_v58, %v721_v43 }
 0x105   : > { %v742_v11 = vadd.f32 %v1486_v58, %v703_v47  ;;  %v871_v61 = vmax.f32 %v839_v35, 0.0  ;;  %v853_v12 = vadd.f32 %v1168_v3, %v757_v27  ;;  %v840_v46 = vadd.f32 %v1141_v4, %v744_v48 }
 0x106   : > { %v758_v62 = vadd.f32 %v1486_v58, %v719_v8  ;;  %v887_v10 = vmax.f32 %v855_v5, 0.0  ;;  %v869_v2 = vmax.f32 %v837_v6, 0.0  ;;  %v1711_v13 = vunpack.c.h.bf16 %v1462_v45 }
 0x107   : > { %v1712_v15 = vunpack.c.h.bf16 %v1474_v51  ;;  %904 = vst.msk [vmem:[%s1517_s14 + $0x70] sm:$0xff] %vm889_vm2, %v871_v61  ;;  %v885_v3 = vmax.f32 %v853_v12, 0.0  ;;  %v872_v28 = vmax.f32 %v840_v46, 0.0 }
 0x108   : > { %v856_v14 = vadd.f32 %v1711_v13, %v760_v24  ;;  %v854_v44 = vadd.f32 %v1169_v16, %v758_v62  ;;  %920 = vst.msk [vmem:[%s1517_s14 + $0xf0] sm:$0xff] %vm889_vm2, %v887_v10  ;;  %902 = vst.msk [vmem:[%s1517_s14 + $0x60] sm:$0xff] %vm889_vm2, %v869_v2 }
 0x109   : > { %v838_v25 = vadd.f32 %v1712_v15, %v742_v11  ;;  %918 = vst.msk [vmem:[%s1517_s14 + $0xe0] sm:$0xff] %vm889_vm2, %v885_v3  ;;  %905 = vst.msk [vmem:[%s1517_s14 + $0x78] sm:$0xff] %vm889_vm2, %v872_v28 }
 0x10a   : > { %v888_v58 = vmax.f32 %v856_v14, 0.0  ;;  %v886_v45 = vmax.f32 %v854_v44, 0.0 }
 0x10b   : > { %v870_v4 = vmax.f32 %v838_v25, 0.0 }
 0x10c   : > { %921 = vst.msk [vmem:[%s1517_s14 + $0xf8] sm:$0xff] %vm889_vm2, %v888_v58  ;;  %919 = vst.msk [vmem:[%s1517_s14 + $0xe8] sm:$0xff] %vm889_vm2, %v886_v45 }
 0x10d   : > { %903 = vst.msk [vmem:[%s1517_s14 + $0x68] sm:$0xff] %vm889_vm2, %v870_v4 }
 0x10e PF: > { %s15_s20 = sadd.s32 1, %s1306_s20   ;;  %s1713_s18 = smov %s1302_s19 }
 0x10f   : > { %p12_p5 = scmp.ge.s32.totalorder %s15_s20, 4   ;;  %s1714_s19 = smov %s1716_s21 }
 0x111   :  { %14 = sbr.rel (!%p12_p5) target bundleno = 2 (0x2), region = 82 }

// kernel: bottleneck_forward.5
= control target key start
LH: loop header
LB: loop body
LE: loop exit
PB: predicated region body
PF: predicated region fallthrough
CT: control target
= control target key end

     0   :  { %s3693_s18 = smov 0   ;;  %s3695_s19 = smov 0   ;;  %s4662_s0 = inlined_call_operand.vmem [shape: bf16[2,342,4], index: 0, kind: input, shape index: {}, may-alias: {0,1}]   ;;  %s4663_s1 = inlined_call_operand.vmem [shape: bf16[2,342,4], index: 1, kind: input, shape index: {}, may-alias: {0,1}]   ;;  %s4664_s2 = inlined_call_operand.vmem [shape: bf16[9,4,4], index: 2, kind: input, shape index: {}]   ;;  %s4665_s3 = inlined_call_operand.vmem [shape: f32[1,4], index: 3, kind: input, shape index: {}]   ;;  %s4666_s4 = inlined_call_operand.vmem [shape: f32[1,4], index: 4, kind: input, shape index: {}]   ;;  %s4667_s5 = inlined_call_operand.vmem [shape: bf16[2,288,4], index: 5, kind: output, shape index: {}]  }
   0x1   :  { %s3697_s20 = smov 0   ;;  %s3699_s21 = smov 0  }
   0x2   :  { %s3701_s22 = smov 0  }
   0x3 LB: > { %s24_s23 = sadd.s32 1, %s3651_s20  ;;  %s27_s24 = sadd.s32 1, %s3655_s21  ;;  %s3659_s22 = sphi %s3701_s22, %s15_s22   ;;  %s3655_s21 = sphi %s3699_s21, %s4671_s21   ;;  %s3651_s20 = sphi %s3697_s20, %s4670_s20   ;;  %s3647_s19 = sphi %s3695_s19, %s4669_s19   ;;  %s3643_s18 = sphi %s3693_s18, %s4668_s18  }
   0x4   : > { %p25_p0 = scmp.ge.s32.totalorder %s24_s23, 2  ;;  %p2984_p1 = scmp.ge.s32.totalorder %s3659_s22, 1 }
   0x5   : > { %p249_p2 = scmp.lt.s32.totalorder %s3659_s22, 5 }
   0x6   : > { %s4673_s23 = smov (%p25_p0, %s24_s23), 0  ;;  %s4675_s24 = smov (!%p25_p0, %s27_s24), %s3655_s21 }
   0x7   : > { %p250_p3 = pnand %p2984_p1, %p249_p2  ;;  %p29_p4 = scmp.ge.s32.totalorder %s4675_s24, 2 }
   0x8   : > { %v509_v0 = vld [vmem:[%s4664_s2] sm:$0x3] (!%p250_p3)  ;;  %vm537_vm0 = vcmask (!%p250_p3), 1041408   ;;  %s3731_s27 = smul.u32 (!%p250_p3), 18, %s3643_s18  ;;  %v3661_v1 = vmov (!%p250_p3), 0.0   ;;  %p309_p5 = scmp.lt.s32.totalorder (!%p250_p3), %s3647_s19, 1 }
   0x9   : > { %s4677_s24 = smov (%p29_p4, %s4675_s24), 0  ;;  %253 = sbr.rel (%p250_p3) target bundleno = 588 (0x24c), region = 40 }
   0xa   : > { %3562 = vmatprep.subr.bf16.mxu1 (!%p250_p3), %v3661_v1  ;;  %3220 = vmatprep.subr.bf16.mxu0 (!%p250_p3), %v3661_v1  ;;  %v539_v2 = vsel (!%p250_p3), %vm537_vm0, %v509_v0, 0  ;;  %vm427_vm1 = vcmask (!%p250_p3), 31744   ;;  %p311_p6 = scmp.lt.s32.totalorder (!%p250_p3), %s3731_s27, 42  ;;  %vm3662_vm2 = vmmov (!%p250_p3), 0   ;;  %s322_s30 = sadd.s32 (!%p250_p3), 1, %s3643_s18  ;;  %vm1000_vm5 = vcmask (!%p250_p3), 1046528  }
   0xb   : > { %3563 = vmatpush3.bf16.msra.mxu1 (!%p250_p3), %v539_v2  ;;  %3221 = vmatpush3.bf16.msra.mxu0 (!%p250_p3), %v539_v2  ;;  %464 = vst.msk [vmem:[#allocation3] sm:$0xff] (!%p250_p3), %vm427_vm1, %v3661_v1  ;;  %465 = vst.msk [vmem:[#allocation3 + $0x8] sm:$0xff] (!%p250_p3), %vm427_vm1, %v3661_v1  ;;  %s2986_s7 = smul.u32 (!%p250_p3), 18, %s322_s30  ;;  %v3020_v6 = vld [vmem:[%s4664_s2 + $0x4] sm:$0x3] (!%p250_p3)  ;;  %vm1752_vm6 = vcmask (!%p250_p3), 1045504  }
   0xc   : > { %466 = vst.msk [vmem:[#allocation3 + $0x10] sm:$0xff] (!%p250_p3), %vm427_vm1, %v3661_v1  ;;  %467 = vst.msk [vmem:[#allocation3 + $0x18] sm:$0xff] (!%p250_p3), %vm427_vm1, %v3661_v1  ;;  %3222 = vmatprep.mubr.msk.bf16.mxu0 (!%p250_p3), %vm3662_vm2, %v3661_v1  ;;  %3242 = vmatprep.mubr.msk.bf16.mxu1 (!%p250_p3), %vm3662_vm2, %v3661_v1  ;;  %v3010_v8 = vld [vmem:[%s4664_s2 + $0x2] sm:$0x3] (!%p250_p3)  ;;  %v1048_v13 = vsel (!%p250_p3), %vm537_vm0, %v3020_v6, 0  ;;  %vm2504_vm8 = vcmask (!%p250_p3), 1044480  }
   0xd   : > { %468 = vst.msk [vmem:[#allocation3 + $0x20] sm:$0xff] (!%p250_p3), %vm427_vm1, %v3661_v1  ;;  %469 = vst.msk [vmem:[#allocation3 + $0x28] sm:$0xff] (!%p250_p3), %vm427_vm1, %v3661_v1  ;;  %3258 = vmatprep.subr.bf16.mxu1 (!%p250_p3), %v3661_v1  ;;  %3296 = vmatprep.subr.bf16.mxu0 (!%p250_p3), %v3661_v1  ;;  %p331_p7 = scmp.lt.s32.totalorder (!%p250_p3), %s2986_s7, 42  ;;  %v817_v16 = vsel (!%p250_p3), %vm537_vm0, %v3010_v8, 0  ;;  %vm1451_vm3 = vsmask.f32 (!%p250_p3), 6400 }
   0xe   : > { %470 = vst.msk [vmem:[#allocation3 + $0x30] sm:$0xff] (!%p250_p3), %vm427_vm1, %v3661_v1  ;;  %471 = vst.msk [vmem:[#allocation3 + $0x38] sm:$0xff] (!%p250_p3), %vm427_vm1, %v3661_v1  ;;  %vm712_vm4 = vsmask.f32 (!%p250_p3), 7424  ;;  %vm2203_vm7 = vsmask.f32 (!%p250_p3), 5376 }
   0xf   : > { %472 = vst.msk [vmem:[#allocation3 + $0x40] sm:$0xff] (!%p250_p3), %vm427_vm1, %v3661_v1  ;;  %473 = vst.msk [vmem:[#allocation3 + $0x48] sm:$0xff] (!%p250_p3), %vm427_vm1, %v3661_v1  ;;  %p347_p8 = scmp.lt.s32.totalorder (!%p250_p3), %s3731_s27, 35  ;;  %vm2853_vm9 = vcmask (!%p250_p3), 27648  }
  0x10   : > { %474 = vst.msk [vmem:[#allocation3 + $0x50] sm:$0xff] %vm427_vm1, %v3661_v1  ;;  %475 = vst.msk [vmem:[#allocation3 + $0x58] sm:$0xff] %vm427_vm1, %v3661_v1  ;;  %s4679_s19 = smov (!%p309_p5, %s3647_s19), 1  ;;  %s4681_s7 = smov (!%p331_p7, %s2986_s7), 42 }
  0x11   : > { %476 = vst.msk [vmem:[#allocation3 + $0x60] sm:$0xff] %vm427_vm1, %v3661_v1  ;;  %477 = vst.msk [vmem:[#allocation3 + $0x68] sm:$0xff] %vm427_vm1, %v3661_v1  ;;  %s312_s28 = scalar_select %p311_p6, %s3731_s27, 42 }
  0x12   : > { %478 = vst.msk [vmem:[#allocation3 + $0x70] sm:$0xff] %vm427_vm1, %v3661_v1  ;;  %479 = vst.msk [vmem:[#allocation3 + $0x78] sm:$0xff] %vm427_vm1, %v3661_v1  ;;  %s3564_s29 = smul.u32 43, %s4679_s19  ;;  %s4683_s27 = smov (!%p347_p8, %s3731_s27), 35 }
  0x13   : > { %480 = vst.msk [vmem:[#allocation3 + $0x80] sm:$0xff] %vm427_vm1, %v3661_v1  ;;  %481 = vst.msk [vmem:[#allocation3 + $0x88] sm:$0xff] %vm427_vm1, %v3661_v1  ;;  %s3565_s15 = smul.u32 36, %s4679_s19 }
  0x14   : > { %s314_s6 = sadd.s32 %s3564_s29, %s312_s28  ;;  %s334_s14 = sadd.s32 %s3564_s29, %s4681_s7 }
  0x15   : > { %s2985_s8 = sshll.u32 %s314_s6, 2  ;;  %s2987_s17 = sshll.u32 %s334_s14, 2 }
  0x16   : > { %s316_s11 = scalar_lea.vmem %s4662_s0, %s2985_s8  ;;  %s3810_s26 = scalar_lea.vmem %s4663_s1, %s2987_s17 }
  0x17   : > { %v3608_v3 = vld [vmem:[%s316_s11] sm:$0xff]   ;;  %v3609_v4 = vld [vmem:[%s316_s11 + $0x28] sm:$0xff]   ;;  %v3611_v7 = vld [vmem:[%s316_s11 + $0x30] sm:$0xff]   ;;  %s350_s19 = sadd.s32 %s3565_s15, %s4683_s27 }
  0x18   : > { %428 = vst.msk [vmem:[#allocation2] sm:$0xff] %vm427_vm1, %v3608_v3  ;;  %v3610_v5 = vld [vmem:[%s316_s11 + $0x8] sm:$0xff]   ;;  %433 = vst.msk [vmem:[#allocation2 + $0x28] sm:$0xff] %vm427_vm1, %v3609_v4  ;;  %v3612_v9 = vld [vmem:[%s316_s11 + $0x10] sm:$0xff]  }
  0x19   : > { %429 = vst.msk [vmem:[#allocation2 + $0x8] sm:$0xff] %vm427_vm1, %v3610_v5  ;;  %434 = vst.msk [vmem:[#allocation2 + $0x30] sm:$0xff] %vm427_vm1, %v3611_v7  ;;  %v3613_v10 = vld [vmem:[%s316_s11 + $0x38] sm:$0xff]   ;;  %v3615_v12 = vld [vmem:[%s316_s11 + $0x40] sm:$0xff]  }
  0x1a   : > { %430 = vst.msk [vmem:[#allocation2 + $0x10] sm:$0xff] %vm427_vm1, %v3612_v9  ;;  %v3614_v11 = vld [vmem:[%s316_s11 + $0x18] sm:$0xff]   ;;  %435 = vst.msk [vmem:[#allocation2 + $0x38] sm:$0xff] %vm427_vm1, %v3613_v10  ;;  %v3616_v14 = vld [vmem:[%s316_s11 + $0x20] sm:$0xff]  }
  0x1b   : > { %431 = vst.msk [vmem:[#allocation2 + $0x18] sm:$0xff] %vm427_vm1, %v3614_v11  ;;  %436 = vst.msk [vmem:[#allocation2 + $0x40] sm:$0xff] %vm427_vm1, %v3615_v12  ;;  %v3617_v18 = vld [vmem:[%s3810_s26] sm:$0xff]   ;;  %v3618_v12 = vld [vmem:[%s3810_s26 + $0x8] sm:$0xff]  }
  0x1c   : > { %432 = vst.msk [vmem:[#allocation2 + $0x20] sm:$0xff] %vm427_vm1, %v3616_v14  ;;  %461 = vst.msk [vmem:[#allocation2 + $0x48] sm:$0xff] %vm427_vm1, %v3617_v18  ;;  %v3030_v9 = vld [vmem:[%s4664_s2 + $0x6] sm:$0x3] }
  0x1d   : > { %462 = vst.msk [vmem:[#allocation2 + $0x50] sm:$0xff] %vm427_vm1, %v3618_v12 }
  0x1f   : > { %v3812_v15 = vld [vmem:[#allocation2] sm:$0xff]  ;;  %v3818_v17 = vld [vmem:[#allocation2 + $0x28] sm:$0xff] }
  0x20   : > { %3223 = vmatmul.mubr.msk.bf16.vlgmr.msra.gmra.mrb[0].mxu0 %vm427_vm1, %v3812_v15  ;;  %3243 = vmatmul.mubr.msk.bf16.vlgmr.msra.gmra.mrb[0].mxu1 %vm427_vm1, %v3818_v17  ;;  %v3831_v19 = vld [vmem:[#allocation2 + $0x8] sm:$0xff]  ;;  %v3833_v20 = vld [vmem:[#allocation2 + $0x30] sm:$0xff]  ;;  %v716_v21 = vshll.u32 %v3812_v15, 16  ;;  %v714_v25 = vshrl.u32 %v3812_v15, 16  ;;  %v753_v31 = vshll.u32 %v3818_v17, 16  ;;  %v757_v32 = vshrl.u32 %v3818_v17, 16 }
  0x21   : > { %3297 = vmatpush3.bf16.msra.mxu0 %v1048_v13  ;;  %3259 = vmatpush3.bf16.msra.mxu1 %v817_v16  ;;  %v3844_v22 = vld [vmem:[#allocation2 + $0x10] sm:$0xff]  ;;  %v3846_v23 = vld [vmem:[#allocation2 + $0x38] sm:$0xff]  ;;  %v761_v38 = vshll.u32 %v3833_v20, 16  ;;  %v765_v39 = vshrl.u32 %v3833_v20, 16  ;;  %v721_v54 = vshll.u32 %v3831_v19, 16  ;;  %v725_v15 = vshrl.u32 %v3831_v19, 16 }
  0x22   : > { %3226 = vmatprep.mubr.msk.bf16.mxu0 %vm3662_vm2, %v3661_v1  ;;  %3246 = vmatprep.mubr.msk.bf16.mxu1 %vm3662_vm2, %v3661_v1  ;;  %v3848_v24 = vld [vmem:[#allocation2 + $0x18] sm:$0xff]  ;;  %v729_v26 = vshll.u32 %v3844_v22, 16  ;;  %v733_v27 = vshrl.u32 %v3844_v22, 16  ;;  %v718_v29 = vrot.slane %v716_v21, 1  ;;  %v769_v41 = vshll.u32 %v3846_v23, 16  ;;  %v3897_v53 = vld [vmem:[#allocation2 + $0x40] sm:$0xff] }
  0x23   : > { %3334 = vmatprep.subr.bf16.mxu1 %v3661_v1  ;;  %3372 = vmatprep.subr.bf16.mxu0 %v3661_v1  ;;  %v3855_v28 = vld [vmem:[#allocation2 + $0x20] sm:$0xff]  ;;  %v741_v30 = vshrl.u32 %v3848_v24, 16  ;;  %v737_v33 = vshll.u32 %v3848_v24, 16  ;;  %v773_v42 = vshrl.u32 %v3846_v23, 16  ;;  %v1490_v46 = vrot.slane %v757_v32, 1  ;;  %v3928_v6 = vld [vmem:[#allocation2 + $0x48] sm:$0xff] }
  0x24   : > { %v749_v34 = vshrl.u32 %v3855_v28, 16  ;;  %v1463_v35 = vrot.slane %v733_v27, 1  ;;  %v1466_v36 = vrot.slane %v729_v26, 2  ;;  %v745_v37 = vshll.u32 %v3855_v28, 16  ;;  %v978_v16 = vld [vmem:[#allocation2] sm:$0xfe] }
  0x25   : > { %v1472_v40 = vrot.slane %v741_v30, 1  ;;  %v1475_v43 = vrot.slane %v737_v33, 2  ;;  %v1493_v47 = vrot.slane %v753_v31, 2  ;;  %v1499_v48 = vrot.slane %v765_v39, 1 }
  0x26   : > { %v1481_v44 = vrot.slane %v749_v34, 1  ;;  %v1484_v45 = vrot.slane %v745_v37, 2  ;;  %v3891_v49 = vor.u32 %v1466_v36, %v1463_v35  ;;  %v1502_v51 = vrot.slane %v761_v38, 2 }
  0x27   : > { %v1476_v50 = vor.u32 %v1475_v43, %v1472_v40  ;;  %v1508_v52 = vrot.slane %v773_v42, 1  ;;  %v1494_v56 = vor.u32 %v1493_v47, %v1490_v46  ;;  %v1511_v57 = vrot.slane %v769_v41, 2  ;;  %v3040_v43 = vld [vmem:[%s4664_s2 + $0x8] sm:$0x3] }
  0x28   : > { %3227 = vmatmul.mubr.msk.bf16.gmra.mrb[4].mxu0 %vm427_vm1, %v3831_v19  ;;  %3247 = vmatmul.mubr.msk.bf16.gmra.mrb[4].mxu1 %vm427_vm1, %v3833_v20  ;;  %v1485_v55 = vor.u32 %v1484_v45, %v1481_v44  ;;  %v1503_v59 = vor.u32 %v1502_v51, %v1499_v48  ;;  %v719_v63 = vor.u32 %v718_v29, %v714_v25  ;;  %v723_v2 = vrot.slane %v721_v54, 1 }
  0x29   : > { %3230 = vmatprep.mubr.msk.bf16.mxu0 %vm3662_vm2, %v3661_v1  ;;  %3250 = vmatprep.mubr.msk.bf16.mxu1 %vm3662_vm2, %v3661_v1  ;;  %v3904_v58 = vsel %vm1451_vm3, %v3891_v49, %v1476_v50  ;;  %v1512_v62 = vor.u32 %v1511_v57, %v1508_v52  ;;  %v777_v3 = vshll.u32 %v3897_v53, 16  ;;  %v781_v4 = vshrl.u32 %v3897_v53, 16 }
  0x2a   : > { %v3909_v60 = vsel %vm1451_vm3, %v1476_v50, %v1485_v55  ;;  %v3912_v61 = vsel %vm1451_vm3, %v1485_v55, %v1494_v56  ;;  %v3919_v0 = vsel %vm1451_vm3, %v1494_v56, %v1503_v59  ;;  %v3931_v7 = vrot.slane %v3897_v53, 1 }
  0x2b   : > { %v3926_v5 = vsel %vm1451_vm3, %v1503_v59, %v1512_v62  ;;  %v1246_v8 = vrot.slane %v3928_v6, 1  ;;  %v1517_v10 = vrot.slane %v781_v4, 1  ;;  %v1520_v11 = vrot.slane %v777_v3, 2 }
  0x2c   : > { %v724_v14 = vsel %vm712_vm4, %v719_v63, %v723_v2  ;;  %v1278_v21 = vsel %vm537_vm0, %v3030_v9, 0  ;;  %v1001_v29 = vrot.slane %v978_v16, 1  ;;  %v1002_v35 = vrot.slane %v3831_v19, 1 }
  0x2d   : > { %v3946_v13 = vsel %vm1000_vm5, %v3931_v7, %v1246_v8  ;;  %v3950_v18 = vor.u32 %v1520_v11, %v1517_v10  ;;  %v727_v36 = vor.u32 %v725_v15, %v723_v2  ;;  %v731_v40 = vrot.slane %v729_v26, 1 }
  0x2e   : > { %v1003_v44 = vsel %vm1000_vm5, %v1001_v29, %v1002_v35  ;;  %v1569_v19 = vsel %vm537_vm0, %v3040_v43, 0  ;;  %v3978_v46 = vrot.slane %v3844_v22, 1  ;;  %v739_v47 = vrot.slane %v737_v33, 1 }
  0x2f   : > { %v3958_v25 = vsel %vm1451_vm3, %v1512_v62, %v3950_v18  ;;  %v732_v45 = vsel %vm712_vm4, %v727_v36, %v731_v40  ;;  %v735_v26 = vor.u32 %v733_v27, %v731_v40  ;;  %v1006_v51 = vrot.slane %v3848_v24, 1 }
  0x30   : > { %3231 = vmatmul.mubr.msk.bf16.gmra.mrb[8].mxu0 %vm427_vm1, %v3844_v22  ;;  %3251 = vmatmul.mubr.msk.bf16.gmra.mrb[8].mxu1 %vm427_vm1, %v3846_v23  ;;  %v1005_v48 = vsel %vm1000_vm5, %v1002_v35, %v3978_v46  ;;  %v743_v27 = vor.u32 %v741_v30, %v739_v47  ;;  %v747_v33 = vrot.slane %v745_v37, 1  ;;  %v1754_v52 = vrot.slane %v3844_v22, 2  ;;  %v3080_v22 = vld [vmem:[%s4664_s2 + $0x10] sm:$0x3] }
  0x31   : > { %3234 = vmatprep.mubr.msk.bf16.mxu0 %vm3662_vm2, %v3661_v1  ;;  %3254 = vmatprep.mubr.msk.bf16.mxu1 %vm3662_vm2, %v3661_v1  ;;  %v740_v50 = vsel %vm712_vm4, %v735_v26, %v739_v47  ;;  %v4005_v54 = vrot.slane %v3848_v24, 2  ;;  %v4015_v56 = vsel %vm1000_vm5, %v3978_v46, %v1006_v51  ;;  %v755_v57 = vrot.slane %v753_v31, 1 }
  0x32   : > { %v748_v30 = vsel %vm712_vm4, %v743_v27, %v747_v33  ;;  %v751_v37 = vor.u32 %v749_v34, %v747_v33  ;;  %v1758_v59 = vrot.slane %v3855_v28, 2  ;;  %v1010_v31 = vrot.slane %v3818_v17, 1 }
  0x33   : > { %v4011_v55 = vsel %vm1752_vm6, %v1754_v52, %v4005_v54  ;;  %v759_v34 = vor.u32 %v757_v32, %v755_v57  ;;  %v763_v9 = vrot.slane %v761_v38, 1  ;;  %v1012_v12 = vrot.slane %v3833_v20, 1 }
  0x34   : > { %v4035_v62 = vsel %vm1752_vm6, %v4005_v54, %v1758_v59  ;;  %v756_v2 = vsel %vm712_vm4, %v751_v37, %v755_v57  ;;  %v771_v38 = vrot.slane %v769_v41, 1  ;;  %v1014_v16 = vrot.slane %v3846_v23, 1 }
  0x35   : > { %v764_v11 = vsel %vm712_vm4, %v759_v34, %v763_v9  ;;  %v767_v32 = vor.u32 %v765_v39, %v763_v9  ;;  %v779_v41 = vrot.slane %v777_v3, 1 }
  0x36   : > { %v775_v39 = vor.u32 %v773_v42, %v771_v38  ;;  %v1015_v29 = vsel %vm1000_vm5, %v1012_v12, %v1014_v16  ;;  %v1017_v40 = vsel %vm1000_vm5, %v1014_v16, %v3931_v7 }
  0x37   : > { %v772_v15 = vsel %vm712_vm4, %v767_v32, %v771_v38  ;;  %v783_v42 = vor.u32 %v781_v4, %v779_v41 }
  0x38   : > { %3235 = vmatmul.mubr.msk.bf16.gmra.mrb[12].mxu0 %vm427_vm1, %v3848_v24  ;;  %3255 = vmatmul.mubr.msk.bf16.gmra.mrb[12].mxu1 %vm427_vm1, %v3897_v53  ;;  %v1008_v24 = vrot.slane %v3855_v28, 1  ;;  %v780_v35 = vsel %vm712_vm4, %v775_v39, %v779_v41  ;;  %v2552_v39 = vsel %vm537_vm0, %v3080_v22, 0  ;;  %v492_v41 = vld [vmem:[#allocation3 + $0x50] sm:$0xff] }
  0x39   : > { %3238 = vmatprep.mubr.msk.bf16.mxu0 %vm3662_vm2, %v3661_v1  ;;  %3260 = vmatprep.mubr.msk.bf16.mxu1 %vm3662_vm2, %v3661_v1  ;;  %v2191_v22 = vld [vmem:[#allocation2 + $0x10] sm:$0xfc] }
  0x3a   : > { %v4038_v63 = vsel %vm1000_vm5, %v1006_v51, %v1008_v24  ;;  %v4054_v10 = vsel %vm1000_vm5, %v1008_v24, %v1010_v31 }
  0x40   : > { %3239 = vmatmul.mubr.msk.bf16.gmra.mrb[16].mxu0 %vm427_vm1, %v3855_v28  ;;  %3261 = vmatmul.mubr.msk.bf16.vlgmr.msra.gmra.mrb[16].mxu1 %vm427_vm1, %v724_v14  ;;  %v4070_v14 = vsel %vm1000_vm5, %v1010_v31, %v1012_v12  ;;  %v482_v28 = vld [vmem:[#allocation3] sm:$0xff] }
  0x41   : > { %3298 = vmatprep.mubr.msk.bf16.mxu0 %vm3662_vm2, %v3661_v1  ;;  %3335 = vmatpush3.bf16.msra.mxu1 %v1278_v21  ;;  %v709_v21 = vld [vmem:[#allocation2 + $0x48] sm:$0x1] }
  0x42   : > { %3264 = vmatprep.mubr.msk.bf16.mxu1 %vm3662_vm2, %v3661_v1  ;;  %3410 = vmatprep.subr.bf16.mxu1 %v3661_v1  ;;  %v785_v36 = vshll.u32 %v709_v21, 16  ;;  %v483_v21 = vld [vmem:[#allocation3 + $0x8] sm:$0xff] }
  0x44   : > { %v787_v3 = vrot.slane %v785_v36, 1 }
  0x46   : > { %v788_v43 = vsel %vm712_vm4, %v783_v42, %v787_v3  ;;  %v493_v42 = vld [vmem:[#allocation3 + $0x58] sm:$0xff] }
  0x48   : > { %3299 = vmatmul.mubr.msk.bf16.vlgmr.msra.gmra.mrb[20].mxu0 %vm427_vm1, %v1003_v44  ;;  %3265 = vmatmul.mubr.msk.bf16.gmra.mrb[20].mxu1 %vm427_vm1, %v732_v45  ;;  %v987_v44 = vld [vmem:[#allocation2 + $0x48] sm:$0x1]  ;;  %v1439_v45 = vld [vmem:[#allocation2 + $0x8] sm:$0xfe] }
  0x49   : > { %3373 = vmatpush3.bf16.msra.mxu0 %v1569_v19  ;;  %3268 = vmatprep.mubr.msk.bf16.mxu1 %vm3662_vm2, %v3661_v1  ;;  %v1209_v19 = vld [vmem:[#allocation2 + $0x8] sm:$0xfe]  ;;  %v1018_v26 = vrot.slane %v987_v44, 1  ;;  %v1453_v47 = vshrl.u32 %v1439_v45, 16 }
  0x4a   : > { %3302 = vmatprep.mubr.msk.bf16.mxu0 %vm3662_vm2, %v3661_v1  ;;  %3448 = vmatprep.subr.bf16.mxu0 %v3661_v1  ;;  %v1231_v4 = vrot.slane %v1209_v19, 1 }
  0x4b   : > { %v1019_v51 = vsel %vm1000_vm5, %v3931_v7, %v1018_v26  ;;  %v1455_v27 = vrot.slane %v1453_v47, 1  ;;  %v3060_v7 = vld [vmem:[%s4664_s2 + $0xc] sm:$0x3] }
  0x50   : > { %3303 = vmatmul.mubr.msk.bf16.gmra.mrb[24].mxu0 %vm427_vm1, %v1005_v48  ;;  %3269 = vmatmul.mubr.msk.bf16.gmra.mrb[24].mxu1 %vm427_vm1, %v740_v50  ;;  %v1456_v48 = vshll.u32 %v1439_v45, 16  ;;  %v3050_v50 = vld [vmem:[%s4664_s2 + $0xa] sm:$0x3] }
  0x51   : > { %3306 = vmatprep.mubr.msk.bf16.mxu0 %vm3662_vm2, %v3661_v1  ;;  %3272 = vmatprep.mubr.msk.bf16.mxu1 %vm3662_vm2, %v3661_v1  ;;  %v1800_v24 = vsel %vm537_vm0, %v3050_v50, 0  ;;  %v494_v50 = vld [vmem:[#allocation3 + $0x60] sm:$0xff] }
  0x52   : > { %v1458_v33 = vrot.slane %v1456_v48, 2  ;;  %v484_v48 = vld [vmem:[#allocation3 + $0x10] sm:$0xff] }
  0x54   : > { %v1459_v37 = vor.u32 %v1458_v33, %v1455_v27  ;;  %v485_v27 = vld [vmem:[#allocation3 + $0x18] sm:$0xff] }
  0x56   : > { %v1468_v57 = vsel %vm1451_vm3, %v1459_v37, %v3891_v49  ;;  %v1524_v49 = vshrl.u32 %v3928_v6, 16  ;;  %v495_v37 = vld [vmem:[#allocation3 + $0x68] sm:$0xff] }
  0x58   : > { %3307 = vmatmul.mubr.msk.bf16.gmra.mrb[28].mxu0 %vm427_vm1, %v4015_v56  ;;  %3273 = vmatmul.mubr.msk.bf16.gmra.mrb[28].mxu1 %vm427_vm1, %v748_v30  ;;  %v1233_v30 = vsel %vm1000_vm5, %v1231_v4, %v3978_v46  ;;  %v3619_v46 = vld [vmem:[%s3810_s26 + $0x10] sm:$0xff]   ;;  %v1766_v4 = vrot.slane %v3897_v53, 2  ;;  %s2988_s26 = sshll.u32 %s350_s19, 2 }
  0x59   : > { %3310 = vmatprep.mubr.msk.bf16.mxu0 %vm3662_vm2, %v3661_v1  ;;  %3276 = vmatprep.mubr.msk.bf16.mxu1 %vm3662_vm2, %v3661_v1  ;;  %463 = vst.msk [vmem:[#allocation2 + $0x58] sm:$0xff] %vm427_vm1, %v3619_v46  ;;  %s4551_s29 = scalar_lea.vmem %s4667_s5, %s2988_s26 }
  0x60   : > { %3311 = vmatmul.mubr.msk.bf16.gmra.mrb[32].mxu0 %vm427_vm1, %v4038_v63  ;;  %3277 = vmatmul.mubr.msk.bf16.gmra.mrb[32].mxu1 %vm427_vm1, %v756_v2  ;;  %v2030_v2 = vsel %vm537_vm0, %v3060_v7, 0 }
  0x61   : > { %3314 = vmatprep.mubr.msk.bf16.mxu0 %vm3662_vm2, %v3661_v1  ;;  %3280 = vmatprep.mubr.msk.bf16.mxu1 %vm3662_vm2, %v3661_v1 }
  0x68   : > { %3315 = vmatmul.mubr.msk.bf16.gmra.mrb[36].mxu0 %vm427_vm1, %v4054_v10  ;;  %3281 = vmatmul.mubr.msk.bf16.gmra.mrb[36].mxu1 %vm427_vm1, %v764_v11 }
  0x69   : > { %3318 = vmatprep.mubr.msk.bf16.mxu0 %vm3662_vm2, %v3661_v1  ;;  %3284 = vmatprep.mubr.msk.bf16.mxu1 %vm3662_vm2, %v3661_v1 }
  0x70   : > { %3319 = vmatmul.mubr.msk.bf16.gmra.mrb[40].mxu0 %vm427_vm1, %v4070_v14  ;;  %3285 = vmatmul.mubr.msk.bf16.gmra.mrb[40].mxu1 %vm427_vm1, %v772_v15 }
  0x71   : > { %3322 = vmatprep.mubr.msk.bf16.mxu0 %vm3662_vm2, %v3661_v1  ;;  %3288 = vmatprep.mubr.msk.bf16.mxu1 %vm3662_vm2, %v3661_v1 }
  0x78   : > { %3323 = vmatmul.mubr.msk.bf16.gmra.mrb[44].mxu0 %vm427_vm1, %v1015_v29  ;;  %3289 = vmatmul.mubr.msk.bf16.gmra.mrb[44].mxu1 %vm427_vm1, %v780_v35 }
  0x79   : > { %3326 = vmatprep.mubr.msk.bf16.mxu0 %vm3662_vm2, %v3661_v1  ;;  %3292 = vmatprep.mubr.msk.bf16.mxu1 %vm3662_vm2, %v3661_v1 }
  0x80   : > { %3327 = vmatmul.mubr.msk.bf16.gmra.mrb[48].mxu0 %vm427_vm1, %v1017_v40  ;;  %3293 = vmatmul.mubr.msk.bf16.gmra.mrb[48].mxu1 %vm427_vm1, %v788_v43 }
  0x81   : > { %3330 = vmatprep.mubr.msk.bf16.mxu0 %vm3662_vm2, %v3661_v1  ;;  %3336 = vmatprep.mubr.msk.bf16.mxu1 %vm3662_vm2, %v3661_v1 }
  0x88   : > { %3331 = vmatmul.mubr.msk.bf16.gmra.mrb[52].mxu0 %vm427_vm1, %v1019_v51  ;;  %3337 = vmatmul.mubr.msk.bf16.vlgmr.msra.gmra.mrb[52].mxu1 %vm427_vm1, %v1233_v30 }
  0x89   : > { %3374 = vmatprep.mubr.msk.bf16.mxu0 %vm3662_vm2, %v3661_v1  ;;  %3411 = vmatpush3.bf16.msra.mxu1 %v1800_v24 }
  0x8a   : > { %3340 = vmatprep.mubr.msk.bf16.mxu1 %vm3662_vm2, %v3661_v1  ;;  %3486 = vmatprep.subr.bf16.mxu1 %v3661_v1 }
  0x90   : > { %3375 = vmatmul.mubr.msk.bf16.vlgmr.msra.gmra.mrb[56].mxu0 %vm427_vm1, %v1468_v57  ;;  %3341 = vmatmul.mubr.msk.bf16.gmra.mrb[56].mxu1 %vm427_vm1, %v4015_v56 }
  0x91   : > { %3449 = vmatpush3.bf16.msra.mxu0 %v2030_v2  ;;  %3344 = vmatprep.mubr.msk.bf16.mxu1 %vm3662_vm2, %v3661_v1 }
  0x92   : > { %3378 = vmatprep.mubr.msk.bf16.mxu0 %vm3662_vm2, %v3661_v1  ;;  %3524 = vmatprep.subr.bf16.mxu0 %v3661_v1 }
  0x98   : > { %3379 = vmatmul.mubr.msk.bf16.gmra.mrb[60].mxu0 %vm427_vm1, %v3904_v58  ;;  %3345 = vmatmul.mubr.msk.bf16.gmra.mrb[60].mxu1 %vm427_vm1, %v4038_v63  ;;  %v1527_v58 = vshll.u32 %v3928_v6, 16 }
  0x99   : > { %3382 = vmatprep.mubr.msk.bf16.mxu0 %vm3662_vm2, %v3661_v1  ;;  %3348 = vmatprep.mubr.msk.bf16.mxu1 %vm3662_vm2, %v3661_v1 }
  0xa0   : > { %3383 = vmatmul.mubr.msk.bf16.gmra.mrb[64].mxu0 %vm427_vm1, %v3909_v60  ;;  %3349 = vmatmul.mubr.msk.bf16.gmra.mrb[64].mxu1 %vm427_vm1, %v4054_v10  ;;  %v1526_v60 = vrot.slane %v1524_v49, 1 }
  0xa1   : > { %3386 = vmatprep.mubr.msk.bf16.mxu0 %vm3662_vm2, %v3661_v1  ;;  %3352 = vmatprep.mubr.msk.bf16.mxu1 %vm3662_vm2, %v3661_v1 }
  0xa8   : > { %3387 = vmatmul.mubr.msk.bf16.gmra.mrb[68].mxu0 %vm427_vm1, %v3912_v61  ;;  %3353 = vmatmul.mubr.msk.bf16.gmra.mrb[68].mxu1 %vm427_vm1, %v4070_v14  ;;  %v1529_v61 = vrot.slane %v1527_v58, 2  ;;  %v1961_v14 = vld [vmem:[#allocation2 + $0x10] sm:$0xfc] }
  0xa9   : > { %3390 = vmatprep.mubr.msk.bf16.mxu0 %vm3662_vm2, %v3661_v1  ;;  %3356 = vmatprep.mubr.msk.bf16.mxu1 %vm3662_vm2, %v3661_v1  ;;  %v1983_v16 = vrot.slane %v1961_v14, 2 }
  0xaa   : > { %v1530_v56 = vor.u32 %v1529_v61, %v1526_v60 }
  0xac   : > { %v1531_v9 = vsel %vm1451_vm3, %v3950_v18, %v1530_v56  ;;  %v3070_v18 = vld [vmem:[%s4664_s2 + $0xe] sm:$0x3] }
  0xad   : > { %v2321_v15 = vsel %vm537_vm0, %v3070_v18, 0 }
  0xb0   : > { %3391 = vmatmul.mubr.msk.bf16.gmra.mrb[72].mxu0 %vm427_vm1, %v3919_v0  ;;  %3357 = vmatmul.mubr.msk.bf16.gmra.mrb[72].mxu1 %vm427_vm1, %v1015_v29  ;;  %v1448_v0 = vld [vmem:[#allocation2 + $0x50] sm:$0x3] }
  0xb1   : > { %3394 = vmatprep.mubr.msk.bf16.mxu0 %vm3662_vm2, %v3661_v1  ;;  %3360 = vmatprep.mubr.msk.bf16.mxu1 %vm3662_vm2, %v3661_v1  ;;  %v1533_v63 = vshrl.u32 %v1448_v0, 16  ;;  %v1536_v31 = vshll.u32 %v1448_v0, 16 }
  0xb3   : > { %v1535_v10 = vrot.slane %v1533_v63, 1  ;;  %v1538_v11 = vrot.slane %v1536_v31, 2  ;;  %v1768_v63 = vrot.slane %v3928_v6, 2  ;;  %v496_v31 = vld [vmem:[#allocation3 + $0x70] sm:$0xff] }
  0xb5   : > { %v1539_v12 = vor.u32 %v1538_v11, %v1535_v10 }
  0xb7   : > { %v1540_v38 = vsel %vm1451_vm3, %v1530_v56, %v1539_v12  ;;  %v486_v56 = vld [vmem:[#allocation3 + $0x20] sm:$0xff] }
  0xb8   : > { %3395 = vmatmul.mubr.msk.bf16.gmra.mrb[76].mxu0 %vm427_vm1, %v3926_v5  ;;  %3361 = vmatmul.mubr.msk.bf16.gmra.mrb[76].mxu1 %vm427_vm1, %v1017_v40  ;;  %v1218_v5 = vld [vmem:[#allocation2 + $0x50] sm:$0x1] }
  0xb9   : > { %3398 = vmatprep.mubr.msk.bf16.mxu0 %vm3662_vm2, %v3661_v1  ;;  %3364 = vmatprep.mubr.msk.bf16.mxu1 %vm3662_vm2, %v3661_v1  ;;  %v1248_v34 = vrot.slane %v1218_v5, 1 }
  0xc0   : > { %3399 = vmatmul.mubr.msk.bf16.gmra.mrb[80].mxu0 %vm427_vm1, %v3958_v25  ;;  %3365 = vmatmul.mubr.msk.bf16.gmra.mrb[80].mxu1 %vm427_vm1, %v3946_v13  ;;  %v1249_v25 = vsel %vm1000_vm5, %v1246_v8, %v1248_v34  ;;  %v1730_v13 = vld [vmem:[#allocation2 + $0x8] sm:$0xfc] }
  0xc1   : > { %3402 = vmatprep.mubr.msk.bf16.mxu0 %vm3662_vm2, %v3661_v1  ;;  %3368 = vmatprep.mubr.msk.bf16.mxu1 %vm3662_vm2, %v3661_v1  ;;  %v1753_v32 = vrot.slane %v1730_v13, 2  ;;  %v497_v13 = vld [vmem:[#allocation3 + $0x78] sm:$0xff] }
  0xc3   : > { %v1755_v8 = vsel %vm1752_vm6, %v1753_v32, %v1754_v52  ;;  %v1985_v52 = vsel %vm1752_vm6, %v1983_v16, %v4005_v54  ;;  %v1760_v54 = vrot.slane %v3818_v17, 2 }
  0xc8   : > { %3403 = vmatmul.mubr.msk.bf16.gmra.mrb[84].mxu0 %vm427_vm1, %v1531_v9  ;;  %3369 = vmatmul.mubr.msk.bf16.gmra.mrb[84].mxu1 %vm427_vm1, %v1249_v25  ;;  %v487_v9 = vld [vmem:[#allocation3 + $0x28] sm:$0xff] }
  0xc9   : > { %3406 = vmatprep.mubr.msk.bf16.mxu0 %vm3662_vm2, %v3661_v1  ;;  %3412 = vmatprep.mubr.msk.bf16.mxu1 %vm3662_vm2, %v3661_v1 }
  0xd0   : > { %3407 = vmatmul.mubr.msk.bf16.gmra.mrb[88].mxu0 %vm427_vm1, %v1540_v38  ;;  %3413 = vmatmul.mubr.msk.bf16.vlgmr.msra.gmra.mrb[88].mxu1 %vm427_vm1, %v1755_v8  ;;  %v1769_v38 = vsel %vm1752_vm6, %v1766_v4, %v1768_v63  ;;  %v4277_v8 = vld [vmem:[#allocation2 + $0x50] sm:$0xff] }
  0xd1   : > { %3450 = vmatprep.mubr.msk.bf16.mxu0 %vm3662_vm2, %v3661_v1  ;;  %3487 = vmatpush3.bf16.msra.mxu1 %v2321_v15 }
  0xd2   : > { %3416 = vmatprep.mubr.msk.bf16.mxu1 %vm3662_vm2, %v3661_v1 }
  0xd8   : > { %3451 = vmatmul.mubr.msk.bf16.vlgmr.msra.gmra.mrb[92].mxu0 %vm427_vm1, %v1985_v52  ;;  %3417 = vmatmul.mubr.msk.bf16.gmra.mrb[92].mxu1 %vm427_vm1, %v4011_v55  ;;  %v1761_v55 = vsel %vm1752_vm6, %v1758_v59, %v1760_v54  ;;  %v1764_v59 = vrot.slane %v3846_v23, 2  ;;  %v4280_v52 = vld [vmem:[#allocation2 + $0x18] sm:$0xff] }
  0xd9   : > { %3525 = vmatpush3.bf16.msra.mxu0 %v2552_v39  ;;  %3420 = vmatprep.mubr.msk.bf16.mxu1 %vm3662_vm2, %v3661_v1 }
  0xda   : > { %3454 = vmatprep.mubr.msk.bf16.mxu0 %vm3662_vm2, %v3661_v1  ;;  %v1767_v2 = vsel %vm1752_vm6, %v1764_v59, %v1766_v4 }
  0xe0   : > { %3455 = vmatmul.mubr.msk.bf16.gmra.mrb[96].mxu0 %vm427_vm1, %v4035_v62  ;;  %3421 = vmatmul.mubr.msk.bf16.gmra.mrb[96].mxu1 %vm427_vm1, %v4035_v62  ;;  %v1762_v62 = vrot.slane %v3833_v20, 2 }
  0xe1   : > { %3458 = vmatprep.mubr.msk.bf16.mxu0 %vm3662_vm2, %v3661_v1  ;;  %3424 = vmatprep.mubr.msk.bf16.mxu1 %vm3662_vm2, %v3661_v1 }
  0xe2   : > { %v1763_v17 = vsel %vm1752_vm6, %v1760_v54, %v1762_v62  ;;  %v1765_v44 = vsel %vm1752_vm6, %v1762_v62, %v1764_v59  ;;  %v1998_v62 = vrot.slane %v4277_v8, 2  ;;  %v2208_v59 = vshll.u32 %v2191_v22, 16 }
  0xe8   : > { %3459 = vmatmul.mubr.msk.bf16.gmra.mrb[100].mxu0 %vm427_vm1, %v1761_v55  ;;  %3425 = vmatmul.mubr.msk.bf16.gmra.mrb[100].mxu1 %vm427_vm1, %v1761_v55  ;;  %v1739_v55 = vld [vmem:[#allocation2 + $0x50] sm:$0x3] }
  0xe9   : > { %3462 = vmatprep.mubr.msk.bf16.mxu0 %vm3662_vm2, %v3661_v1  ;;  %3428 = vmatprep.mubr.msk.bf16.mxu1 %vm3662_vm2, %v3661_v1 }
  0xf0   : > { %3463 = vmatmul.mubr.msk.bf16.gmra.mrb[104].mxu0 %vm427_vm1, %v1763_v17  ;;  %3429 = vmatmul.mubr.msk.bf16.gmra.mrb[104].mxu1 %vm427_vm1, %v1763_v17  ;;  %v488_v17 = vld [vmem:[#allocation3 + $0x30] sm:$0xff] }
  0xf1   : > { %3466 = vmatprep.mubr.msk.bf16.mxu0 %vm3662_vm2, %v3661_v1  ;;  %3432 = vmatprep.mubr.msk.bf16.mxu1 %vm3662_vm2, %v3661_v1 }
  0xf3   : > { %v575_v20 = vpop.f32.mrb[0].mxu0  ;;  %v615_v35 = vpop.f32.mrb[0].mxu1 }
  0xf4   : > { %v646_v29 = vadd.f32 %v575_v20, %v482_v28  ;;  %v3224_v36 = vpop.f32.mrb[1].mxu0  ;;  %v656_v3 = vadd.f32 %v615_v35, %v492_v41  ;;  %v3244_v40 = vpop.f32.mrb[1].mxu1  ;;  %v2205_v28 = vshrl.u32 %v2191_v22, 16  ;;  %v2213_v41 = vshrl.u32 %v4280_v52, 16  ;;  %v498_v20 = vld [vmem:[#allocation3 + $0x80] sm:$0xff] }
  0xf5   : > { %v578_v43 = vpop.f32.mrb[2].mxu0  ;;  %v618_v19 = vpop.f32.mrb[2].mxu1  ;;  %v489_v36 = vld [vmem:[#allocation3 + $0x38] sm:$0xff] }
  0xf6   : > { %664 = vst.msk [vmem:[#allocation3] sm:$0xff] %vm427_vm1, %v646_v29  ;;  %v647_v45 = vadd.f32 %v578_v43, %v483_v21  ;;  %v3225_v23 = vpop.f32.mrb[3].mxu0  ;;  %674 = vst.msk [vmem:[#allocation3 + $0x50] sm:$0xff] %vm427_vm1, %v656_v3  ;;  %v657_v26 = vadd.f32 %v618_v19, %v493_v42  ;;  %v3245_v47 = vpop.f32.mrb[3].mxu1  ;;  %v1770_v21 = vrot.slane %v1739_v55, 2  ;;  %v2216_v29 = vshll.u32 %v4280_v52, 16 }
  0xf7   : > { %v499_v43 = vld [vmem:[#allocation3 + $0x88] sm:$0xff]  ;;  %v2210_v47 = vrot.slane %v2208_v59, 3 }
  0xf8   : > { %665 = vst.msk [vmem:[#allocation3 + $0x8] sm:$0xff] %vm427_vm1, %v647_v45  ;;  %3467 = vmatmul.mubr.msk.bf16.gmra.mrb[108].mxu0 %vm427_vm1, %v1765_v44  ;;  %675 = vst.msk [vmem:[#allocation3 + $0x58] sm:$0xff] %vm427_vm1, %v657_v26  ;;  %3433 = vmatmul.mubr.msk.bf16.gmra.mrb[108].mxu1 %vm427_vm1, %v1765_v44  ;;  %v1999_v44 = vsel %vm1752_vm6, %v1768_v63, %v1998_v62  ;;  %v2207_v26 = vrot.slane %v2205_v28, 2 }
  0xf9   : > { %3470 = vmatprep.mubr.msk.bf16.mxu0 %vm3662_vm2, %v3661_v1  ;;  %3436 = vmatprep.mubr.msk.bf16.mxu1 %vm3662_vm2, %v3661_v1 }
  0xfb   : > { %v583_v51 = vpop.f32.mrb[4].mxu0  ;;  %v623_v30 = vpop.f32.mrb[4].mxu1 }
  0xfc   : > { %v648_v33 = vadd.f32 %v583_v51, %v484_v48  ;;  %v3228_v24 = vpop.f32.mrb[5].mxu0  ;;  %v658_v7 = vadd.f32 %v623_v30, %v494_v50  ;;  %v3248_v46 = vpop.f32.mrb[5].mxu1  ;;  %v2215_v48 = vrot.slane %v2213_v41, 2  ;;  %v2218_v30 = vrot.slane %v2216_v29, 3 }
  0xfd   : > { %v586_v57 = vpop.f32.mrb[6].mxu0  ;;  %v626_v61 = vpop.f32.mrb[6].mxu1  ;;  %v4297_v24 = vld [vmem:[#allocation2 + $0x20] sm:$0xff] }
  0xfe   : > { %666 = vst.msk [vmem:[#allocation3 + $0x10] sm:$0xff] %vm427_vm1, %v648_v33  ;;  %v649_v60 = vadd.f32 %v586_v57, %v485_v27  ;;  %v3229_v53 = vpop.f32.mrb[7].mxu0  ;;  %676 = vst.msk [vmem:[#allocation3 + $0x60] sm:$0xff] %vm427_vm1, %v658_v7  ;;  %v659_v0 = vadd.f32 %v626_v61, %v495_v37  ;;  %v3249_v5 = vpop.f32.mrb[7].mxu1  ;;  %v1771_v27 = vsel %vm1752_vm6, %v1768_v63, %v1770_v21  ;;  %v1970_v33 = vld [vmem:[#allocation2 + $0x58] sm:$0x3] }
  0xff   : > { %v490_v46 = vld [vmem:[#allocation3 + $0x40] sm:$0xff]  ;;  %v2000_v57 = vrot.slane %v1970_v33, 2  ;;  %v2219_v61 = vor.u32 %v2218_v30, %v2215_v48  ;;  %v2225_v53 = vshll.u32 %v4297_v24, 16  ;;  %v491_v5 = vld [vmem:[#allocation3 + $0x48] sm:$0xff] }
 0x100   : > { %667 = vst.msk [vmem:[#allocation3 + $0x18] sm:$0xff] %vm427_vm1, %v649_v60  ;;  %3471 = vmatmul.mubr.msk.bf16.gmra.mrb[112].mxu0 %vm427_vm1, %v1767_v2  ;;  %677 = vst.msk [vmem:[#allocation3 + $0x68] sm:$0xff] %vm427_vm1, %v659_v0  ;;  %3437 = vmatmul.mubr.msk.bf16.gmra.mrb[112].mxu1 %vm427_vm1, %v1767_v2  ;;  %v2222_v2 = vshrl.u32 %v4297_v24, 16  ;;  %v2211_v60 = vor.u32 %v2210_v47, %v2207_v26  ;;  %v682_v63 = vld [vmem:[#allocation3] sm:$0xff] }
 0x101   : > { %3474 = vmatprep.mubr.msk.bf16.mxu0 %vm3662_vm2, %v3661_v1  ;;  %3440 = vmatprep.mubr.msk.bf16.mxu1 %vm3662_vm2, %v3661_v1 }
 0x103   : > { %v591_v34 = vpop.f32.mrb[8].mxu0  ;;  %v631_v11 = vpop.f32.mrb[8].mxu1 }
 0x104   : > { %v650_v10 = vadd.f32 %v591_v34, %v486_v56  ;;  %v3232_v25 = vpop.f32.mrb[9].mxu0  ;;  %v660_v12 = vadd.f32 %v631_v11, %v496_v31  ;;  %v3252_v32 = vpop.f32.mrb[9].mxu1 }
 0x105   : > { %v594_v18 = vpop.f32.mrb[10].mxu0  ;;  %v634_v15 = vpop.f32.mrb[10].mxu1  ;;  %v2001_v25 = vsel %vm1752_vm6, %v1998_v62, %v2000_v57  ;;  %v683_v32 = vld [vmem:[#allocation3 + $0x8] sm:$0xff]  ;;  %v2506_v62 = vrot.slane %v4280_v52, 3 }
 0x106   : > { %668 = vst.msk [vmem:[#allocation3 + $0x20] sm:$0xff] %vm427_vm1, %v650_v10  ;;  %v651_v14 = vadd.f32 %v594_v18, %v487_v9  ;;  %v3233_v16 = vpop.f32.mrb[11].mxu0  ;;  %678 = vst.msk [vmem:[#allocation3 + $0x70] sm:$0xff] %vm427_vm1, %v660_v12  ;;  %v661_v39 = vadd.f32 %v634_v15, %v497_v13  ;;  %v3253_v54 = vpop.f32.mrb[11].mxu1  ;;  %v2224_v13 = vrot.slane %v2222_v2, 2  ;;  %v2227_v15 = vrot.slane %v2225_v53, 3 }
 0x107   : > { %v2482_v16 = vld [vmem:[#allocation2 + $0x10] sm:$0xf8]  ;;  %v4314_v54 = vld [vmem:[#allocation2 + $0x28] sm:$0xff]  ;;  %v685_v52 = vld [vmem:[#allocation3 + $0x18] sm:$0xff] }
 0x108   : > { %669 = vst.msk [vmem:[#allocation3 + $0x28] sm:$0xff] %vm427_vm1, %v651_v14  ;;  %3475 = vmatmul.mubr.msk.bf16.gmra.mrb[116].mxu0 %vm427_vm1, %v1769_v38  ;;  %679 = vst.msk [vmem:[#allocation3 + $0x78] sm:$0xff] %vm427_vm1, %v661_v39  ;;  %3441 = vmatmul.mubr.msk.bf16.gmra.mrb[116].mxu1 %vm427_vm1, %v1769_v38  ;;  %v2220_v14 = vsel %vm2203_vm7, %v2211_v60, %v2219_v61  ;;  %v2505_v55 = vrot.slane %v2482_v16, 3  ;;  %v2231_v28 = vshrl.u32 %v4314_v54, 16  ;;  %v2234_v59 = vshll.u32 %v4314_v54, 16 }
 0x109   : > { %3478 = vmatprep.mubr.msk.bf16.mxu0 %vm3662_vm2, %v3661_v1  ;;  %3444 = vmatprep.mubr.msk.bf16.mxu1 %vm3662_vm2, %v3661_v1 }
 0x10b   : > { %v599_v35 = vpop.f32.mrb[12].mxu0  ;;  %v639_v3 = vpop.f32.mrb[12].mxu1 }
 0x10c   : > { %v652_v42 = vadd.f32 %v599_v35, %v488_v17  ;;  %v3236_v40 = vpop.f32.mrb[13].mxu0  ;;  %v662_v45 = vadd.f32 %v639_v3, %v498_v20  ;;  %v3256_v19 = vpop.f32.mrb[13].mxu1  ;;  %v2228_v17 = vor.u32 %v2227_v15, %v2224_v13  ;;  %v684_v20 = vld [vmem:[#allocation3 + $0x10] sm:$0xff]  ;;  %v2507_v3 = vsel %vm2504_vm8, %v2505_v55, %v2506_v62  ;;  %v4347_v13 = vld [vmem:[#allocation2 + $0x38] sm:$0xff] }
 0x10d   : > { %v602_v23 = vpop.f32.mrb[14].mxu0  ;;  %v642_v50 = vpop.f32.mrb[14].mxu1  ;;  %v2233_v19 = vrot.slane %v2231_v28, 2  ;;  %v2252_v15 = vshll.u32 %v4347_v13, 16 }
 0x10e   : > { %670 = vst.msk [vmem:[#allocation3 + $0x30] sm:$0xff] %vm427_vm1, %v652_v42  ;;  %v653_v4 = vadd.f32 %v602_v23, %v489_v36  ;;  %v3237_v51 = vpop.f32.mrb[15].mxu0  ;;  %680 = vst.msk [vmem:[#allocation3 + $0x80] sm:$0xff] %vm427_vm1, %v662_v45  ;;  %v663_v37 = vadd.f32 %v642_v50, %v499_v43  ;;  %v3257_v7 = vpop.f32.mrb[15].mxu1  ;;  %v2229_v45 = vsel %vm2203_vm7, %v2219_v61, %v2228_v17  ;;  %v2236_v23 = vrot.slane %v2234_v59, 3 }
 0x110   : > { %671 = vst.msk [vmem:[#allocation3 + $0x38] sm:$0xff] %vm427_vm1, %v653_v4  ;;  %3479 = vmatmul.mubr.msk.bf16.gmra.mrb[120].mxu0 %vm427_vm1, %v1999_v44  ;;  %681 = vst.msk [vmem:[#allocation3 + $0x88] sm:$0xff] %vm427_vm1, %v663_v37  ;;  %3445 = vmatmul.mubr.msk.bf16.gmra.mrb[120].mxu1 %vm427_vm1, %v1771_v27  ;;  %v4330_v4 = vld [vmem:[#allocation2 + $0x30] sm:$0xff]  ;;  %v2508_v27 = vrot.slane %v4297_v24, 3  ;;  %v2237_v33 = vor.u32 %v2236_v23, %v2233_v19 }
 0x111   : > { %3482 = vmatprep.mubr.msk.bf16.mxu0 %vm3662_vm2, %v3661_v1  ;;  %3488 = vmatprep.mubr.msk.bf16.mxu1 %vm3662_vm2, %v3661_v1  ;;  %v2240_v30 = vshrl.u32 %v4330_v4, 16  ;;  %v2243_v37 = vshll.u32 %v4330_v4, 16 }
 0x113   : > { %v607_v0 = vpop.f32.mrb[16].mxu0  ;;  %v853_v31 = vpop.f32.mrb[16].mxu1 }
 0x114   : > { %v654_v56 = vadd.f32 %v607_v0, %v490_v46  ;;  %v3240_v34 = vpop.f32.mrb[17].mxu0  ;;  %v924_v9 = vadd.f32 %v853_v31, %v682_v63  ;;  %v3262_v10 = vpop.f32.mrb[17].mxu1  ;;  %v686_v46 = vld [vmem:[#allocation3 + $0x20] sm:$0xff]  ;;  %v2509_v0 = vsel %vm2504_vm8, %v2506_v62, %v2508_v27  ;;  %v2238_v31 = vsel %vm2203_vm7, %v2228_v17, %v2237_v33 }
 0x115   : > { %v610_v11 = vpop.f32.mrb[18].mxu0  ;;  %v856_v18 = vpop.f32.mrb[18].mxu1  ;;  %v2242_v34 = vrot.slane %v2240_v30, 2 }
 0x116   : > { %672 = vst.msk [vmem:[#allocation3 + $0x40] sm:$0xff] %vm427_vm1, %v654_v56  ;;  %v655_v12 = vadd.f32 %v610_v11, %v491_v5  ;;  %v3241_v38 = vpop.f32.mrb[19].mxu0  ;;  %942 = vst.msk [vmem:[#allocation3] sm:$0xff] %vm427_vm1, %v924_v9  ;;  %v925_v22 = vadd.f32 %v856_v18, %v683_v32  ;;  %v3263_v39 = vpop.f32.mrb[19].mxu1  ;;  %v687_v5 = vld [vmem:[#allocation3 + $0x28] sm:$0xff]  ;;  %v2245_v9 = vrot.slane %v2243_v37, 3 }
 0x117   : > { %v2510_v18 = vrot.slane %v4314_v54, 3 }
 0x118   : > { %673 = vst.msk [vmem:[#allocation3 + $0x48] sm:$0xff] %vm427_vm1, %v655_v12  ;;  %3483 = vmatmul.mubr.msk.bf16.gmra.mrb[124].mxu0 %vm427_vm1, %v2001_v25  ;;  %943 = vst.msk [vmem:[#allocation3 + $0x8] sm:$0xff] %vm427_vm1, %v925_v22  ;;  %3489 = vmatmul.mubr.msk.bf16.vlgmr.msra.gmra.mrb[124].mxu1 %vm427_vm1, %v2220_v14  ;;  %v2246_v38 = vor.u32 %v2245_v9, %v2242_v34  ;;  %v2249_v14 = vshrl.u32 %v4347_v13, 16  ;;  %v688_v22 = vld [vmem:[#allocation3 + $0x30] sm:$0xff] }
 0x119   : > { %3526 = vmatprep.mubr.msk.bf16.mxu0 %vm3662_vm2, %v3661_v1  ;;  %3492 = vmatprep.mubr.msk.bf16.mxu1 %vm3662_vm2, %v3661_v1  ;;  %v2511_v59 = vsel %vm2504_vm8, %v2508_v27, %v2510_v18  ;;  %v692_v9 = vld [vmem:[#allocation3 + $0x50] sm:$0xff] }
 0x11b   : > { %v1084_v41 = vpop.f32.mrb[20].mxu0  ;;  %v861_v21 = vpop.f32.mrb[20].mxu1 }
 0x11c   : > { %v3300_v29 = vpop.f32.mrb[21].mxu0  ;;  %v926_v35 = vadd.f32 %v861_v21, %v684_v20  ;;  %v3266_v36 = vpop.f32.mrb[21].mxu1 }
 0x11d   : > { %v1087_v42 = vpop.f32.mrb[22].mxu0  ;;  %v960_v40 = vld [vmem:[#allocation3] sm:$0xff]  ;;  %v864_v43 = vpop.f32.mrb[22].mxu1  ;;  %v2247_v29 = vsel %vm2203_vm7, %v2237_v33, %v2246_v38  ;;  %v2254_v36 = vrot.slane %v2252_v15, 3 }
 0x11e   : > { %v3301_v44 = vpop.f32.mrb[23].mxu0  ;;  %944 = vst.msk [vmem:[#allocation3 + $0x10] sm:$0xff] %vm427_vm1, %v926_v35  ;;  %v1155_v26 = vadd.f32 %v1084_v41, %v960_v40  ;;  %v927_v47 = vadd.f32 %v864_v43, %v685_v52  ;;  %v3267_v48 = vpop.f32.mrb[23].mxu1  ;;  %v689_v41 = vld [vmem:[#allocation3 + $0x38] sm:$0xff]  ;;  %v2251_v35 = vrot.slane %v2249_v14, 2  ;;  %v4364_v52 = vld [vmem:[#allocation2 + $0x40] sm:$0xff] }
 0x11f   : > { %v961_v50 = vld [vmem:[#allocation3 + $0x8] sm:$0xff]  ;;  %v2258_v23 = vshrl.u32 %v4364_v52, 16  ;;  %v690_v48 = vld [vmem:[#allocation3 + $0x40] sm:$0xff]  ;;  %v693_v14 = vld [vmem:[#allocation3 + $0x58] sm:$0xff]  ;;  %v2516_v6 = vrot.slane %v4364_v52, 3 }
 0x120   : > { %3527 = vmatmul.mubr.msk.bf16.vlgmr.msra.gmra.mrb[128].mxu0 %vm427_vm1, %v2507_v3  ;;  %1173 = vst.msk [vmem:[#allocation3] sm:$0xff] %vm427_vm1, %v1155_v26  ;;  %945 = vst.msk [vmem:[#allocation3 + $0x18] sm:$0xff] %vm427_vm1, %v927_v47  ;;  %v1156_v51 = vadd.f32 %v1087_v42, %v961_v50  ;;  %3493 = vmatmul.mubr.msk.bf16.gmra.mrb[128].mxu1 %vm427_vm1, %v2229_v45  ;;  %v2512_v45 = vrot.slane %v4330_v4, 3  ;;  %v2255_v19 = vor.u32 %v2254_v36, %v2251_v35 }
 0x121   : > { %3530 = vmatprep.mubr.msk.bf16.mxu0 %vm3662_vm2, %v3661_v1  ;;  %3496 = vmatprep.mubr.msk.bf16.mxu1 %vm3662_vm2, %v3661_v1  ;;  %v2261_v26 = vshll.u32 %v4364_v52, 16  ;;  %v695_v52 = vld [vmem:[#allocation3 + $0x68] sm:$0xff] }
 0x122   : > { %1174 = vst.msk [vmem:[#allocation3 + $0x8] sm:$0xff] %vm427_vm1, %v1156_v51  ;;  %v2513_v37 = vsel %vm2504_vm8, %v2510_v18, %v2512_v45 }
 0x123   : > { %v1092_v7 = vpop.f32.mrb[24].mxu0  ;;  %v869_v57 = vpop.f32.mrb[24].mxu1 }
 0x124   : > { %v3304_v2 = vpop.f32.mrb[25].mxu0  ;;  %v928_v60 = vadd.f32 %v869_v57, %v686_v46  ;;  %v3270_v61 = vpop.f32.mrb[25].mxu1 }
 0x125   : > { %v1095_v53 = vpop.f32.mrb[26].mxu0  ;;  %v962_v24 = vld [vmem:[#allocation3 + $0x10] sm:$0xff]  ;;  %v872_v56 = vpop.f32.mrb[26].mxu1  ;;  %v2256_v2 = vsel %vm2203_vm7, %v2246_v38, %v2255_v19  ;;  %v2263_v61 = vrot.slane %v2261_v26, 3 }
 0x126   : > { %v3305_v63 = vpop.f32.mrb[27].mxu0  ;;  %946 = vst.msk [vmem:[#allocation3 + $0x20] sm:$0xff] %vm427_vm1, %v928_v60  ;;  %v1157_v10 = vadd.f32 %v1092_v7, %v962_v24  ;;  %v929_v11 = vadd.f32 %v872_v56, %v687_v5  ;;  %v3271_v25 = vpop.f32.mrb[27].mxu1  ;;  %v691_v7 = vld [vmem:[#allocation3 + $0x48] sm:$0xff]  ;;  %v2260_v60 = vrot.slane %v2258_v23, 2 }
 0x127   : > { %v963_v12 = vld [vmem:[#allocation3 + $0x18] sm:$0xff]  ;;  %v2514_v63 = vrot.slane %v4347_v13, 3 }
 0x128   : > { %3531 = vmatmul.mubr.msk.bf16.gmra.mrb[132].mxu0 %vm427_vm1, %v2509_v0  ;;  %1175 = vst.msk [vmem:[#allocation3 + $0x10] sm:$0xff] %vm427_vm1, %v1157_v10  ;;  %947 = vst.msk [vmem:[#allocation3 + $0x28] sm:$0xff] %vm427_vm1, %v929_v11  ;;  %v1158_v32 = vadd.f32 %v1095_v53, %v963_v12  ;;  %3497 = vmatmul.mubr.msk.bf16.gmra.mrb[132].mxu1 %vm427_vm1, %v2238_v31  ;;  %v2264_v31 = vor.u32 %v2263_v61, %v2260_v60 }
 0x129   : > { %3534 = vmatprep.mubr.msk.bf16.mxu0 %vm3662_vm2, %v3661_v1  ;;  %3500 = vmatprep.mubr.msk.bf16.mxu1 %vm3662_vm2, %v3661_v1  ;;  %v2515_v18 = vsel %vm2504_vm8, %v2512_v45, %v2514_v63 }
 0x12a   : > { %1176 = vst.msk [vmem:[#allocation3 + $0x18] sm:$0xff] %vm427_vm1, %v1158_v32  ;;  %v2265_v13 = vsel %vm2203_vm7, %v2255_v19, %v2264_v31 }
 0x12b   : > { %v1100_v16 = vpop.f32.mrb[28].mxu0  ;;  %v877_v39 = vpop.f32.mrb[28].mxu1 }
 0x12c   : > { %v3308_v55 = vpop.f32.mrb[29].mxu0  ;;  %v930_v62 = vadd.f32 %v877_v39, %v688_v22  ;;  %v3274_v17 = vpop.f32.mrb[29].mxu1  ;;  %v2269_v22 = vrot.slane %v1524_v49, 2  ;;  %v2272_v39 = vrot.slane %v1527_v58, 3  ;;  %v2276_v58 = vshrl.u32 %v4277_v8, 16 }
 0x12d   : > { %v1103_v28 = vpop.f32.mrb[30].mxu0  ;;  %v964_v54 = vld [vmem:[#allocation3 + $0x20] sm:$0xff]  ;;  %v880_v20 = vpop.f32.mrb[30].mxu1 }
 0x12e   : > { %v3309_v21 = vpop.f32.mrb[31].mxu0  ;;  %948 = vst.msk [vmem:[#allocation3 + $0x30] sm:$0xff] %vm427_vm1, %v930_v62  ;;  %v1159_v42 = vadd.f32 %v1100_v16, %v964_v54  ;;  %v931_v3 = vadd.f32 %v880_v20, %v689_v41  ;;  %v3275_v40 = vpop.f32.mrb[31].mxu1  ;;  %v2273_v49 = vor.u32 %v2272_v39, %v2269_v22  ;;  %v2279_v54 = vshll.u32 %v4277_v8, 16  ;;  %v694_v20 = vld [vmem:[#allocation3 + $0x60] sm:$0xff] }
 0x12f   : > { %v965_v43 = vld [vmem:[#allocation3 + $0x28] sm:$0xff]  ;;  %v2278_v19 = vrot.slane %v2276_v58, 2  ;;  %v2491_v58 = vld [vmem:[#allocation2 + $0x58] sm:$0x7] }
 0x130   : > { %3535 = vmatmul.mubr.msk.bf16.gmra.mrb[136].mxu0 %vm427_vm1, %v2511_v59  ;;  %1177 = vst.msk [vmem:[#allocation3 + $0x20] sm:$0xff] %vm427_vm1, %v1159_v42  ;;  %949 = vst.msk [vmem:[#allocation3 + $0x38] sm:$0xff] %vm427_vm1, %v931_v3  ;;  %v1160_v44 = vadd.f32 %v1103_v28, %v965_v43  ;;  %3501 = vmatmul.mubr.msk.bf16.gmra.mrb[136].mxu1 %vm427_vm1, %v2247_v29  ;;  %v2517_v3 = vsel %vm2504_vm8, %v2514_v63, %v2516_v6  ;;  %v2281_v23 = vrot.slane %v2279_v54, 3 }
 0x131   : > { %3538 = vmatprep.mubr.msk.bf16.mxu0 %vm3662_vm2, %v3661_v1  ;;  %3504 = vmatprep.mubr.msk.bf16.mxu1 %vm3662_vm2, %v3661_v1  ;;  %v2274_v45 = vsel %vm2203_vm7, %v2264_v31, %v2273_v49 }
 0x132   : > { %1178 = vst.msk [vmem:[#allocation3 + $0x28] sm:$0xff] %vm427_vm1, %v1160_v44 }
 0x133   : > { %v1108_v47 = vpop.f32.mrb[32].mxu0  ;;  %v885_v50 = vpop.f32.mrb[32].mxu1 }
 0x134   : > { %v3312_v51 = vpop.f32.mrb[33].mxu0  ;;  %v932_v27 = vadd.f32 %v885_v50, %v690_v48  ;;  %v3278_v33 = vpop.f32.mrb[33].mxu1  ;;  %v2200_v50 = vld [vmem:[#allocation2 + $0x58] sm:$0x7] }
 0x135   : > { %v1111_v30 = vpop.f32.mrb[34].mxu0  ;;  %v966_v4 = vld [vmem:[#allocation3 + $0x30] sm:$0xff]  ;;  %v888_v46 = vpop.f32.mrb[34].mxu1  ;;  %v3620_v33 = vld [vmem:[#allocation2 + $0x48] sm:$0xff] }
 0x136   : > { %v3313_v57 = vpop.f32.mrb[35].mxu0  ;;  %950 = vst.msk [vmem:[#allocation3 + $0x40] sm:$0xff] %vm427_vm1, %v932_v27  ;;  %v1161_v53 = vadd.f32 %v1108_v47, %v966_v4  ;;  %v933_v0 = vadd.f32 %v888_v46, %v691_v7  ;;  %v3279_v24 = vpop.f32.mrb[35].mxu1  ;;  %v2285_v4 = vshrl.u32 %v2200_v50, 16  ;;  %v2288_v7 = vshll.u32 %v2200_v50, 16 }
 0x137   : > { %v967_v5 = vld [vmem:[#allocation3 + $0x38] sm:$0xff]  ;;  %v696_v57 = vld [vmem:[#allocation3 + $0x70] sm:$0xff] }
 0x138   : > { %3539 = vmatmul.mubr.msk.bf16.gmra.mrb[140].mxu0 %vm427_vm1, %v2513_v37  ;;  %1179 = vst.msk [vmem:[#allocation3 + $0x30] sm:$0xff] %vm427_vm1, %v1161_v53  ;;  %951 = vst.msk [vmem:[#allocation3 + $0x48] sm:$0xff] %vm427_vm1, %v933_v0  ;;  %v1162_v56 = vadd.f32 %v1111_v30, %v967_v5  ;;  %3505 = vmatmul.mubr.msk.bf16.gmra.mrb[140].mxu1 %vm427_vm1, %v2256_v2  ;;  %v2518_v30 = vrot.slane %v3620_v33, 3  ;;  %v2282_v37 = vor.u32 %v2281_v23, %v2278_v19  ;;  %v1192_v23 = vld [vmem:[#allocation3 + $0x8] sm:$0xff] }
 0x139   : > { %3542 = vmatprep.mubr.msk.bf16.mxu0 %vm3662_vm2, %v3661_v1  ;;  %3508 = vmatprep.mubr.msk.bf16.mxu1 %vm3662_vm2, %v3661_v1 }
 0x13a   : > { %1180 = vst.msk [vmem:[#allocation3 + $0x38] sm:$0xff] %vm427_vm1, %v1162_v56  ;;  %v2519_v24 = vsel %vm2504_vm8, %v2516_v6, %v2518_v30  ;;  %v697_v56 = vld [vmem:[#allocation3 + $0x78] sm:$0xff] }
 0x13b   : > { %v1116_v34 = vpop.f32.mrb[36].mxu0  ;;  %v893_v10 = vpop.f32.mrb[36].mxu1 }
 0x13c   : > { %v3316_v11 = vpop.f32.mrb[37].mxu0  ;;  %v934_v25 = vadd.f32 %v893_v10, %v692_v9  ;;  %v3282_v12 = vpop.f32.mrb[37].mxu1  ;;  %v2287_v9 = vrot.slane %v2285_v4, 2  ;;  %v2290_v10 = vrot.slane %v2288_v7, 3 }
 0x13d   : > { %v1119_v32 = vpop.f32.mrb[38].mxu0  ;;  %v968_v38 = vld [vmem:[#allocation3 + $0x40] sm:$0xff]  ;;  %v896_v15 = vpop.f32.mrb[38].mxu1 }
 0x13e   : > { %v3317_v16 = vpop.f32.mrb[39].mxu0  ;;  %952 = vst.msk [vmem:[#allocation3 + $0x50] sm:$0xff] %vm427_vm1, %v934_v25  ;;  %v1163_v55 = vadd.f32 %v1116_v34, %v968_v38  ;;  %v935_v62 = vadd.f32 %v896_v15, %v693_v14  ;;  %v3283_v17 = vpop.f32.mrb[39].mxu1  ;;  %v2283_v34 = vsel %vm2203_vm7, %v2273_v49, %v2282_v37  ;;  %v2520_v38 = vrot.slane %v4277_v8, 3 }
 0x13f   : > { %v969_v28 = vld [vmem:[#allocation3 + $0x48] sm:$0xff]  ;;  %v2291_v14 = vor.u32 %v2290_v10, %v2287_v9  ;;  %v698_v16 = vld [vmem:[#allocation3 + $0x80] sm:$0xff] }
 0x140   : > { %3543 = vmatmul.mubr.msk.bf16.gmra.mrb[144].mxu0 %vm427_vm1, %v2515_v18  ;;  %1181 = vst.msk [vmem:[#allocation3 + $0x40] sm:$0xff] %vm427_vm1, %v1163_v55  ;;  %953 = vst.msk [vmem:[#allocation3 + $0x58] sm:$0xff] %vm427_vm1, %v935_v62  ;;  %v1164_v59 = vadd.f32 %v1119_v32, %v969_v28  ;;  %3509 = vmatmul.mubr.msk.bf16.gmra.mrb[144].mxu1 %vm427_vm1, %v2265_v13  ;;  %v2521_v17 = vsel %vm2504_vm8, %v2518_v30, %v2520_v38  ;;  %v1193_v30 = vld [vmem:[#allocation3 + $0x10] sm:$0xff] }
 0x141   : > { %3546 = vmatprep.mubr.msk.bf16.mxu0 %vm3662_vm2, %v3661_v1  ;;  %3512 = vmatprep.mubr.msk.bf16.mxu1 %vm3662_vm2, %v3661_v1  ;;  %v2292_v8 = vsel %vm2203_vm7, %v2282_v37, %v2291_v14 }
 0x142   : > { %1182 = vst.msk [vmem:[#allocation3 + $0x48] sm:$0xff] %vm427_vm1, %v1164_v59  ;;  %v699_v59 = vld [vmem:[#allocation3 + $0x88] sm:$0xff] }
 0x143   : > { %v1124_v41 = vpop.f32.mrb[40].mxu0  ;;  %v901_v21 = vpop.f32.mrb[40].mxu1 }
 0x144   : > { %v3320_v29 = vpop.f32.mrb[41].mxu0  ;;  %v936_v35 = vadd.f32 %v901_v21, %v694_v20  ;;  %v3286_v36 = vpop.f32.mrb[41].mxu1 }
 0x145   : > { %v1127_v42 = vpop.f32.mrb[42].mxu0  ;;  %v970_v40 = vld [vmem:[#allocation3 + $0x50] sm:$0xff]  ;;  %v904_v43 = vpop.f32.mrb[42].mxu1 }
 0x146   : > { %v3321_v44 = vpop.f32.mrb[43].mxu0  ;;  %954 = vst.msk [vmem:[#allocation3 + $0x60] sm:$0xff] %vm427_vm1, %v936_v35  ;;  %v1165_v26 = vadd.f32 %v1124_v41, %v970_v40  ;;  %v937_v47 = vadd.f32 %v904_v43, %v695_v52  ;;  %v3287_v48 = vpop.f32.mrb[43].mxu1  ;;  %v2522_v35 = vrot.slane %v2491_v58, 3  ;;  %v1198_v58 = vld [vmem:[#allocation3 + $0x38] sm:$0xff] }
 0x147   : > { %v971_v51 = vld [vmem:[#allocation3 + $0x58] sm:$0xff] }
 0x148   : > { %3547 = vmatmul.mubr.msk.bf16.gmra.mrb[148].mxu0 %vm427_vm1, %v2517_v3  ;;  %1183 = vst.msk [vmem:[#allocation3 + $0x50] sm:$0xff] %vm427_vm1, %v1165_v26  ;;  %955 = vst.msk [vmem:[#allocation3 + $0x68] sm:$0xff] %vm427_vm1, %v937_v47  ;;  %v1166_v27 = vadd.f32 %v1127_v42, %v971_v51  ;;  %3513 = vmatmul.mubr.msk.bf16.gmra.mrb[148].mxu1 %vm427_vm1, %v2274_v45  ;;  %v1191_v42 = vld [vmem:[#allocation3] sm:$0xff]  ;;  %v2523_v45 = vsel %vm2504_vm8, %v2520_v38, %v2522_v35 }
 0x149   : > { %3550 = vmatprep.mubr.msk.bf16.mxu0 %vm3662_vm2, %v3661_v1  ;;  %3516 = vmatprep.mubr.msk.bf16.mxu1 %vm3662_vm2, %v3661_v1 }
 0x14a   : > { %1184 = vst.msk [vmem:[#allocation3 + $0x58] sm:$0xff] %vm427_vm1, %v1166_v27 }
 0x14b   : > { %v1132_v46 = vpop.f32.mrb[44].mxu0  ;;  %v909_v2 = vpop.f32.mrb[44].mxu1 }
 0x14c   : > { %v3324_v60 = vpop.f32.mrb[45].mxu0  ;;  %v938_v61 = vadd.f32 %v909_v2, %v696_v57  ;;  %v3290_v53 = vpop.f32.mrb[45].mxu1 }
 0x14d   : > { %v1135_v0 = vpop.f32.mrb[46].mxu0  ;;  %v972_v5 = vld [vmem:[#allocation3 + $0x60] sm:$0xff]  ;;  %v912_v63 = vpop.f32.mrb[46].mxu1  ;;  %v1194_v60 = vld [vmem:[#allocation3 + $0x18] sm:$0xff] }
 0x14e   : > { %v3325_v31 = vpop.f32.mrb[47].mxu0  ;;  %956 = vst.msk [vmem:[#allocation3 + $0x70] sm:$0xff] %vm427_vm1, %v938_v61  ;;  %v1167_v11 = vadd.f32 %v1132_v46, %v972_v5  ;;  %v939_v25 = vadd.f32 %v912_v63, %v697_v56  ;;  %v3291_v12 = vpop.f32.mrb[47].mxu1 }
 0x14f   : > { %v973_v32 = vld [vmem:[#allocation3 + $0x68] sm:$0xff] }
 0x150   : > { %3551 = vmatmul.mubr.msk.bf16.gmra.mrb[152].mxu0 %vm427_vm1, %v2519_v24  ;;  %1185 = vst.msk [vmem:[#allocation3 + $0x60] sm:$0xff] %vm427_vm1, %v1167_v11  ;;  %957 = vst.msk [vmem:[#allocation3 + $0x78] sm:$0xff] %vm427_vm1, %v939_v25  ;;  %v1168_v18 = vadd.f32 %v1135_v0, %v973_v32  ;;  %3517 = vmatmul.mubr.msk.bf16.gmra.mrb[152].mxu1 %vm427_vm1, %v2283_v34  ;;  %v1195_v34 = vld [vmem:[#allocation3 + $0x20] sm:$0xff] }
 0x151   : > { %3554 = vmatprep.mubr.msk.bf16.mxu0 %vm3662_vm2, %v3661_v1  ;;  %3520 = vmatprep.mubr.msk.bf16.mxu1 %vm3662_vm2, %v3661_v1 }
 0x152   : > { %1186 = vst.msk [vmem:[#allocation3 + $0x68] sm:$0xff] %vm427_vm1, %v1168_v18  ;;  %v1196_v18 = vld [vmem:[#allocation3 + $0x28] sm:$0xff] }
 0x153   : > { %v1140_v15 = vpop.f32.mrb[48].mxu0  ;;  %v917_v13 = vpop.f32.mrb[48].mxu1 }
 0x154   : > { %v3328_v22 = vpop.f32.mrb[49].mxu0  ;;  %v940_v39 = vadd.f32 %v917_v13, %v698_v16  ;;  %v3294_v55 = vpop.f32.mrb[49].mxu1 }
 0x155   : > { %v1143_v62 = vpop.f32.mrb[50].mxu0  ;;  %v974_v28 = vld [vmem:[#allocation3 + $0x70] sm:$0xff]  ;;  %v920_v6 = vpop.f32.mrb[50].mxu1 }
 0x156   : > { %v3329_v49 = vpop.f32.mrb[51].mxu0  ;;  %958 = vst.msk [vmem:[#allocation3 + $0x80] sm:$0xff] %vm427_vm1, %v940_v39  ;;  %v1169_v54 = vadd.f32 %v1140_v15, %v974_v28  ;;  %v941_v41 = vadd.f32 %v920_v6, %v699_v59  ;;  %v3295_v20 = vpop.f32.mrb[51].mxu1 }
 0x157   : > { %v975_v21 = vld [vmem:[#allocation3 + $0x78] sm:$0xff] }
 0x158   : > { %3555 = vmatmul.mubr.msk.bf16.gmra.mrb[156].mxu0 %vm427_vm1, %v2521_v17  ;;  %1187 = vst.msk [vmem:[#allocation3 + $0x70] sm:$0xff] %vm427_vm1, %v1169_v54  ;;  %959 = vst.msk [vmem:[#allocation3 + $0x88] sm:$0xff] %vm427_vm1, %v941_v41  ;;  %v1170_v29 = vadd.f32 %v1143_v62, %v975_v21  ;;  %3521 = vmatmul.mubr.msk.bf16.gmra.mrb[156].mxu1 %vm427_vm1, %v2292_v8  ;;  %v1197_v62 = vld [vmem:[#allocation3 + $0x30] sm:$0xff] }
 0x159   : > { %3558 = vmatprep.mubr.msk.bf16.mxu0 %vm3662_vm2, %v3661_v1 }
 0x15a   : > { %1188 = vst.msk [vmem:[#allocation3 + $0x78] sm:$0xff] %vm427_vm1, %v1170_v29 }
 0x15b   : > { %v1148_v36 = vpop.f32.mrb[52].mxu0  ;;  %v1314_v3 = vpop.f32.mrb[52].mxu1 }
 0x15c   : > { %v3332_v40 = vpop.f32.mrb[53].mxu0  ;;  %v1385_v52 = vadd.f32 %v1314_v3, %v1191_v42  ;;  %v3338_v43 = vpop.f32.mrb[53].mxu1  ;;  %v1199_v3 = vld [vmem:[#allocation3 + $0x40] sm:$0xff] }
 0x15d   : > { %v1151_v44 = vpop.f32.mrb[54].mxu0  ;;  %v976_v19 = vld [vmem:[#allocation3 + $0x80] sm:$0xff]  ;;  %v1317_v26 = vpop.f32.mrb[54].mxu1 }
 0x15e   : > { %v3333_v47 = vpop.f32.mrb[55].mxu0  ;;  %v1171_v48 = vadd.f32 %v1148_v36, %v976_v19  ;;  %1403 = vst.msk [vmem:[#allocation3] sm:$0xff] %vm427_vm1, %v1385_v52  ;;  %v1386_v1 = vadd.f32 %v1317_v26, %v1192_v23  ;;  %v3339_v50 = vpop.f32.mrb[55].mxu1  ;;  %v1200_v23 = vld [vmem:[#allocation3 + $0x48] sm:$0xff] }
 0x15f   : > { %v977_v51 = vld [vmem:[#allocation3 + $0x88] sm:$0xff] }
 0x160   : > { %3559 = vmatmul.mubr.msk.bf16.gmra.mrb[160].mxu0 %vm427_vm1, %v2523_v45  ;;  %1189 = vst.msk [vmem:[#allocation3 + $0x80] sm:$0xff] %vm427_vm1, %v1171_v48  ;;  %v1172_v27 = vadd.f32 %v1151_v44, %v977_v51  ;;  %1404 = vst.msk [vmem:[#allocation3 + $0x8] sm:$0xff] %vm427_vm1, %v1386_v1 }
 0x162   : > { %1190 = vst.msk [vmem:[#allocation3 + $0x88] sm:$0xff] %vm427_vm1, %v1172_v27 }
 0x163   : > { %v1605_v33 = vpop.f32.mrb[56].mxu0  ;;  %v1322_v37 = vpop.f32.mrb[56].mxu1 }
 0x164   : > { %v3376_v4 = vpop.f32.mrb[57].mxu0  ;;  %v1387_v7 = vadd.f32 %v1322_v37, %v1193_v30  ;;  %v3342_v46 = vpop.f32.mrb[57].mxu1  ;;  %v1201_v30 = vld [vmem:[#allocation3 + $0x50] sm:$0xff] }
 0x165   : > { %v1608_v57 = vpop.f32.mrb[58].mxu0  ;;  %v1421_v2 = vld [vmem:[#allocation3] sm:$0xff]  ;;  %v1325_v61 = vpop.f32.mrb[58].mxu1 }
 0x166   : > { %v3377_v53 = vpop.f32.mrb[59].mxu0  ;;  %1405 = vst.msk [vmem:[#allocation3 + $0x10] sm:$0xff] %vm427_vm1, %v1387_v7  ;;  %v1676_v0 = vadd.f32 %v1605_v33, %v1421_v2  ;;  %v1388_v24 = vadd.f32 %v1325_v61, %v1194_v60  ;;  %v3343_v5 = vpop.f32.mrb[59].mxu1  ;;  %v1202_v60 = vld [vmem:[#allocation3 + $0x58] sm:$0xff] }
 0x167   : > { %v1422_v56 = vld [vmem:[#allocation3 + $0x8] sm:$0xff] }
 0x168   : > { %1694 = vst.msk [vmem:[#allocation3] sm:$0xff] %vm427_vm1, %v1676_v0  ;;  %1406 = vst.msk [vmem:[#allocation3 + $0x18] sm:$0xff] %vm427_vm1, %v1388_v24  ;;  %v1677_v63 = vadd.f32 %v1608_v57, %v1422_v56 }
 0x16a   : > { %1695 = vst.msk [vmem:[#allocation3 + $0x8] sm:$0xff] %vm427_vm1, %v1677_v63 }
 0x16b   : > { %v1613_v31 = vpop.f32.mrb[60].mxu0  ;;  %v1330_v9 = vpop.f32.mrb[60].mxu1 }
 0x16c   : > { %v3380_v10 = vpop.f32.mrb[61].mxu0  ;;  %v1389_v11 = vadd.f32 %v1330_v9, %v1195_v34  ;;  %v3346_v25 = vpop.f32.mrb[61].mxu1  ;;  %v1203_v34 = vld [vmem:[#allocation3 + $0x60] sm:$0xff] }
 0x16d   : > { %v1616_v12 = vpop.f32.mrb[62].mxu0  ;;  %v1423_v32 = vld [vmem:[#allocation3 + $0x10] sm:$0xff]  ;;  %v1333_v38 = vpop.f32.mrb[62].mxu1 }
 0x16e   : > { %v3381_v14 = vpop.f32.mrb[63].mxu0  ;;  %1407 = vst.msk [vmem:[#allocation3 + $0x20] sm:$0xff] %vm427_vm1, %v1389_v11  ;;  %v1678_v15 = vadd.f32 %v1613_v31, %v1423_v32  ;;  %v1390_v16 = vadd.f32 %v1333_v38, %v1196_v18  ;;  %v3347_v13 = vpop.f32.mrb[63].mxu1  ;;  %v1204_v18 = vld [vmem:[#allocation3 + $0x68] sm:$0xff] }
 0x16f   : > { %v1424_v22 = vld [vmem:[#allocation3 + $0x18] sm:$0xff] }
 0x170   : > { %1696 = vst.msk [vmem:[#allocation3 + $0x10] sm:$0xff] %vm427_vm1, %v1678_v15  ;;  %1408 = vst.msk [vmem:[#allocation3 + $0x28] sm:$0xff] %vm427_vm1, %v1390_v16  ;;  %v1679_v39 = vadd.f32 %v1616_v12, %v1424_v22 }
 0x172   : > { %1697 = vst.msk [vmem:[#allocation3 + $0x18] sm:$0xff] %vm427_vm1, %v1679_v39 }
 0x173   : > { %v1621_v55 = vpop.f32.mrb[64].mxu0  ;;  %v1338_v17 = vpop.f32.mrb[64].mxu1 }
 0x174   : > { %v3384_v28 = vpop.f32.mrb[65].mxu0  ;;  %v1391_v59 = vadd.f32 %v1338_v17, %v1197_v62  ;;  %v3350_v6 = vpop.f32.mrb[65].mxu1  ;;  %v1205_v62 = vld [vmem:[#allocation3 + $0x70] sm:$0xff] }
 0x175   : > { %v1624_v49 = vpop.f32.mrb[66].mxu0  ;;  %v1425_v8 = vld [vmem:[#allocation3 + $0x20] sm:$0xff]  ;;  %v1341_v54 = vpop.f32.mrb[66].mxu1 }
 0x176   : > { %v3385_v41 = vpop.f32.mrb[67].mxu0  ;;  %1409 = vst.msk [vmem:[#allocation3 + $0x30] sm:$0xff] %vm427_vm1, %v1391_v59  ;;  %v1680_v20 = vadd.f32 %v1621_v55, %v1425_v8  ;;  %v1392_v21 = vadd.f32 %v1341_v54, %v1198_v58  ;;  %v3351_v29 = vpop.f32.mrb[67].mxu1  ;;  %v1206_v58 = vld [vmem:[#allocation3 + $0x78] sm:$0xff] }
 0x177   : > { %v1426_v35 = vld [vmem:[#allocation3 + $0x28] sm:$0xff] }
 0x178   : > { %1698 = vst.msk [vmem:[#allocation3 + $0x20] sm:$0xff] %vm427_vm1, %v1680_v20  ;;  %1410 = vst.msk [vmem:[#allocation3 + $0x38] sm:$0xff] %vm427_vm1, %v1392_v21  ;;  %v1681_v36 = vadd.f32 %v1624_v49, %v1426_v35 }
 0x17a   : > { %1699 = vst.msk [vmem:[#allocation3 + $0x28] sm:$0xff] %vm427_vm1, %v1681_v36 }
 0x17b   : > { %v1629_v42 = vpop.f32.mrb[68].mxu0  ;;  %v1346_v40 = vpop.f32.mrb[68].mxu1 }
 0x17c   : > { %v3388_v52 = vpop.f32.mrb[69].mxu0  ;;  %v1393_v43 = vadd.f32 %v1346_v40, %v1199_v3  ;;  %v3354_v44 = vpop.f32.mrb[69].mxu1  ;;  %v1207_v3 = vld [vmem:[#allocation3 + $0x80] sm:$0xff] }
 0x17d   : > { %v1632_v45 = vpop.f32.mrb[70].mxu0  ;;  %v1427_v19 = vld [vmem:[#allocation3 + $0x30] sm:$0xff]  ;;  %v1349_v26 = vpop.f32.mrb[70].mxu1 }
 0x17e   : > { %v3389_v47 = vpop.f32.mrb[71].mxu0  ;;  %1411 = vst.msk [vmem:[#allocation3 + $0x40] sm:$0xff] %vm427_vm1, %v1393_v43  ;;  %v1682_v48 = vadd.f32 %v1629_v42, %v1427_v19  ;;  %v1394_v1 = vadd.f32 %v1349_v26, %v1200_v23  ;;  %v3355_v50 = vpop.f32.mrb[71].mxu1  ;;  %v1208_v23 = vld [vmem:[#allocation3 + $0x88] sm:$0xff] }
 0x17f   : > { %v1428_v51 = vld [vmem:[#allocation3 + $0x38] sm:$0xff] }
 0x180   : > { %1700 = vst.msk [vmem:[#allocation3 + $0x30] sm:$0xff] %vm427_vm1, %v1682_v48  ;;  %1412 = vst.msk [vmem:[#allocation3 + $0x48] sm:$0xff] %vm427_vm1, %v1394_v1  ;;  %v1683_v27 = vadd.f32 %v1632_v45, %v1428_v51 }
 0x182   : > { %1701 = vst.msk [vmem:[#allocation3 + $0x38] sm:$0xff] %vm427_vm1, %v1683_v27 }
 0x183   : > { %v1637_v33 = vpop.f32.mrb[72].mxu0  ;;  %v1354_v37 = vpop.f32.mrb[72].mxu1 }
 0x184   : > { %v3392_v4 = vpop.f32.mrb[73].mxu0  ;;  %v1395_v7 = vadd.f32 %v1354_v37, %v1201_v30  ;;  %v3358_v46 = vpop.f32.mrb[73].mxu1  ;;  %v1712_v30 = vld [vmem:[#allocation3] sm:$0xff] }
 0x185   : > { %v1640_v57 = vpop.f32.mrb[74].mxu0  ;;  %v1429_v2 = vld [vmem:[#allocation3 + $0x40] sm:$0xff]  ;;  %v1357_v61 = vpop.f32.mrb[74].mxu1 }
 0x186   : > { %v3393_v53 = vpop.f32.mrb[75].mxu0  ;;  %1413 = vst.msk [vmem:[#allocation3 + $0x50] sm:$0xff] %vm427_vm1, %v1395_v7  ;;  %v1684_v0 = vadd.f32 %v1637_v33, %v1429_v2  ;;  %v1396_v24 = vadd.f32 %v1357_v61, %v1202_v60  ;;  %v3359_v5 = vpop.f32.mrb[75].mxu1  ;;  %v1713_v60 = vld [vmem:[#allocation3 + $0x8] sm:$0xff] }
 0x187   : > { %v1430_v56 = vld [vmem:[#allocation3 + $0x48] sm:$0xff] }
 0x188   : > { %1702 = vst.msk [vmem:[#allocation3 + $0x40] sm:$0xff] %vm427_vm1, %v1684_v0  ;;  %1414 = vst.msk [vmem:[#allocation3 + $0x58] sm:$0xff] %vm427_vm1, %v1396_v24  ;;  %v1685_v63 = vadd.f32 %v1640_v57, %v1430_v56 }
 0x18a   : > { %1703 = vst.msk [vmem:[#allocation3 + $0x48] sm:$0xff] %vm427_vm1, %v1685_v63 }
 0x18b   : > { %v1645_v31 = vpop.f32.mrb[76].mxu0  ;;  %v1362_v9 = vpop.f32.mrb[76].mxu1 }
 0x18c   : > { %v3396_v10 = vpop.f32.mrb[77].mxu0  ;;  %v1397_v11 = vadd.f32 %v1362_v9, %v1203_v34  ;;  %v3362_v25 = vpop.f32.mrb[77].mxu1  ;;  %v1714_v34 = vld [vmem:[#allocation3 + $0x10] sm:$0xff] }
 0x18d   : > { %v1648_v12 = vpop.f32.mrb[78].mxu0  ;;  %v1431_v32 = vld [vmem:[#allocation3 + $0x50] sm:$0xff]  ;;  %v1365_v38 = vpop.f32.mrb[78].mxu1 }
 0x18e   : > { %v3397_v14 = vpop.f32.mrb[79].mxu0  ;;  %1415 = vst.msk [vmem:[#allocation3 + $0x60] sm:$0xff] %vm427_vm1, %v1397_v11  ;;  %v1686_v15 = vadd.f32 %v1645_v31, %v1431_v32  ;;  %v1398_v16 = vadd.f32 %v1365_v38, %v1204_v18  ;;  %v3363_v13 = vpop.f32.mrb[79].mxu1  ;;  %v1715_v18 = vld [vmem:[#allocation3 + $0x18] sm:$0xff] }
 0x18f   : > { %v1432_v22 = vld [vmem:[#allocation3 + $0x58] sm:$0xff] }
 0x190   : > { %1704 = vst.msk [vmem:[#allocation3 + $0x50] sm:$0xff] %vm427_vm1, %v1686_v15  ;;  %1416 = vst.msk [vmem:[#allocation3 + $0x68] sm:$0xff] %vm427_vm1, %v1398_v16  ;;  %v1687_v39 = vadd.f32 %v1648_v12, %v1432_v22 }
 0x192   : > { %1705 = vst.msk [vmem:[#allocation3 + $0x58] sm:$0xff] %vm427_vm1, %v1687_v39 }
 0x193   : > { %v1653_v55 = vpop.f32.mrb[80].mxu0  ;;  %v1370_v17 = vpop.f32.mrb[80].mxu1 }
 0x194   : > { %v3400_v28 = vpop.f32.mrb[81].mxu0  ;;  %v1399_v59 = vadd.f32 %v1370_v17, %v1205_v62  ;;  %v3366_v6 = vpop.f32.mrb[81].mxu1  ;;  %v1716_v62 = vld [vmem:[#allocation3 + $0x20] sm:$0xff] }
 0x195   : > { %v1656_v49 = vpop.f32.mrb[82].mxu0  ;;  %v1433_v8 = vld [vmem:[#allocation3 + $0x60] sm:$0xff]  ;;  %v1373_v54 = vpop.f32.mrb[82].mxu1 }
 0x196   : > { %v3401_v41 = vpop.f32.mrb[83].mxu0  ;;  %1417 = vst.msk [vmem:[#allocation3 + $0x70] sm:$0xff] %vm427_vm1, %v1399_v59  ;;  %v1688_v20 = vadd.f32 %v1653_v55, %v1433_v8  ;;  %v1400_v21 = vadd.f32 %v1373_v54, %v1206_v58  ;;  %v3367_v29 = vpop.f32.mrb[83].mxu1  ;;  %v1717_v58 = vld [vmem:[#allocation3 + $0x28] sm:$0xff] }
 0x197   : > { %v1434_v35 = vld [vmem:[#allocation3 + $0x68] sm:$0xff] }
 0x198   : > { %1706 = vst.msk [vmem:[#allocation3 + $0x60] sm:$0xff] %vm427_vm1, %v1688_v20  ;;  %1418 = vst.msk [vmem:[#allocation3 + $0x78] sm:$0xff] %vm427_vm1, %v1400_v21  ;;  %v1689_v36 = vadd.f32 %v1656_v49, %v1434_v35 }
 0x19a   : > { %1707 = vst.msk [vmem:[#allocation3 + $0x68] sm:$0xff] %vm427_vm1, %v1689_v36 }
 0x19b   : > { %v1661_v42 = vpop.f32.mrb[84].mxu0  ;;  %v1378_v40 = vpop.f32.mrb[84].mxu1 }
 0x19c   : > { %v3404_v52 = vpop.f32.mrb[85].mxu0  ;;  %v1401_v43 = vadd.f32 %v1378_v40, %v1207_v3  ;;  %v3370_v44 = vpop.f32.mrb[85].mxu1  ;;  %v1718_v3 = vld [vmem:[#allocation3 + $0x30] sm:$0xff] }
 0x19d   : > { %v1664_v45 = vpop.f32.mrb[86].mxu0  ;;  %v1435_v19 = vld [vmem:[#allocation3 + $0x70] sm:$0xff]  ;;  %v1381_v26 = vpop.f32.mrb[86].mxu1 }
 0x19e   : > { %v3405_v47 = vpop.f32.mrb[87].mxu0  ;;  %1419 = vst.msk [vmem:[#allocation3 + $0x80] sm:$0xff] %vm427_vm1, %v1401_v43  ;;  %v1690_v48 = vadd.f32 %v1661_v42, %v1435_v19  ;;  %v1402_v1 = vadd.f32 %v1381_v26, %v1208_v23  ;;  %v3371_v50 = vpop.f32.mrb[87].mxu1  ;;  %v1719_v23 = vld [vmem:[#allocation3 + $0x38] sm:$0xff] }
 0x19f   : > { %v1436_v51 = vld [vmem:[#allocation3 + $0x78] sm:$0xff] }
 0x1a0   : > { %1708 = vst.msk [vmem:[#allocation3 + $0x70] sm:$0xff] %vm427_vm1, %v1690_v48  ;;  %1420 = vst.msk [vmem:[#allocation3 + $0x88] sm:$0xff] %vm427_vm1, %v1402_v1  ;;  %v1691_v27 = vadd.f32 %v1664_v45, %v1436_v51 }
 0x1a2   : > { %1709 = vst.msk [vmem:[#allocation3 + $0x78] sm:$0xff] %vm427_vm1, %v1691_v27 }
 0x1a3   : > { %v1669_v33 = vpop.f32.mrb[88].mxu0  ;;  %v1836_v37 = vpop.f32.mrb[88].mxu1 }
 0x1a4   : > { %v3408_v4 = vpop.f32.mrb[89].mxu0  ;;  %v1907_v7 = vadd.f32 %v1836_v37, %v1712_v30  ;;  %v3414_v46 = vpop.f32.mrb[89].mxu1  ;;  %v1720_v30 = vld [vmem:[#allocation3 + $0x40] sm:$0xff] }
 0x1a5   : > { %v1672_v57 = vpop.f32.mrb[90].mxu0  ;;  %v1437_v2 = vld [vmem:[#allocation3 + $0x80] sm:$0xff]  ;;  %v1839_v61 = vpop.f32.mrb[90].mxu1 }
 0x1a6   : > { %v3409_v53 = vpop.f32.mrb[91].mxu0  ;;  %v1692_v0 = vadd.f32 %v1669_v33, %v1437_v2  ;;  %1925 = vst.msk [vmem:[#allocation3] sm:$0xff] %vm427_vm1, %v1907_v7  ;;  %v1908_v24 = vadd.f32 %v1839_v61, %v1713_v60  ;;  %v3415_v5 = vpop.f32.mrb[91].mxu1  ;;  %v1721_v60 = vld [vmem:[#allocation3 + $0x48] sm:$0xff] }
 0x1a7   : > { %v1438_v56 = vld [vmem:[#allocation3 + $0x88] sm:$0xff] }
 0x1a8   : > { %1710 = vst.msk [vmem:[#allocation3 + $0x80] sm:$0xff] %vm427_vm1, %v1692_v0  ;;  %v1693_v63 = vadd.f32 %v1672_v57, %v1438_v56  ;;  %1926 = vst.msk [vmem:[#allocation3 + $0x8] sm:$0xff] %vm427_vm1, %v1908_v24 }
 0x1aa   : > { %1711 = vst.msk [vmem:[#allocation3 + $0x88] sm:$0xff] %vm427_vm1, %v1693_v63 }
 0x1ab   : > { %v2066_v31 = vpop.f32.mrb[92].mxu0  ;;  %v1844_v9 = vpop.f32.mrb[92].mxu1 }
 0x1ac   : > { %v3452_v10 = vpop.f32.mrb[93].mxu0  ;;  %v1909_v11 = vadd.f32 %v1844_v9, %v1714_v34  ;;  %v3418_v25 = vpop.f32.mrb[93].mxu1  ;;  %v1722_v34 = vld [vmem:[#allocation3 + $0x50] sm:$0xff] }
 0x1ad   : > { %v2069_v12 = vpop.f32.mrb[94].mxu0  ;;  %v1943_v32 = vld [vmem:[#allocation3] sm:$0xff]  ;;  %v1847_v38 = vpop.f32.mrb[94].mxu1 }
 0x1ae   : > { %v3453_v14 = vpop.f32.mrb[95].mxu0  ;;  %1927 = vst.msk [vmem:[#allocation3 + $0x10] sm:$0xff] %vm427_vm1, %v1909_v11  ;;  %v2137_v15 = vadd.f32 %v2066_v31, %v1943_v32  ;;  %v1910_v16 = vadd.f32 %v1847_v38, %v1715_v18  ;;  %v3419_v13 = vpop.f32.mrb[95].mxu1  ;;  %v1723_v18 = vld [vmem:[#allocation3 + $0x58] sm:$0xff] }
 0x1af   : > { %v1944_v22 = vld [vmem:[#allocation3 + $0x8] sm:$0xff] }
 0x1b0   : > { %2155 = vst.msk [vmem:[#allocation3] sm:$0xff] %vm427_vm1, %v2137_v15  ;;  %1928 = vst.msk [vmem:[#allocation3 + $0x18] sm:$0xff] %vm427_vm1, %v1910_v16  ;;  %v2138_v39 = vadd.f32 %v2069_v12, %v1944_v22 }
 0x1b2   : > { %2156 = vst.msk [vmem:[#allocation3 + $0x8] sm:$0xff] %vm427_vm1, %v2138_v39 }
 0x1b3   : > { %v2074_v55 = vpop.f32.mrb[96].mxu0  ;;  %v1852_v17 = vpop.f32.mrb[96].mxu1 }
 0x1b4   : > { %v3456_v28 = vpop.f32.mrb[97].mxu0  ;;  %v1911_v59 = vadd.f32 %v1852_v17, %v1716_v62  ;;  %v3422_v6 = vpop.f32.mrb[97].mxu1  ;;  %v1724_v62 = vld [vmem:[#allocation3 + $0x60] sm:$0xff] }
 0x1b5   : > { %v2077_v49 = vpop.f32.mrb[98].mxu0  ;;  %v1945_v8 = vld [vmem:[#allocation3 + $0x10] sm:$0xff]  ;;  %v1855_v54 = vpop.f32.mrb[98].mxu1 }
 0x1b6   : > { %v3457_v41 = vpop.f32.mrb[99].mxu0  ;;  %1929 = vst.msk [vmem:[#allocation3 + $0x20] sm:$0xff] %vm427_vm1, %v1911_v59  ;;  %v2139_v20 = vadd.f32 %v2074_v55, %v1945_v8  ;;  %v1912_v21 = vadd.f32 %v1855_v54, %v1717_v58  ;;  %v3423_v29 = vpop.f32.mrb[99].mxu1  ;;  %v1725_v58 = vld [vmem:[#allocation3 + $0x68] sm:$0xff] }
 0x1b7   : > { %v1946_v35 = vld [vmem:[#allocation3 + $0x18] sm:$0xff] }
 0x1b8   : > { %2157 = vst.msk [vmem:[#allocation3 + $0x10] sm:$0xff] %vm427_vm1, %v2139_v20  ;;  %1930 = vst.msk [vmem:[#allocation3 + $0x28] sm:$0xff] %vm427_vm1, %v1912_v21  ;;  %v2140_v36 = vadd.f32 %v2077_v49, %v1946_v35 }
 0x1ba   : > { %2158 = vst.msk [vmem:[#allocation3 + $0x18] sm:$0xff] %vm427_vm1, %v2140_v36 }
 0x1bb   : > { %v2082_v42 = vpop.f32.mrb[100].mxu0  ;;  %v1860_v40 = vpop.f32.mrb[100].mxu1 }
 0x1bc   : > { %v3460_v52 = vpop.f32.mrb[101].mxu0  ;;  %v1913_v43 = vadd.f32 %v1860_v40, %v1718_v3  ;;  %v3426_v44 = vpop.f32.mrb[101].mxu1  ;;  %v1726_v3 = vld [vmem:[#allocation3 + $0x70] sm:$0xff] }
 0x1bd   : > { %v2085_v45 = vpop.f32.mrb[102].mxu0  ;;  %v1947_v19 = vld [vmem:[#allocation3 + $0x20] sm:$0xff]  ;;  %v1863_v26 = vpop.f32.mrb[102].mxu1 }
 0x1be   : > { %v3461_v47 = vpop.f32.mrb[103].mxu0  ;;  %1931 = vst.msk [vmem:[#allocation3 + $0x30] sm:$0xff] %vm427_vm1, %v1913_v43  ;;  %v2141_v48 = vadd.f32 %v2082_v42, %v1947_v19  ;;  %v1914_v1 = vadd.f32 %v1863_v26, %v1719_v23  ;;  %v3427_v50 = vpop.f32.mrb[103].mxu1  ;;  %v1727_v23 = vld [vmem:[#allocation3 + $0x78] sm:$0xff] }
 0x1bf   : > { %v1948_v51 = vld [vmem:[#allocation3 + $0x28] sm:$0xff] }
 0x1c0   : > { %2159 = vst.msk [vmem:[#allocation3 + $0x20] sm:$0xff] %vm427_vm1, %v2141_v48  ;;  %1932 = vst.msk [vmem:[#allocation3 + $0x38] sm:$0xff] %vm427_vm1, %v1914_v1  ;;  %v2142_v27 = vadd.f32 %v2085_v45, %v1948_v51 }
 0x1c2   : > { %2160 = vst.msk [vmem:[#allocation3 + $0x28] sm:$0xff] %vm427_vm1, %v2142_v27 }
 0x1c3   : > { %v2090_v33 = vpop.f32.mrb[104].mxu0  ;;  %v1868_v37 = vpop.f32.mrb[104].mxu1 }
 0x1c4   : > { %v3464_v4 = vpop.f32.mrb[105].mxu0  ;;  %v1915_v7 = vadd.f32 %v1868_v37, %v1720_v30  ;;  %v3430_v46 = vpop.f32.mrb[105].mxu1  ;;  %v1728_v30 = vld [vmem:[#allocation3 + $0x80] sm:$0xff] }
 0x1c5   : > { %v2093_v57 = vpop.f32.mrb[106].mxu0  ;;  %v1949_v2 = vld [vmem:[#allocation3 + $0x30] sm:$0xff]  ;;  %v1871_v61 = vpop.f32.mrb[106].mxu1 }
 0x1c6   : > { %v3465_v53 = vpop.f32.mrb[107].mxu0  ;;  %1933 = vst.msk [vmem:[#allocation3 + $0x40] sm:$0xff] %vm427_vm1, %v1915_v7  ;;  %v2143_v0 = vadd.f32 %v2090_v33, %v1949_v2  ;;  %v1916_v24 = vadd.f32 %v1871_v61, %v1721_v60  ;;  %v3431_v5 = vpop.f32.mrb[107].mxu1  ;;  %v1729_v60 = vld [vmem:[#allocation3 + $0x88] sm:$0xff] }
 0x1c7   : > { %v1950_v56 = vld [vmem:[#allocation3 + $0x38] sm:$0xff] }
 0x1c8   : > { %2161 = vst.msk [vmem:[#allocation3 + $0x30] sm:$0xff] %vm427_vm1, %v2143_v0  ;;  %1934 = vst.msk [vmem:[#allocation3 + $0x48] sm:$0xff] %vm427_vm1, %v1916_v24  ;;  %v2144_v63 = vadd.f32 %v2093_v57, %v1950_v56 }
 0x1ca   : > { %2162 = vst.msk [vmem:[#allocation3 + $0x38] sm:$0xff] %vm427_vm1, %v2144_v63 }
 0x1cb   : > { %v2098_v31 = vpop.f32.mrb[108].mxu0  ;;  %v1876_v9 = vpop.f32.mrb[108].mxu1 }
 0x1cc   : > { %v3468_v10 = vpop.f32.mrb[109].mxu0  ;;  %v1917_v11 = vadd.f32 %v1876_v9, %v1722_v34  ;;  %v3434_v25 = vpop.f32.mrb[109].mxu1  ;;  %v2173_v34 = vld [vmem:[#allocation3] sm:$0xff] }
 0x1cd   : > { %v2101_v12 = vpop.f32.mrb[110].mxu0  ;;  %v1951_v32 = vld [vmem:[#allocation3 + $0x40] sm:$0xff]  ;;  %v1879_v38 = vpop.f32.mrb[110].mxu1 }
 0x1ce   : > { %v3469_v14 = vpop.f32.mrb[111].mxu0  ;;  %1935 = vst.msk [vmem:[#allocation3 + $0x50] sm:$0xff] %vm427_vm1, %v1917_v11  ;;  %v2145_v15 = vadd.f32 %v2098_v31, %v1951_v32  ;;  %v1918_v16 = vadd.f32 %v1879_v38, %v1723_v18  ;;  %v3435_v13 = vpop.f32.mrb[111].mxu1  ;;  %v2174_v18 = vld [vmem:[#allocation3 + $0x8] sm:$0xff] }
 0x1cf   : > { %v1952_v22 = vld [vmem:[#allocation3 + $0x48] sm:$0xff] }
 0x1d0   : > { %2163 = vst.msk [vmem:[#allocation3 + $0x40] sm:$0xff] %vm427_vm1, %v2145_v15  ;;  %1936 = vst.msk [vmem:[#allocation3 + $0x58] sm:$0xff] %vm427_vm1, %v1918_v16  ;;  %v2146_v39 = vadd.f32 %v2101_v12, %v1952_v22 }
 0x1d2   : > { %2164 = vst.msk [vmem:[#allocation3 + $0x48] sm:$0xff] %vm427_vm1, %v2146_v39 }
 0x1d3   : > { %v2106_v55 = vpop.f32.mrb[112].mxu0  ;;  %v1884_v17 = vpop.f32.mrb[112].mxu1 }
 0x1d4   : > { %v3472_v28 = vpop.f32.mrb[113].mxu0  ;;  %v1919_v59 = vadd.f32 %v1884_v17, %v1724_v62  ;;  %v3438_v6 = vpop.f32.mrb[113].mxu1  ;;  %v2175_v62 = vld [vmem:[#allocation3 + $0x10] sm:$0xff] }
 0x1d5   : > { %v2109_v49 = vpop.f32.mrb[114].mxu0  ;;  %v1953_v8 = vld [vmem:[#allocation3 + $0x50] sm:$0xff]  ;;  %v1887_v54 = vpop.f32.mrb[114].mxu1 }
 0x1d6   : > { %v3473_v41 = vpop.f32.mrb[115].mxu0  ;;  %1937 = vst.msk [vmem:[#allocation3 + $0x60] sm:$0xff] %vm427_vm1, %v1919_v59  ;;  %v2147_v20 = vadd.f32 %v2106_v55, %v1953_v8  ;;  %v1920_v21 = vadd.f32 %v1887_v54, %v1725_v58  ;;  %v3439_v29 = vpop.f32.mrb[115].mxu1  ;;  %v2176_v58 = vld [vmem:[#allocation3 + $0x18] sm:$0xff] }
 0x1d7   : > { %v1954_v35 = vld [vmem:[#allocation3 + $0x58] sm:$0xff] }
 0x1d8   : > { %2165 = vst.msk [vmem:[#allocation3 + $0x50] sm:$0xff] %vm427_vm1, %v2147_v20  ;;  %1938 = vst.msk [vmem:[#allocation3 + $0x68] sm:$0xff] %vm427_vm1, %v1920_v21  ;;  %v2148_v36 = vadd.f32 %v2109_v49, %v1954_v35 }
 0x1da   : > { %2166 = vst.msk [vmem:[#allocation3 + $0x58] sm:$0xff] %vm427_vm1, %v2148_v36 }
 0x1db   : > { %v2114_v42 = vpop.f32.mrb[116].mxu0  ;;  %v1892_v40 = vpop.f32.mrb[116].mxu1 }
 0x1dc   : > { %v3476_v52 = vpop.f32.mrb[117].mxu0  ;;  %v1921_v43 = vadd.f32 %v1892_v40, %v1726_v3  ;;  %v3442_v44 = vpop.f32.mrb[117].mxu1  ;;  %v2177_v3 = vld [vmem:[#allocation3 + $0x20] sm:$0xff] }
 0x1dd   : > { %v2117_v45 = vpop.f32.mrb[118].mxu0  ;;  %v1955_v19 = vld [vmem:[#allocation3 + $0x60] sm:$0xff]  ;;  %v1895_v26 = vpop.f32.mrb[118].mxu1 }
 0x1de   : > { %v3477_v47 = vpop.f32.mrb[119].mxu0  ;;  %1939 = vst.msk [vmem:[#allocation3 + $0x70] sm:$0xff] %vm427_vm1, %v1921_v43  ;;  %v2149_v48 = vadd.f32 %v2114_v42, %v1955_v19  ;;  %v1922_v1 = vadd.f32 %v1895_v26, %v1727_v23  ;;  %v3443_v50 = vpop.f32.mrb[119].mxu1  ;;  %v4533_v19 = vld [vmem:[%s4665_s3] ss:$0 sm:$0xff]  ;;  %v2178_v26 = vld [vmem:[#allocation3 + $0x28] sm:$0xff] }
 0x1df   : > { %v1956_v51 = vld [vmem:[#allocation3 + $0x68] sm:$0xff] }
 0x1e0   : > { %2167 = vst.msk [vmem:[#allocation3 + $0x60] sm:$0xff] %vm427_vm1, %v2149_v48  ;;  %1940 = vst.msk [vmem:[#allocation3 + $0x78] sm:$0xff] %vm427_vm1, %v1922_v1  ;;  %v2150_v27 = vadd.f32 %v2117_v45, %v1956_v51 }
 0x1e2   : > { %2168 = vst.msk [vmem:[#allocation3 + $0x68] sm:$0xff] %vm427_vm1, %v2150_v27 }
 0x1e3   : > { %v2122_v33 = vpop.f32.mrb[120].mxu0  ;;  %v1900_v37 = vpop.f32.mrb[120].mxu1 }
 0x1e4   : > { %v3480_v4 = vpop.f32.mrb[121].mxu0  ;;  %v1923_v7 = vadd.f32 %v1900_v37, %v1728_v30  ;;  %v3446_v46 = vpop.f32.mrb[121].mxu1 }
 0x1e5   : > { %v2125_v57 = vpop.f32.mrb[122].mxu0  ;;  %v1957_v2 = vld [vmem:[#allocation3 + $0x70] sm:$0xff]  ;;  %v1903_v61 = vpop.f32.mrb[122].mxu1 }
 0x1e6   : > { %v3481_v53 = vpop.f32.mrb[123].mxu0  ;;  %1941 = vst.msk [vmem:[#allocation3 + $0x80] sm:$0xff] %vm427_vm1, %v1923_v7  ;;  %v2151_v0 = vadd.f32 %v2122_v33, %v1957_v2  ;;  %v1924_v24 = vadd.f32 %v1903_v61, %v1729_v60  ;;  %v3447_v5 = vpop.f32.mrb[123].mxu1  ;;  %v4539_v33 = vld [vmem:[%s4666_s4] ss:$0 sm:$0xff]  ;;  %v2179_v60 = vld [vmem:[#allocation3 + $0x30] sm:$0xff] }
 0x1e7   : > { %v1958_v56 = vld [vmem:[#allocation3 + $0x78] sm:$0xff] }
 0x1e8   : > { %2169 = vst.msk [vmem:[#allocation3 + $0x70] sm:$0xff] %vm427_vm1, %v2151_v0  ;;  %1942 = vst.msk [vmem:[#allocation3 + $0x88] sm:$0xff] %vm427_vm1, %v1924_v24  ;;  %v2152_v63 = vadd.f32 %v2125_v57, %v1958_v56 }
 0x1ea   : > { %2170 = vst.msk [vmem:[#allocation3 + $0x78] sm:$0xff] %vm427_vm1, %v2152_v63 }
 0x1eb   : > { %v2130_v31 = vpop.f32.mrb[124].mxu0  ;;  %v2357_v9 = vpop.f32.mrb[124].mxu1 }
 0x1ec   : > { %v3484_v10 = vpop.f32.mrb[125].mxu0  ;;  %v2428_v11 = vadd.f32 %v2357_v9, %v2173_v34  ;;  %v3490_v25 = vpop.f32.mrb[125].mxu1  ;;  %v2180_v34 = vld [vmem:[#allocation3 + $0x38] sm:$0xff] }
 0x1ed   : > { %v2133_v12 = vpop.f32.mrb[126].mxu0  ;;  %v1959_v32 = vld [vmem:[#allocation3 + $0x80] sm:$0xff]  ;;  %v2360_v38 = vpop.f32.mrb[126].mxu1 }
 0x1ee   : > { %v3485_v14 = vpop.f32.mrb[127].mxu0  ;;  %v2153_v15 = vadd.f32 %v2130_v31, %v1959_v32  ;;  %2446 = vst.msk [vmem:[#allocation3] sm:$0xff] %vm427_vm1, %v2428_v11  ;;  %v2429_v16 = vadd.f32 %v2360_v38, %v2174_v18  ;;  %v3491_v13 = vpop.f32.mrb[127].mxu1 }
 0x1ef   : > { %v1960_v22 = vld [vmem:[#allocation3 + $0x88] sm:$0xff] }
 0x1f0   : > { %2171 = vst.msk [vmem:[#allocation3 + $0x80] sm:$0xff] %vm427_vm1, %v2153_v15  ;;  %v2154_v39 = vadd.f32 %v2133_v12, %v1960_v22  ;;  %2447 = vst.msk [vmem:[#allocation3 + $0x8] sm:$0xff] %vm427_vm1, %v2429_v16 }
 0x1f2   : > { %2172 = vst.msk [vmem:[#allocation3 + $0x88] sm:$0xff] %vm427_vm1, %v2154_v39 }
 0x1f3   : > { %v2588_v55 = vpop.f32.mrb[128].mxu0  ;;  %v2365_v17 = vpop.f32.mrb[128].mxu1 }
 0x1f4   : > { %v3528_v28 = vpop.f32.mrb[129].mxu0  ;;  %v2430_v59 = vadd.f32 %v2365_v17, %v2175_v62  ;;  %v3494_v6 = vpop.f32.mrb[129].mxu1  ;;  %v2181_v17 = vld [vmem:[#allocation3 + $0x40] sm:$0xff] }
 0x1f5   : > { %v2591_v49 = vpop.f32.mrb[130].mxu0  ;;  %v2464_v8 = vld [vmem:[#allocation3] sm:$0xff]  ;;  %v2368_v54 = vpop.f32.mrb[130].mxu1 }
 0x1f6   : > { %v3529_v41 = vpop.f32.mrb[131].mxu0  ;;  %2448 = vst.msk [vmem:[#allocation3 + $0x10] sm:$0xff] %vm427_vm1, %v2430_v59  ;;  %v2659_v20 = vadd.f32 %v2588_v55, %v2464_v8  ;;  %v2431_v21 = vadd.f32 %v2368_v54, %v2176_v58  ;;  %v3495_v29 = vpop.f32.mrb[131].mxu1 }
 0x1f7   : > { %v2465_v35 = vld [vmem:[#allocation3 + $0x8] sm:$0xff] }
 0x1f8   : > { %2677 = vst.msk [vmem:[#allocation3] sm:$0xff] %vm427_vm1, %v2659_v20  ;;  %2449 = vst.msk [vmem:[#allocation3 + $0x18] sm:$0xff] %vm427_vm1, %v2431_v21  ;;  %v2660_v36 = vadd.f32 %v2591_v49, %v2465_v35  ;;  %v2182_v20 = vld [vmem:[#allocation3 + $0x48] sm:$0xff] }
 0x1fa   : > { %2678 = vst.msk [vmem:[#allocation3 + $0x8] sm:$0xff] %vm427_vm1, %v2660_v36 }
 0x1fb   : > { %v2596_v42 = vpop.f32.mrb[132].mxu0  ;;  %v2373_v40 = vpop.f32.mrb[132].mxu1 }
 0x1fc   : > { %v3532_v52 = vpop.f32.mrb[133].mxu0  ;;  %v2432_v43 = vadd.f32 %v2373_v40, %v2177_v3  ;;  %v3498_v44 = vpop.f32.mrb[133].mxu1 }
 0x1fd   : > { %v2599_v45 = vpop.f32.mrb[134].mxu0  ;;  %v2466_v23 = vld [vmem:[#allocation3 + $0x10] sm:$0xff]  ;;  %v2376_v47 = vpop.f32.mrb[134].mxu1 }
 0x1fe   : > { %v3533_v48 = vpop.f32.mrb[135].mxu0  ;;  %2450 = vst.msk [vmem:[#allocation3 + $0x20] sm:$0xff] %vm427_vm1, %v2432_v43  ;;  %v2661_v1 = vadd.f32 %v2596_v42, %v2466_v23  ;;  %v2433_v50 = vadd.f32 %v2376_v47, %v2178_v26  ;;  %v3499_v51 = vpop.f32.mrb[135].mxu1 }
 0x1ff   : > { %v2695_v27 = vld [vmem:[#allocation3] sm:$0xff]  ;;  %v2467_v30 = vld [vmem:[#allocation3 + $0x18] sm:$0xff] }
 0x200   : > { %v2720_v37 = vmul.f32 %v4533_v19, %v2695_v27  ;;  %2679 = vst.msk [vmem:[#allocation3 + $0x10] sm:$0xff] %vm427_vm1, %v2661_v1  ;;  %2451 = vst.msk [vmem:[#allocation3 + $0x28] sm:$0xff] %vm427_vm1, %v2433_v50  ;;  %v2662_v4 = vadd.f32 %v2599_v45, %v2467_v30  ;;  %v2183_v50 = vld [vmem:[#allocation3 + $0x50] sm:$0xff] }
 0x201   : > { %v2696_v7 = vld [vmem:[#allocation3 + $0x8] sm:$0xff] }
 0x202   : > { %v2745_v46 = vadd.f32 %v4539_v33, %v2720_v37  ;;  %v2721_v57 = vmul.f32 %v4533_v19, %v2696_v7  ;;  %2680 = vst.msk [vmem:[#allocation3 + $0x18] sm:$0xff] %vm427_vm1, %v2662_v4 }
 0x203   : > { %v2604_v2 = vpop.f32.mrb[136].mxu0  ;;  %v2381_v61 = vpop.f32.mrb[136].mxu1 }
 0x204   : > { %v3536_v53 = vpop.f32.mrb[137].mxu0  ;;  %v2763_v0 = vmax.f32 %v2745_v46, 0.0  ;;  %v2746_v24 = vadd.f32 %v4539_v33, %v2721_v57  ;;  %v2434_v5 = vadd.f32 %v2381_v61, %v2179_v60  ;;  %v3502_v56 = vpop.f32.mrb[137].mxu1 }
 0x205   : > { %v2607_v63 = vpop.f32.mrb[138].mxu0  ;;  %v2468_v31 = vld [vmem:[#allocation3 + $0x20] sm:$0xff]  ;;  %v2384_v9 = vpop.f32.mrb[138].mxu1 }
 0x206   : > { %v3537_v10 = vpop.f32.mrb[139].mxu0  ;;  %v3112_v11 = vpack.c.bf16 %v2763_v0, %v2763_v0  ;;  %v2764_v25 = vmax.f32 %v2746_v24, 0.0  ;;  %2452 = vst.msk [vmem:[#allocation3 + $0x30] sm:$0xff] %vm427_vm1, %v2434_v5  ;;  %v2663_v12 = vadd.f32 %v2604_v2, %v2468_v31  ;;  %v2435_v32 = vadd.f32 %v2384_v9, %v2180_v34  ;;  %v3503_v18 = vpop.f32.mrb[139].mxu1  ;;  %v2184_v2 = vld [vmem:[#allocation3 + $0x58] sm:$0xff] }
 0x207   : > { %v2697_v38 = vld [vmem:[#allocation3 + $0x10] sm:$0xff]  ;;  %v2469_v14 = vld [vmem:[#allocation3 + $0x28] sm:$0xff]  ;;  %v2185_v18 = vld [vmem:[#allocation3 + $0x60] sm:$0xff] }
 0x208   : > { %2854 = vst.msk [vmem:[%s4551_s29] sm:$0xf] %vm2853_vm9, %v3112_v11  ;;  %v3113_v15 = vpack.c.bf16 %v2764_v25, %v2764_v25  ;;  %v2722_v16 = vmul.f32 %v4533_v19, %v2697_v38  ;;  %v2664_v13 = vadd.f32 %v2607_v63, %v2469_v14 }
 0x209   : > { %2681 = vst.msk [vmem:[#allocation3 + $0x20] sm:$0xff] %vm427_vm1, %v2663_v12  ;;  %2453 = vst.msk [vmem:[#allocation3 + $0x38] sm:$0xff] %vm427_vm1, %v2435_v32  ;;  %v2698_v22 = vld [vmem:[#allocation3 + $0x18] sm:$0xff] }
 0x20a   : > { %2855 = vst.msk [vmem:[%s4551_s29 + $0x4] sm:$0xf] %vm2853_vm9, %v3113_v15  ;;  %v2747_v39 = vadd.f32 %v4539_v33, %v2722_v16  ;;  %v2723_v55 = vmul.f32 %v4533_v19, %v2698_v22 }
 0x20b   : > { %2682 = vst.msk [vmem:[#allocation3 + $0x28] sm:$0xff] %vm427_vm1, %v2664_v13  ;;  %v2612_v62 = vpop.f32.mrb[140].mxu0  ;;  %v2389_v28 = vpop.f32.mrb[140].mxu1 }
 0x20c   : > { %v3540_v59 = vpop.f32.mrb[141].mxu0  ;;  %v2765_v6 = vmax.f32 %v2747_v39, 0.0  ;;  %v2748_v49 = vadd.f32 %v4539_v33, %v2723_v55  ;;  %v2436_v8 = vadd.f32 %v2389_v28, %v2181_v17  ;;  %v3506_v58 = vpop.f32.mrb[141].mxu1 }
 0x20d   : > { %v2615_v54 = vpop.f32.mrb[142].mxu0  ;;  %v2470_v41 = vld [vmem:[#allocation3 + $0x30] sm:$0xff]  ;;  %v2392_v21 = vpop.f32.mrb[142].mxu1 }
 0x20e   : > { %v3541_v29 = vpop.f32.mrb[143].mxu0  ;;  %v3114_v35 = vpack.c.bf16 %v2765_v6, %v2765_v6  ;;  %v2766_v36 = vmax.f32 %v2748_v49, 0.0  ;;  %2454 = vst.msk [vmem:[#allocation3 + $0x40] sm:$0xff] %vm427_vm1, %v2436_v8  ;;  %v2665_v42 = vadd.f32 %v2612_v62, %v2470_v41  ;;  %v2437_v3 = vadd.f32 %v2392_v21, %v2182_v20  ;;  %v3507_v40 = vpop.f32.mrb[143].mxu1  ;;  %v2186_v62 = vld [vmem:[#allocation3 + $0x68] sm:$0xff] }
 0x20f   : > { %v2187_v40 = vld [vmem:[#allocation3 + $0x70] sm:$0xff] }
 0x210   : > { %v2699_v52 = vld [vmem:[#allocation3 + $0x20] sm:$0xff]  ;;  %v2471_v43 = vld [vmem:[#allocation3 + $0x38] sm:$0xff]  ;;  %2856 = vst.msk [vmem:[%s4551_s29 + $0x8] sm:$0xf] %vm2853_vm9, %v3114_v35  ;;  %v3115_v44 = vpack.c.bf16 %v2766_v36, %v2766_v36 }
 0x211   : > { %v2724_v45 = vmul.f32 %v4533_v19, %v2699_v52  ;;  %2683 = vst.msk [vmem:[#allocation3 + $0x30] sm:$0xff] %vm427_vm1, %v2665_v42  ;;  %2455 = vst.msk [vmem:[#allocation3 + $0x48] sm:$0xff] %vm427_vm1, %v2437_v3  ;;  %v2666_v23 = vadd.f32 %v2615_v54, %v2471_v43 }
 0x212   : > { %v2700_v26 = vld [vmem:[#allocation3 + $0x28] sm:$0xff]  ;;  %2857 = vst.msk [vmem:[%s4551_s29 + $0xc] sm:$0xf] %vm2853_vm9, %v3115_v44 }
 0x213   : > { %v2749_v47 = vadd.f32 %v4539_v33, %v2724_v45  ;;  %v2725_v48 = vmul.f32 %v4533_v19, %v2700_v26  ;;  %2684 = vst.msk [vmem:[#allocation3 + $0x38] sm:$0xff] %vm427_vm1, %v2666_v23  ;;  %v2620_v1 = vpop.f32.mrb[144].mxu0  ;;  %v2397_v51 = vpop.f32.mrb[144].mxu1 }
 0x214   : > { %v3544_v27 = vpop.f32.mrb[145].mxu0  ;;  %v2438_v4 = vadd.f32 %v2397_v51, %v2183_v50  ;;  %v3510_v7 = vpop.f32.mrb[145].mxu1 }
 0x215   : > { %v2767_v30 = vmax.f32 %v2749_v47, 0.0  ;;  %v2750_v37 = vadd.f32 %v4539_v33, %v2725_v48  ;;  %v2623_v46 = vpop.f32.mrb[146].mxu0  ;;  %v2472_v57 = vld [vmem:[#allocation3 + $0x40] sm:$0xff]  ;;  %v2400_v60 = vpop.f32.mrb[146].mxu1 }
 0x216   : > { %v3545_v61 = vpop.f32.mrb[147].mxu0  ;;  %2456 = vst.msk [vmem:[#allocation3 + $0x50] sm:$0xff] %vm427_vm1, %v2438_v4  ;;  %v2667_v24 = vadd.f32 %v2620_v1, %v2472_v57  ;;  %v2439_v5 = vadd.f32 %v2400_v60, %v2184_v2  ;;  %v3511_v56 = vpop.f32.mrb[147].mxu1  ;;  %v2188_v1 = vld [vmem:[#allocation3 + $0x78] sm:$0xff] }
 0x217   : > { %v3116_v53 = vpack.c.bf16 %v2767_v30, %v2767_v30  ;;  %v2768_v0 = vmax.f32 %v2750_v37, 0.0  ;;  %v2189_v56 = vld [vmem:[#allocation3 + $0x80] sm:$0xff] }
 0x218   : > { %v2701_v63 = vld [vmem:[#allocation3 + $0x30] sm:$0xff]  ;;  %v2473_v31 = vld [vmem:[#allocation3 + $0x48] sm:$0xff]  ;;  %2685 = vst.msk [vmem:[#allocation3 + $0x40] sm:$0xff] %vm427_vm1, %v2667_v24  ;;  %2457 = vst.msk [vmem:[#allocation3 + $0x58] sm:$0xff] %vm427_vm1, %v2439_v5 }
 0x219   : > { %2858 = vst.msk [vmem:[%s4551_s29 + $0x10] sm:$0xf] %vm2853_vm9, %v3116_v53  ;;  %v3117_v34 = vpack.c.bf16 %v2768_v0, %v2768_v0  ;;  %v2726_v9 = vmul.f32 %v4533_v19, %v2701_v63  ;;  %v2668_v10 = vadd.f32 %v2623_v46, %v2473_v31 }
 0x21a   : > { %v2702_v11 = vld [vmem:[#allocation3 + $0x38] sm:$0xff] }
 0x21b   : > { %2859 = vst.msk [vmem:[%s4551_s29 + $0x14] sm:$0xf] %vm2853_vm9, %v3117_v34  ;;  %v2751_v25 = vadd.f32 %v4539_v33, %v2726_v9  ;;  %v2727_v12 = vmul.f32 %v4533_v19, %v2702_v11  ;;  %v2628_v32 = vpop.f32.mrb[148].mxu0  ;;  %v2405_v38 = vpop.f32.mrb[148].mxu1 }
 0x21c   : > { %2686 = vst.msk [vmem:[#allocation3 + $0x48] sm:$0xff] %vm427_vm1, %v2668_v10  ;;  %v3548_v14 = vpop.f32.mrb[149].mxu0  ;;  %v2440_v13 = vadd.f32 %v2405_v38, %v2185_v18  ;;  %v3514_v22 = vpop.f32.mrb[149].mxu1 }
 0x21d   : > { %v2769_v15 = vmax.f32 %v2751_v25, 0.0  ;;  %v2752_v16 = vadd.f32 %v4539_v33, %v2727_v12  ;;  %v2631_v39 = vpop.f32.mrb[150].mxu0  ;;  %v2474_v55 = vld [vmem:[#allocation3 + $0x50] sm:$0xff]  ;;  %v2408_v17 = vpop.f32.mrb[150].mxu1 }
 0x21e   : > { %v3549_v28 = vpop.f32.mrb[151].mxu0  ;;  %2458 = vst.msk [vmem:[#allocation3 + $0x60] sm:$0xff] %vm427_vm1, %v2440_v13  ;;  %v2669_v49 = vadd.f32 %v2628_v32, %v2474_v55  ;;  %v2441_v8 = vadd.f32 %v2408_v17, %v2186_v62  ;;  %v3515_v58 = vpop.f32.mrb[151].mxu1  ;;  %v2190_v32 = vld [vmem:[#allocation3 + $0x88] sm:$0xff] }
 0x21f   : > { %v3118_v59 = vpack.c.bf16 %v2769_v15, %v2769_v15  ;;  %v2770_v6 = vmax.f32 %v2752_v16, 0.0  ;;  %v2703_v54 = vld [vmem:[#allocation3 + $0x40] sm:$0xff]  ;;  %v2475_v41 = vld [vmem:[#allocation3 + $0x58] sm:$0xff] }
 0x220   : > { %v2728_v21 = vmul.f32 %v4533_v19, %v2703_v54  ;;  %2687 = vst.msk [vmem:[#allocation3 + $0x50] sm:$0xff] %vm427_vm1, %v2669_v49  ;;  %2459 = vst.msk [vmem:[#allocation3 + $0x68] sm:$0xff] %vm427_vm1, %v2441_v8  ;;  %v2670_v29 = vadd.f32 %v2631_v39, %v2475_v41 }
 0x221   : > { %2860 = vst.msk [vmem:[%s4551_s29 + $0x18] sm:$0xf] %vm2853_vm9, %v3118_v59  ;;  %v3119_v20 = vpack.c.bf16 %v2770_v6, %v2770_v6 }
 0x222   : > { %v2753_v36 = vadd.f32 %v4539_v33, %v2728_v21  ;;  %2688 = vst.msk [vmem:[#allocation3 + $0x58] sm:$0xff] %vm427_vm1, %v2670_v29 }
 0x223   : > { %v2704_v35 = vld [vmem:[#allocation3 + $0x48] sm:$0xff]  ;;  %2861 = vst.msk [vmem:[%s4551_s29 + $0x1c] sm:$0xf] %vm2853_vm9, %v3119_v20  ;;  %v2636_v3 = vpop.f32.mrb[152].mxu0  ;;  %v2413_v52 = vpop.f32.mrb[152].mxu1 }
 0x224   : > { %v2729_v42 = vmul.f32 %v4533_v19, %v2704_v35  ;;  %v3552_v43 = vpop.f32.mrb[153].mxu0  ;;  %v2771_v44 = vmax.f32 %v2753_v36, 0.0  ;;  %v2442_v23 = vadd.f32 %v2413_v52, %v2187_v40  ;;  %v3518_v26 = vpop.f32.mrb[153].mxu1 }
 0x225   : > { %v2639_v47 = vpop.f32.mrb[154].mxu0  ;;  %v2476_v48 = vld [vmem:[#allocation3 + $0x60] sm:$0xff]  ;;  %v2416_v50 = vpop.f32.mrb[154].mxu1 }
 0x226   : > { %v2754_v45 = vadd.f32 %v4539_v33, %v2729_v42  ;;  %v3553_v51 = vpop.f32.mrb[155].mxu0  ;;  %v3120_v27 = vpack.c.bf16 %v2771_v44, %v2771_v44  ;;  %2460 = vst.msk [vmem:[#allocation3 + $0x70] sm:$0xff] %vm427_vm1, %v2442_v23  ;;  %v2671_v37 = vadd.f32 %v2636_v3, %v2476_v48  ;;  %v2443_v4 = vadd.f32 %v2416_v50, %v2188_v1  ;;  %v3519_v7 = vpop.f32.mrb[155].mxu1 }
 0x227   : > { %v2705_v46 = vld [vmem:[#allocation3 + $0x50] sm:$0xff]  ;;  %v2477_v57 = vld [vmem:[#allocation3 + $0x68] sm:$0xff] }
 0x228   : > { %v2772_v30 = vmax.f32 %v2754_v45, 0.0  ;;  %2862 = vst.msk [vmem:[%s4551_s29 + $0x20] sm:$0xf] %vm2853_vm9, %v3120_v27  ;;  %v2730_v60 = vmul.f32 %v4533_v19, %v2705_v46  ;;  %v2672_v61 = vadd.f32 %v2639_v47, %v2477_v57 }
 0x229   : > { %2689 = vst.msk [vmem:[#allocation3 + $0x60] sm:$0xff] %vm427_vm1, %v2671_v37  ;;  %2461 = vst.msk [vmem:[#allocation3 + $0x78] sm:$0xff] %vm427_vm1, %v2443_v4  ;;  %v2706_v53 = vld [vmem:[#allocation3 + $0x58] sm:$0xff] }
 0x22a   : > { %v3121_v2 = vpack.c.bf16 %v2772_v30, %v2772_v30  ;;  %v2755_v0 = vadd.f32 %v4539_v33, %v2730_v60  ;;  %v2731_v24 = vmul.f32 %v4533_v19, %v2706_v53  ;;  %2690 = vst.msk [vmem:[#allocation3 + $0x68] sm:$0xff] %vm427_vm1, %v2672_v61 }
 0x22b   : > { %v2644_v5 = vpop.f32.mrb[156].mxu0  ;;  %v2421_v63 = vpop.f32.mrb[156].mxu1 }
 0x22c   : > { %2863 = vst.msk [vmem:[%s4551_s29 + $0x24] sm:$0xf] %vm2853_vm9, %v3121_v2  ;;  %v3556_v31 = vpop.f32.mrb[157].mxu0  ;;  %v2773_v34 = vmax.f32 %v2755_v0, 0.0  ;;  %v2756_v9 = vadd.f32 %v4539_v33, %v2731_v24  ;;  %v2444_v10 = vadd.f32 %v2421_v63, %v2189_v56  ;;  %v3522_v11 = vpop.f32.mrb[157].mxu1 }
 0x22d   : > { %v2647_v25 = vpop.f32.mrb[158].mxu0  ;;  %v2478_v12 = vld [vmem:[#allocation3 + $0x70] sm:$0xff]  ;;  %v2424_v18 = vpop.f32.mrb[158].mxu1 }
 0x22e   : > { %v3557_v38 = vpop.f32.mrb[159].mxu0  ;;  %v3122_v14 = vpack.c.bf16 %v2773_v34, %v2773_v34  ;;  %v2774_v15 = vmax.f32 %v2756_v9, 0.0  ;;  %2462 = vst.msk [vmem:[#allocation3 + $0x80] sm:$0xff] %vm427_vm1, %v2444_v10  ;;  %v2673_v16 = vadd.f32 %v2644_v5, %v2478_v12  ;;  %v2445_v13 = vadd.f32 %v2424_v18, %v2190_v32  ;;  %v3523_v22 = vpop.f32.mrb[159].mxu1 }
 0x230   : > { %v2707_v39 = vld [vmem:[#allocation3 + $0x60] sm:$0xff]  ;;  %v2479_v55 = vld [vmem:[#allocation3 + $0x78] sm:$0xff]  ;;  %2864 = vst.msk [vmem:[%s4551_s29 + $0x28] sm:$0xf] %vm2853_vm9, %v3122_v14  ;;  %v3123_v62 = vpack.c.bf16 %v2774_v15, %v2774_v15 }
 0x231   : > { %v2732_v17 = vmul.f32 %v4533_v19, %v2707_v39  ;;  %2691 = vst.msk [vmem:[#allocation3 + $0x70] sm:$0xff] %vm427_vm1, %v2673_v16  ;;  %2463 = vst.msk [vmem:[#allocation3 + $0x88] sm:$0xff] %vm427_vm1, %v2445_v13  ;;  %v2674_v28 = vadd.f32 %v2647_v25, %v2479_v55  ;;  %v2708_v59 = vld [vmem:[#allocation3 + $0x68] sm:$0xff] }
 0x232   : > { %2865 = vst.msk [vmem:[%s4551_s29 + $0x2c] sm:$0xf] %vm2853_vm9, %v3123_v62  ;;  %v2733_v49 = vmul.f32 %v4533_v19, %v2708_v59 }
 0x233   : > { %v2757_v6 = vadd.f32 %v4539_v33, %v2732_v17  ;;  %2692 = vst.msk [vmem:[#allocation3 + $0x78] sm:$0xff] %vm427_vm1, %v2674_v28  ;;  %v2652_v8 = vpop.f32.mrb[160].mxu0 }
 0x234   : > { %v3560_v58 = vpop.f32.mrb[161].mxu0  ;;  %v2758_v41 = vadd.f32 %v4539_v33, %v2733_v49 }
 0x235   : > { %v2775_v54 = vmax.f32 %v2757_v6, 0.0  ;;  %v2655_v20 = vpop.f32.mrb[162].mxu0  ;;  %v2480_v21 = vld [vmem:[#allocation3 + $0x80] sm:$0xff] }
 0x236   : > { %v3561_v29 = vpop.f32.mrb[163].mxu0  ;;  %v2776_v36 = vmax.f32 %v2758_v41, 0.0  ;;  %v2675_v42 = vadd.f32 %v2652_v8, %v2480_v21 }
 0x237   : > { %v3124_v35 = vpack.c.bf16 %v2775_v54, %v2775_v54 }
 0x238   : > { %v2709_v3 = vld [vmem:[#allocation3 + $0x70] sm:$0xff]  ;;  %v2481_v40 = vld [vmem:[#allocation3 + $0x88] sm:$0xff]  ;;  %v3125_v52 = vpack.c.bf16 %v2776_v36, %v2776_v36  ;;  %2693 = vst.msk [vmem:[#allocation3 + $0x80] sm:$0xff] %vm427_vm1, %v2675_v42 }
 0x239   : > { %2866 = vst.msk [vmem:[%s4551_s29 + $0x30] sm:$0xf] %vm2853_vm9, %v3124_v35  ;;  %v2734_v43 = vmul.f32 %v4533_v19, %v2709_v3  ;;  %v2676_v44 = vadd.f32 %v2655_v20, %v2481_v40 }
 0x23a   : > { %v2710_v45 = vld [vmem:[#allocation3 + $0x78] sm:$0xff]  ;;  %2867 = vst.msk [vmem:[%s4551_s29 + $0x34] sm:$0xf] %vm2853_vm9, %v3125_v52 }
 0x23b   : > { %v2759_v23 = vadd.f32 %v4539_v33, %v2734_v43  ;;  %v2735_v26 = vmul.f32 %v4533_v19, %v2710_v45  ;;  %2694 = vst.msk [vmem:[#allocation3 + $0x88] sm:$0xff] %vm427_vm1, %v2676_v44 }
 0x23d   : > { %v2777_v47 = vmax.f32 %v2759_v23, 0.0  ;;  %v2760_v48 = vadd.f32 %v4539_v33, %v2735_v26 }
 0x23f   : > { %v3126_v1 = vpack.c.bf16 %v2777_v47, %v2777_v47  ;;  %v2778_v50 = vmax.f32 %v2760_v48, 0.0  ;;  %v2711_v51 = vld [vmem:[#allocation3 + $0x80] sm:$0xff] }
 0x240   : > { %v2736_v30 = vmul.f32 %v4533_v19, %v2711_v51 }
 0x241   : > { %2868 = vst.msk [vmem:[%s4551_s29 + $0x38] sm:$0xf] %vm2853_vm9, %v3126_v1  ;;  %v3127_v27 = vpack.c.bf16 %v2778_v50, %v2778_v50 }
 0x242   : > { %v2712_v37 = vld [vmem:[#allocation3 + $0x88] sm:$0xff]  ;;  %v2761_v4 = vadd.f32 %v4539_v33, %v2736_v30 }
 0x243   : > { %2869 = vst.msk [vmem:[%s4551_s29 + $0x3c] sm:$0xf] %vm2853_vm9, %v3127_v27  ;;  %v2737_v7 = vmul.f32 %v4533_v19, %v2712_v37 }
 0x244   : > { %v2779_v46 = vmax.f32 %v2761_v4, 0.0 }
 0x245   : > { %v2762_v57 = vadd.f32 %v4539_v33, %v2737_v7 }
 0x246   : > { %v3128_v2 = vpack.c.bf16 %v2779_v46, %v2779_v46 }
 0x247   : > { %v2780_v60 = vmax.f32 %v2762_v57, 0.0 }
 0x248   : > { %2870 = vst.msk [vmem:[%s4551_s29 + $0x40] sm:$0xf] %vm2853_vm9, %v3128_v2 }
 0x249   : > { %v3129_v61 = vpack.c.bf16 %v2780_v60, %v2780_v60 }
 0x24b   : > { %2871 = vst.msk [vmem:[%s4551_s29 + $0x44] sm:$0xf] %vm2853_vm9, %v3129_v61 }
 0x24c PF: > { %s15_s22 = sadd.s32 1, %s3659_s22   ;;  %s4668_s18 = smov %s3651_s20 }
 0x24d   : > { %p12_p9 = scmp.ge.s32.totalorder %s15_s22, 6   ;;  %s4669_s19 = smov %s3655_s21 }
 0x24e   : > { %s4670_s20 = smov %s4673_s23  ;;  %s4671_s21 = smov %s4677_s24 }
 0x24f   :  { %14 = sbr.rel (!%p12_p9) target bundleno = 3 (0x3), region = 81 }

</bundles_post_ra>
